<compile_context>
chip_gen: v6e
topology: v6e:2x2x1
jax: 0.10.0
libtpu: 0.0.40
codegen_flags: <defaults>
</compile_context>

<pallas_src>
import functools

import jax
import jax.numpy as jnp
import numpy as np
from jax.experimental import pallas as pl
from jax.experimental.pallas import tpu as pltpu

_NEG_BIG = -1e30  # finite "-inf" so masked/initial exp() underflows to 0 (no NaN)


def _round_up(x, m):
    return ((x + m - 1) // m) * m


def _scale_rows(scales_row, mat, n_rows):
    """diag(scales_row) @ mat: multiplies row r of `mat` by scales_row[0, r].

    The per-class scales naturally come out with the class axis on lanes
    ([1, C]) while the accumulator has classes on sublanes ([C, L]); a tiny
    diag-matmul moves the scale across that layout boundary exactly (0*x == 0,
    so this is bit-identical to a per-row multiply).
    """
    eye = (jax.lax.broadcasted_iota(jnp.int32, (n_rows, n_rows), 0)
           == jax.lax.broadcasted_iota(jnp.int32, (n_rows, n_rows), 1)
           ).astype(jnp.float32)
    return jnp.dot(eye * scales_row, mat, preferred_element_type=jnp.float32)


def clam_mb_kernel(h_ref, w1_ref, b1_ref, wab_ref, bab_ref, wc_ref, bc_ref,
                   a_raw_ref, m_ref,
                   m_run, l_run, acc_ref,
                   *, n_instances, tile_n, attn_dim, n_classes):
    i = pl.program_id(0)

    @pl.when(i == 0)
    def _init():
        m_run[...] = jnp.full_like(m_run, _NEG_BIG)
        l_run[...] = jnp.zeros_like(l_run)
        acc_ref[...] = jnp.zeros_like(acc_ref)

    # fc: Linear(E -> L) + ReLU  (Dropout(p=0.0) is identity); f32 accumulation.
    h1 = jnp.dot(h_ref[...], w1_ref[...],
                 preferred_element_type=jnp.float32) + b1_ref[...]
    h1 = jnp.maximum(h1, 0.0)                                        # [TN, L]

    # Gated attention: one fused [L, 2D] projection instead of two [L, D] ones.
    ab = jnp.dot(h1.astype(wab_ref.dtype), wab_ref[...],
                 preferred_element_type=jnp.float32) + bab_ref[...]  # [TN, 2D]
    a = jnp.tanh(ab[:, :attn_dim])
    b = jax.nn.sigmoid(ab[:, attn_dim:])
    gated = a * b                                                    # [TN, D]

    # Attention logits for this tile of instances.
    A = jnp.dot(gated, wc_ref[...],
                preferred_element_type=jnp.float32) + bc_ref[...]    # [TN, C]
    a_raw_ref[...] = A                       # raw (pre-softmax) attention

    # Mask padded rows of the last tile so they never enter the softmax.
    row = jax.lax.broadcasted_iota(jnp.int32, (tile_n, 1), 0) + i * tile_n
    A_m = jnp.where(row < n_instances, A, _NEG_BIG)

    # Online softmax over the instance axis, per class.
    m_tile = jnp.max(A_m, axis=0, keepdims=True)                     # [1, C]
    m_new = jnp.maximum(m_run[...], m_tile)
    alpha = jnp.exp(m_run[...] - m_new)                              # [1, C]
    p = jnp.exp(A_m - m_new)                                         # [TN, C]
    l_run[...] = alpha * l_run[...] + jnp.sum(p, axis=0, keepdims=True)
    # acc <- diag(alpha) @ acc + p^T @ h1      ([C, L], unnormalized M)
    acc_ref[...] = _scale_rows(alpha, acc_ref[...], n_classes) + jax.lax.dot_general(
        p, h1, (((0,), (0,)), ((), ())), preferred_element_type=jnp.float32)
    m_run[...] = m_new

    @pl.when(i == pl.num_programs(0) - 1)
    def _finalize():
        m_ref[...] = _scale_rows(1.0 / l_run[...], acc_ref[...], n_classes)


def clam_mb_forward(h, params, *, tile_n=512, compute_dtype=jnp.float32,
                    return_features=True):
    """CLAM_MB forward (instance_eval=False, attention_only=False)."""
    N, E = h.shape
    L = params["w1"].shape[1]
    D = params["wa"].shape[1]
    C = params["wc"].shape[1]

    TN = tile_n if N >= tile_n else max(8, _round_up(N, 8))
    n_pad = _round_up(N, TN)
    grid = (n_pad // TN,)

    h_pad = h if n_pad == N else jnp.pad(h, ((0, n_pad - N), (0, 0)))
    h_pad = h_pad.astype(compute_dtype)
    w1 = params["w1"].astype(compute_dtype)
    wab = jnp.concatenate([params["wa"], params["wb"]], axis=1).astype(compute_dtype)
    bab = jnp.concatenate([params["ba"], params["bb"]], axis=1).astype(jnp.float32)
    b1 = params["b1"].astype(jnp.float32)
    wc = params["wc"].astype(jnp.float32)
    bc = params["bc"].astype(jnp.float32)

    kernel = functools.partial(clam_mb_kernel, n_instances=N, tile_n=TN,
                               attn_dim=D, n_classes=C)

    a_raw_nc, M = pl.pallas_call(
        kernel,
        out_shape=(
            jax.ShapeDtypeStruct((n_pad, C), jnp.float32),   # pre-softmax A, [N_pad, C]
            jax.ShapeDtypeStruct((C, L), jnp.float32),       # bag features M
        ),
        grid_spec=pltpu.PrefetchScalarGridSpec(
            num_scalar_prefetch=0,
            grid=grid,
            in_specs=[
                pl.BlockSpec((TN, E), lambda i: (i, 0)),       # h tile (streamed)
                pl.BlockSpec((E, L), lambda i: (0, 0)),        # W1   (resident)
                pl.BlockSpec((1, L), lambda i: (0, 0)),        # b1
                pl.BlockSpec((L, 2 * D), lambda i: (0, 0)),    # [Wa | Wb]
                pl.BlockSpec((1, 2 * D), lambda i: (0, 0)),    # [ba | bb]
                pl.BlockSpec((D, C), lambda i: (0, 0)),        # Wc
                pl.BlockSpec((1, C), lambda i: (0, 0)),        # bc
            ],
            out_specs=(
                pl.BlockSpec((TN, C), lambda i: (i, 0)),
                pl.BlockSpec((C, L), lambda i: (0, 0)),
            ),
            scratch_shapes=[
                pltpu.VMEM((1, C), jnp.float32),   # running per-class max
                pltpu.VMEM((1, C), jnp.float32),   # running softmax denominator
                pltpu.VMEM((C, L), jnp.float32),   # unnormalized M accumulator
            ],
        ),
        compiler_params=pltpu.CompilerParams(
            dimension_semantics=("arbitrary",),
            vmem_limit_bytes=32 * 1024 * 1024,
        ),
    )(h_pad, w1, b1, wab, bab, wc, bc)

    A_raw = jnp.transpose(a_raw_nc[:N, :])            # [C, N], == torch.transpose(A,1,0)

    # Per-class bag classifiers + softmax/argmax: tiny ([C, L]); done in XLA.
    logits = (jnp.sum(M * params["wcls"], axis=1) + params["bcls"][:, 0])[None, :]
    Y_prob = jax.nn.softmax(logits, axis=1)
    Y_hat = jnp.argmax(logits, axis=1, keepdims=True)  # == torch.topk(logits, 1)[1]

    results_dict = {"features": M} if return_features else {}
    return logits, Y_prob, Y_hat, A_raw, results_dict


def reference_forward(h, p):
    h1 = jnp.maximum(h @ p["w1"] + p["b1"], 0.0)
    a = jnp.tanh(h1 @ p["wa"] + p["ba"])
    b = jax.nn.sigmoid(h1 @ p["wb"] + p["bb"])
    A = (a * b) @ p["wc"] + p["bc"]
    A_raw = A.T
    A_s = jax.nn.softmax(A_raw, axis=1)
    M = A_s @ h1
    logits = (jnp.sum(M * p["wcls"], axis=1) + p["bcls"][:, 0])[None, :]
    Y_prob = jax.nn.softmax(logits, axis=1)
    return logits, Y_prob, A_raw, M


def make_params(key, embed_dim, L, D, C):
    ks = jax.random.split(key, 10)
    s = 0.02
    return {
        "w1":   s * jax.random.normal(ks[0], (embed_dim, L), jnp.float32),
        "b1":   s * jax.random.normal(ks[1], (1, L), jnp.float32),
        "wa":   s * jax.random.normal(ks[2], (L, D), jnp.float32),
        "ba":   s * jax.random.normal(ks[3], (1, D), jnp.float32),
        "wb":   s * jax.random.normal(ks[4], (L, D), jnp.float32),
        "bb":   s * jax.random.normal(ks[5], (1, D), jnp.float32),
        "wc":   s * jax.random.normal(ks[6], (D, C), jnp.float32),
        "bc":   s * jax.random.normal(ks[7], (1, C), jnp.float32),
        "wcls": s * jax.random.normal(ks[8], (C, L), jnp.float32),
        "bcls": s * jax.random.normal(ks[9], (C, 1), jnp.float32),
    }


if __name__ == "__main__":
    EMBED, L, D, C = 1024, 512, 256, 2       # CLAM 'small'
    key = jax.random.PRNGKey(0)
    kh1, kh2, kp = jax.random.split(key, 3)
    params = make_params(kp, EMBED, L, D, C)

    # Case 1: small bag (single tile), strict f32 check.
    h_small = jax.random.normal(kh1, (16, EMBED), jnp.float32)
    logits, Y_prob, Y_hat, A_raw, res = clam_mb_forward(h_small, params)
    jax.block_until_ready((logits, Y_prob, Y_hat, A_raw, res["features"]))
    r_logits, r_prob, r_A, r_M = reference_forward(h_small, params)
    assert np.allclose(np.asarray(logits), np.asarray(r_logits), atol=2e-4)
    assert np.allclose(np.asarray(Y_prob), np.asarray(r_prob), atol=2e-4)
    assert np.allclose(np.asarray(A_raw), np.asarray(r_A), atol=2e-4)
    assert np.allclose(np.asarray(res["features"]), np.asarray(r_M), atol=2e-4)
    assert logits.shape == (1, C) and Y_hat.shape == (1, 1) and A_raw.shape == (C, 16)

    # Case 2: multi-tile ragged bag (N=600 -> 2 tiles of 512, last one masked).
    h_big = jax.random.normal(kh2, (600, EMBED), jnp.float32)
    logits, Y_prob, Y_hat, A_raw, res = clam_mb_forward(h_big, params)
    jax.block_until_ready((logits, Y_prob, Y_hat, A_raw, res["features"]))
    r_logits, r_prob, r_A, r_M = reference_forward(h_big, params)
    assert np.allclose(np.asarray(logits), np.asarray(r_logits), atol=2e-4)
    assert np.allclose(np.asarray(Y_prob), np.asarray(r_prob), atol=2e-4)
    assert np.allclose(np.asarray(A_raw), np.asarray(r_A), atol=2e-4)
    assert np.allclose(np.asarray(res["features"]), np.asarray(r_M), atol=2e-4)
    assert A_raw.shape == (C, 600)

    # Case 3: bf16 compute path for the big matmuls (looser tolerance).
    logits_bf, _, _, _, res_bf = clam_mb_forward(h_big, params,
                                                 compute_dtype=jnp.bfloat16)
    jax.block_until_ready((logits_bf, res_bf["features"]))
    assert np.all(np.isfinite(np.asarray(logits_bf)))
    assert np.allclose(np.asarray(logits_bf), np.asarray(r_logits), atol=1e-1)
    assert np.allclose(np.asarray(res_bf["features"]), np.asarray(r_M), atol=1e-1)

    print("KERNEL_OK")
</pallas_src>

<mosaic_0001>
module attributes {stable_mosaic.version = 11 : i64} {
  func.func @clam_mb_kernel(%arg0: i32, %arg1: memref<16x1024xf32, #tpu.memory_space<vmem>>, %arg2: memref<1024x512xf32, #tpu.memory_space<vmem>>, %arg3: memref<1x512xf32, #tpu.memory_space<vmem>>, %arg4: memref<512x512xf32, #tpu.memory_space<vmem>>, %arg5: memref<1x512xf32, #tpu.memory_space<vmem>>, %arg6: memref<256x2xf32, #tpu.memory_space<vmem>>, %arg7: memref<1x2xf32, #tpu.memory_space<vmem>>, %arg8: memref<16x2xf32, #tpu.memory_space<vmem>>, %arg9: memref<2x512xf32, #tpu.memory_space<vmem>>, %arg10: memref<1x2xf32, #tpu.memory_space<vmem>>, %arg11: memref<1x2xf32, #tpu.memory_space<vmem>>, %arg12: memref<2x512xf32, #tpu.memory_space<vmem>>) attributes {dimension_semantics = [#tpu.dimension_semantics<arbitrary>], iteration_bounds = array<i64: 1>, scalar_prefetch = 0 : i64, scratch_operands = 3 : i64, tpu.core_type = #tpu.core_type<tc>, window_params = [{transform_indices = @transform_0, window_bounds = array<i64: 16, 1024>}, {pipeline_mode = #tpu.pipeline_mode<synchronous>, transform_indices = @transform_1, window_bounds = array<i64: 1024, 512>}, {pipeline_mode = #tpu.pipeline_mode<synchronous>, transform_indices = @transform_2, window_bounds = array<i64: 1, 512>}, {pipeline_mode = #tpu.pipeline_mode<synchronous>, transform_indices = @transform_3, window_bounds = array<i64: 512, 512>}, {pipeline_mode = #tpu.pipeline_mode<synchronous>, transform_indices = @transform_4, window_bounds = array<i64: 1, 512>}, {pipeline_mode = #tpu.pipeline_mode<synchronous>, transform_indices = @transform_5, window_bounds = array<i64: 256, 2>}, {pipeline_mode = #tpu.pipeline_mode<synchronous>, transform_indices = @transform_6, window_bounds = array<i64: 1, 2>}, {transform_indices = @transform_7, window_bounds = array<i64: 16, 2>}, {pipeline_mode = #tpu.pipeline_mode<synchronous>, transform_indices = @transform_8, window_bounds = array<i64: 2, 512>}]} {
    %c0_i32 = arith.constant 0 : i32
    %0 = arith.cmpi eq, %arg0, %c0_i32 : i32
    %1 = arith.extui %0 : i1 to i32
    %c0_i32_0 = arith.constant 0 : i32
    %2 = arith.cmpi ne, %1, %c0_i32_0 : i32
    scf.if %2 {
      %cst_42 = arith.constant -1.000000e+30 : f32
      %73 = vector.broadcast %cst_42 : f32 to vector<1x2xf32>
      %c0_43 = arith.constant 0 : index
      %c0_44 = arith.constant 0 : index
      %74 = vector.load %arg10[%c0_43, %c0_44] : memref<1x2xf32, #tpu.memory_space<vmem>>, vector<1x2xf32>
      tpu.vector_store %arg10[%c0_43, %c0_44], %73 {strides = array<i32>} : memref<1x2xf32, #tpu.memory_space<vmem>>, vector<1x2xf32>,
      %cst_45 = arith.constant 0.000000e+00 : f32
      %75 = vector.broadcast %cst_45 : f32 to vector<1x2xf32>
      %c0_46 = arith.constant 0 : index
      %c0_47 = arith.constant 0 : index
      %76 = vector.load %arg11[%c0_46, %c0_47] : memref<1x2xf32, #tpu.memory_space<vmem>>, vector<1x2xf32>
      tpu.vector_store %arg11[%c0_46, %c0_47], %75 {strides = array<i32>} : memref<1x2xf32, #tpu.memory_space<vmem>>, vector<1x2xf32>,
      %cst_48 = arith.constant 0.000000e+00 : f32
      %77 = vector.broadcast %cst_48 : f32 to vector<2x512xf32>
      %c0_49 = arith.constant 0 : index
      %c0_50 = arith.constant 0 : index
      %78 = vector.load %arg12[%c0_49, %c0_50] : memref<2x512xf32, #tpu.memory_space<vmem>>, vector<2x512xf32>
      tpu.vector_store %arg12[%c0_49, %c0_50], %77 {strides = array<i32>} : memref<2x512xf32, #tpu.memory_space<vmem>>, vector<2x512xf32>,
    } else {
    }
    %c0 = arith.constant 0 : index
    %c0_1 = arith.constant 0 : index
    %3 = vector.load %arg1[%c0, %c0_1] : memref<16x1024xf32, #tpu.memory_space<vmem>>, vector<16x1024xf32>
    %c0_2 = arith.constant 0 : index
    %c0_3 = arith.constant 0 : index
    %4 = vector.load %arg2[%c0_2, %c0_3] : memref<1024x512xf32, #tpu.memory_space<vmem>>, vector<1024x512xf32>
    %cst = arith.constant dense<0.000000e+00> : vector<16x512xf32>
    %5 = tpu.matmul %3, %4, %cst {dimension_numbers = #tpu.dot_dimension_numbers<[1], [0], [0], [1], [0, 0, 1, 1], [], []>} : vector<16x1024xf32>, vector<1024x512xf32>, vector<16x512xf32> -> vector<16x512xf32>
    %c0_4 = arith.constant 0 : index
    %c0_5 = arith.constant 0 : index
    %6 = vector.load %arg3[%c0_4, %c0_5] : memref<1x512xf32, #tpu.memory_space<vmem>>, vector<1x512xf32>
    %7 = vector.broadcast %6 : vector<1x512xf32> to vector<16x512xf32>
    %8 = arith.addf %5, %7 : vector<16x512xf32>
    %cst_6 = arith.constant 0.000000e+00 : f32
    %9 = vector.broadcast %cst_6 : f32 to vector<16x512xf32>
    %10 = arith.maximumf %8, %9 : vector<16x512xf32>
    %c0_7 = arith.constant 0 : index
    %c0_8 = arith.constant 0 : index
    %11 = vector.load %arg4[%c0_7, %c0_8] : memref<512x512xf32, #tpu.memory_space<vmem>>, vector<512x512xf32>
    %cst_9 = arith.constant dense<0.000000e+00> : vector<16x512xf32>
    %12 = tpu.matmul %10, %11, %cst_9 {dimension_numbers = #tpu.dot_dimension_numbers<[1], [0], [0], [1], [0, 0, 1, 1], [], []>} : vector<16x512xf32>, vector<512x512xf32>, vector<16x512xf32> -> vector<16x512xf32>
    %c0_10 = arith.constant 0 : index
    %c0_11 = arith.constant 0 : index
    %13 = vector.load %arg5[%c0_10, %c0_11] : memref<1x512xf32, #tpu.memory_space<vmem>>, vector<1x512xf32>
    %14 = vector.broadcast %13 : vector<1x512xf32> to vector<16x512xf32>
    %15 = arith.addf %12, %14 : vector<16x512xf32>
    %16 = vector.extract_strided_slice %15 {offsets = [0, 0], sizes = [16, 256], strides = [1, 1]} : vector<16x512xf32> to vector<16x256xf32>
    %17 = math.tanh %16 : vector<16x256xf32>
    %18 = vector.extract_strided_slice %15 {offsets = [0, 256], sizes = [16, 256], strides = [1, 1]} : vector<16x512xf32> to vector<16x256xf32>
    %19 = arith.negf %18 : vector<16x256xf32>
    %20 = math.exp %19 : vector<16x256xf32>
    %cst_12 = arith.constant 1.000000e+00 : f32
    %21 = vector.broadcast %cst_12 : f32 to vector<16x256xf32>
    %22 = arith.addf %21, %20 : vector<16x256xf32>
    %23 = arith.divf %21, %22 : vector<16x256xf32>
    %24 = arith.mulf %17, %23 : vector<16x256xf32>
    %c0_13 = arith.constant 0 : index
    %c0_14 = arith.constant 0 : index
    %25 = vector.load %arg6[%c0_13, %c0_14] : memref<256x2xf32, #tpu.memory_space<vmem>>, vector<256x2xf32>
    %cst_15 = arith.constant dense<0.000000e+00> : vector<16x2xf32>
    %26 = tpu.matmul %24, %25, %cst_15 {dimension_numbers = #tpu.dot_dimension_numbers<[1], [0], [0], [1], [0, 0, 1, 1], [], []>} : vector<16x256xf32>, vector<256x2xf32>, vector<16x2xf32> -> vector<16x2xf32>
    %c0_16 = arith.constant 0 : index
    %c0_17 = arith.constant 0 : index
    %27 = vector.load %arg7[%c0_16, %c0_17] : memref<1x2xf32, #tpu.memory_space<vmem>>, vector<1x2xf32>
    %28 = vector.broadcast %27 : vector<1x2xf32> to vector<16x2xf32>
    %29 = arith.addf %26, %28 : vector<16x2xf32>
    %c0_18 = arith.constant 0 : index
    %c0_19 = arith.constant 0 : index
    %30 = vector.load %arg8[%c0_18, %c0_19] : memref<16x2xf32, #tpu.memory_space<vmem>>, vector<16x2xf32>
    tpu.vector_store %arg8[%c0_18, %c0_19], %29 {strides = array<i32>} : memref<16x2xf32, #tpu.memory_space<vmem>>, vector<16x2xf32>,
    %31 = tpu.iota {dimensions = array<i32: 0>} : vector<16x1xi32>
    %c16_i32 = arith.constant 16 : i32
    %32 = arith.muli %arg0, %c16_i32 : i32
    %33 = vector.broadcast %32 : i32 to vector<16x1xi32>
    %34 = arith.addi %31, %33 : vector<16x1xi32>
    %c16_i32_20 = arith.constant 16 : i32
    %35 = vector.broadcast %c16_i32_20 : i32 to vector<16x1xi32>
    %36 = arith.cmpi slt, %34, %35 : vector<16x1xi32>
    %cst_21 = arith.constant -1.000000e+30 : f32
    %37 = vector.shape_cast %36 : vector<16x1xi1> to vector<16x1xi1>
    %38 = vector.broadcast %37 : vector<16x1xi1> to vector<16x2xi1>
    %39 = vector.broadcast %cst_21 : f32 to vector<16x2xf32>
    %40 = arith.select %38, %29, %39 : vector<16x2xi1>, vector<16x2xf32>
    %cst_22 = arith.constant dense<0xFF800000> : vector<2xf32>
    %41 = vector.multi_reduction <maximumf>, %40, %cst_22 [0] : vector<16x2xf32> to vector<2xf32>
    %42 = vector.shape_cast %41 : vector<2xf32> to vector<1x2xf32>
    %c0_23 = arith.constant 0 : index
    %c0_24 = arith.constant 0 : index
    %43 = vector.load %arg10[%c0_23, %c0_24] : memref<1x2xf32, #tpu.memory_space<vmem>>, vector<1x2xf32>
    %44 = arith.maximumf %43, %42 : vector<1x2xf32>
    %c0_25 = arith.constant 0 : index
    %c0_26 = arith.constant 0 : index
    %45 = vector.load %arg10[%c0_25, %c0_26] : memref<1x2xf32, #tpu.memory_space<vmem>>, vector<1x2xf32>
    %46 = arith.subf %45, %44 : vector<1x2xf32>
    %47 = math.exp %46 : vector<1x2xf32>
    %48 = vector.broadcast %44 : vector<1x2xf32> to vector<16x2xf32>
    %49 = arith.subf %40, %48 : vector<16x2xf32>
    %50 = math.exp %49 : vector<16x2xf32>
    %c0_27 = arith.constant 0 : index
    %c0_28 = arith.constant 0 : index
    %51 = vector.load %arg11[%c0_27, %c0_28] : memref<1x2xf32, #tpu.memory_space<vmem>>, vector<1x2xf32>
    %52 = arith.mulf %47, %51 : vector<1x2xf32>
    %cst_29 = arith.constant dense<0.000000e+00> : vector<2xf32>
    %53 = vector.multi_reduction <add>, %50, %cst_29 [0] : vector<16x2xf32> to vector<2xf32>
    %54 = vector.shape_cast %53 : vector<2xf32> to vector<1x2xf32>
    %55 = arith.addf %52, %54 : vector<1x2xf32>
    %c0_30 = arith.constant 0 : index
    %c0_31 = arith.constant 0 : index
    %56 = vector.load %arg11[%c0_30, %c0_31] : memref<1x2xf32, #tpu.memory_space<vmem>>, vector<1x2xf32>
    tpu.vector_store %arg11[%c0_30, %c0_31], %55 {strides = array<i32>} : memref<1x2xf32, #tpu.memory_space<vmem>>, vector<1x2xf32>,
    %c0_32 = arith.constant 0 : index
    %c0_33 = arith.constant 0 : index
    %57 = vector.load %arg12[%c0_32, %c0_33] : memref<2x512xf32, #tpu.memory_space<vmem>>, vector<2x512xf32>
    %58 = tpu.iota {dimensions = array<i32: 0>} : vector<2x2xi32>
    %59 = tpu.iota {dimensions = array<i32: 1>} : vector<2x2xi32>
    %60 = arith.cmpi eq, %58, %59 : vector<2x2xi32>
    %61 = arith.extui %60 : vector<2x2xi1> to vector<2x2xi32>
    %62 = arith.sitofp %61 : vector<2x2xi32> to vector<2x2xf32>
    %63 = vector.broadcast %47 : vector<1x2xf32> to vector<2x2xf32>
    %64 = arith.mulf %62, %63 : vector<2x2xf32>
    %cst_34 = arith.constant dense<0.000000e+00> : vector<2x512xf32>
    %65 = tpu.matmul %64, %57, %cst_34 {dimension_numbers = #tpu.dot_dimension_numbers<[1], [0], [0], [1], [0, 0, 1, 1], [], []>} : vector<2x2xf32>, vector<2x512xf32>, vector<2x512xf32> -> vector<2x512xf32>
    %cst_35 = arith.constant dense<0.000000e+00> : vector<2x512xf32>
    %66 = tpu.matmul %50, %10, %cst_35 {dimension_numbers = #tpu.dot_dimension_numbers<[0], [0], [1], [1], [0, 1, 1, 1], [], []>} : vector<16x2xf32>, vector<16x512xf32>, vector<2x512xf32> -> vector<2x512xf32>
    %67 = arith.addf %65, %66 : vector<2x512xf32>
    %c0_36 = arith.constant 0 : index
    %c0_37 = arith.constant 0 : index
    %68 = vector.load %arg12[%c0_36, %c0_37] : memref<2x512xf32, #tpu.memory_space<vmem>>, vector<2x512xf32>
    tpu.vector_store %arg12[%c0_36, %c0_37], %67 {strides = array<i32>} : memref<2x512xf32, #tpu.memory_space<vmem>>, vector<2x512xf32>,
    %c0_38 = arith.constant 0 : index
    %c0_39 = arith.constant 0 : index
    %69 = vector.load %arg10[%c0_38, %c0_39] : memref<1x2xf32, #tpu.memory_space<vmem>>, vector<1x2xf32>
    tpu.vector_store %arg10[%c0_38, %c0_39], %44 {strides = array<i32>} : memref<1x2xf32, #tpu.memory_space<vmem>>, vector<1x2xf32>,
    %c0_i32_40 = arith.constant 0 : i32
    %70 = arith.cmpi eq, %arg0, %c0_i32_40 : i32
    %71 = arith.extui %70 : i1 to i32
    %c0_i32_41 = arith.constant 0 : i32
    %72 = arith.cmpi ne, %71, %c0_i32_41 : i32
    scf.if %72 {
      %c0_42 = arith.constant 0 : index
      %c0_43 = arith.constant 0 : index
      %73 = vector.load %arg11[%c0_42, %c0_43] : memref<1x2xf32, #tpu.memory_space<vmem>>, vector<1x2xf32>
      %cst_44 = arith.constant 1.000000e+00 : f32
      %74 = vector.broadcast %cst_44 : f32 to vector<1x2xf32>
      %75 = arith.divf %74, %73 : vector<1x2xf32>
      %c0_45 = arith.constant 0 : index
      %c0_46 = arith.constant 0 : index
      %76 = vector.load %arg12[%c0_45, %c0_46] : memref<2x512xf32, #tpu.memory_space<vmem>>, vector<2x512xf32>
      %77 = tpu.iota {dimensions = array<i32: 0>} : vector<2x2xi32>
      %78 = tpu.iota {dimensions = array<i32: 1>} : vector<2x2xi32>
      %79 = arith.cmpi eq, %77, %78 : vector<2x2xi32>
      %80 = arith.extui %79 : vector<2x2xi1> to vector<2x2xi32>
      %81 = arith.sitofp %80 : vector<2x2xi32> to vector<2x2xf32>
      %82 = vector.broadcast %75 : vector<1x2xf32> to vector<2x2xf32>
      %83 = arith.mulf %81, %82 : vector<2x2xf32>
      %cst_47 = arith.constant dense<0.000000e+00> : vector<2x512xf32>
      %84 = tpu.matmul %83, %76, %cst_47 {dimension_numbers = #tpu.dot_dimension_numbers<[1], [0], [0], [1], [0, 0, 1, 1], [], []>} : vector<2x2xf32>, vector<2x512xf32>, vector<2x512xf32> -> vector<2x512xf32>
      %c0_48 = arith.constant 0 : index
      %c0_49 = arith.constant 0 : index
      %85 = vector.load %arg9[%c0_48, %c0_49] : memref<2x512xf32, #tpu.memory_space<vmem>>, vector<2x512xf32>
      tpu.vector_store %arg9[%c0_48, %c0_49], %84 {strides = array<i32>} : memref<2x512xf32, #tpu.memory_space<vmem>>, vector<2x512xf32>,
    } else {
    }
    return
  }
  func.func @transform_0(%arg0: i32) -> (i32, i32) {
    %c0_i32 = arith.constant 0 : i32
    %c0_i32_0 = arith.constant 0 : i32
    return %arg0, %c0_i32 : i32, i32
  }
  func.func @transform_1(%arg0: i32) -> (i32, i32) {
    %c0_i32 = arith.constant 0 : i32
    %c0_i32_0 = arith.constant 0 : i32
    %c0_i32_1 = arith.constant 0 : i32
    return %c0_i32, %c0_i32_0 : i32, i32
  }
  func.func @transform_2(%arg0: i32) -> (i32, i32) {
    %c0_i32 = arith.constant 0 : i32
    %c0_i32_0 = arith.constant 0 : i32
    %c0_i32_1 = arith.constant 0 : i32
    return %c0_i32, %c0_i32_0 : i32, i32
  }
  func.func @transform_3(%arg0: i32) -> (i32, i32) {
    %c0_i32 = arith.constant 0 : i32
    %c0_i32_0 = arith.constant 0 : i32
    %c0_i32_1 = arith.constant 0 : i32
    return %c0_i32, %c0_i32_0 : i32, i32
  }
  func.func @transform_4(%arg0: i32) -> (i32, i32) {
    %c0_i32 = arith.constant 0 : i32
    %c0_i32_0 = arith.constant 0 : i32
    %c0_i32_1 = arith.constant 0 : i32
    return %c0_i32, %c0_i32_0 : i32, i32
  }
  func.func @transform_5(%arg0: i32) -> (i32, i32) {
    %c0_i32 = arith.constant 0 : i32
    %c0_i32_0 = arith.constant 0 : i32
    %c0_i32_1 = arith.constant 0 : i32
    return %c0_i32, %c0_i32_0 : i32, i32
  }
  func.func @transform_6(%arg0: i32) -> (i32, i32) {
    %c0_i32 = arith.constant 0 : i32
    %c0_i32_0 = arith.constant 0 : i32
    %c0_i32_1 = arith.constant 0 : i32
    return %c0_i32, %c0_i32_0 : i32, i32
  }
  func.func @transform_7(%arg0: i32) -> (i32, i32) {
    %c0_i32 = arith.constant 0 : i32
    %c0_i32_0 = arith.constant 0 : i32
    return %arg0, %c0_i32 : i32, i32
  }
  func.func @transform_8(%arg0: i32) -> (i32, i32) {
    %c0_i32 = arith.constant 0 : i32
    %c0_i32_0 = arith.constant 0 : i32
    %c0_i32_1 = arith.constant 0 : i32
    return %c0_i32, %c0_i32_0 : i32, i32
  }
}

</mosaic_0001>

<bundles_post_ra>
// kernel: tpu_custom_call.1
= control target key start
LH: loop header
LB: loop body
LE: loop exit
PB: predicated region body
PF: predicated region fallthrough
CT: control target
= control target key end

     0   :  { %14 = vsyncpa [#allocation6], 0  ;;  %s3265_s0 = inlined_call_operand.hbm [shape: f32[16,1024], index: 0, kind: input, shape index: {}]   ;;  %s3266_s1 = inlined_call_operand.hbm [shape: f32[1024,512], index: 1, kind: input, shape index: {}]   ;;  %s3267_s2 = inlined_call_operand.hbm [shape: f32[1,512], index: 2, kind: input, shape index: {}]   ;;  %s3268_s3 = inlined_call_operand.hbm [shape: f32[512,512], index: 3, kind: input, shape index: {}]   ;;  %s3269_s4 = inlined_call_operand.hbm [shape: f32[1,512], index: 4, kind: input, shape index: {}]   ;;  %s3270_s5 = inlined_call_operand.vmem [shape: f32[256,2], index: 5, kind: input, shape index: {}]   ;;  %s3271_s6 = inlined_call_operand.hbm [shape: f32[1,2], index: 6, kind: input, shape index: {}]   ;;  %s3272_s7 = inlined_call_operand.vmem [shape: f32[16,2], index: 7, kind: output, shape index: {0}]   ;;  %s3273_s8 = inlined_call_operand.hbm [shape: f32[2,512], index: 8, kind: output, shape index: {1}]  }
   0x1   :  { %15 = vsyncpa [#allocation9], 0 }
   0x2   :  { %16 = vsyncpa [#allocation12], 0 }
   0x3   :  { %17 = vsyncpa [#allocation15], 0 }
   0x4   :  { %18 = vsyncpa [#allocation7], 0  ;;  %s2965_s27 = smov [#allocation8]  }
   0x5   :  { %s36_s28 = sshll.u32 %s2965_s27, 4  ;;  %s37_s28 = int_to_ptr.vmem [resolvable:$true] %s36_s28 }
   0x6   :  { %s2823_s29 = scalar_lea.vmem %s37_s28, 65536  ;;  %p2828_p1 = scmp.lt.s32.totalorder %s37_s28, %s37_s28 }
   0x7   :  { %p2824_p0 = scmp.ne.s32.totalorder %s37_s28, %s2823_s29  ;;  %p2829_p2 = scmp.lt.s32.totalorder %s2823_s29, %s2823_s29 }
   0x9   :  { %p2830_p3 = por %p2829_p2, %p2828_p1 }
   0xb   :  { %p2831_p4 = pnand %p2830_p3, %p2824_p0 }
   0xd   :  { %2834 = shalt.err (!%p2831_p4)
}
   0xe   :  { %s2966_s30 = smov 512   ;;  %s2967_s9 = smov 32  }
   0xf   :  { %42 = dma.hbm_to_vmem [thread:$0]  %s3266_s1, 65536, %s37_s28, [#allocation9], %s2966_s30, %s2966_s30, %s2967_s9  }
  0x10   :  { %s2968_s12 = smov [#allocation11]   ;;  %s2969_s14 = smov [#allocation5]  }
  0x11   :  { %s58_s13 = sshll.u32 %s2968_s12, 4  ;;  %s24_s15 = sshll.u32 %s2969_s14, 4  ;;  %s59_s13 = int_to_ptr.vmem [resolvable:$true] %s58_s13  ;;  %s25_s15 = int_to_ptr.vmem [resolvable:$true] %s24_s15 }
  0x12   :  { %s2843_s16 = scalar_lea.vmem %s59_s13, 32768  ;;  %p2848_p6 = scmp.lt.s32.totalorder %s59_s13, %s59_s13 }
  0x13   :  { %p2844_p5 = scmp.ne.s32.totalorder %s59_s13, %s2843_s16  ;;  %p2849_p7 = scmp.lt.s32.totalorder %s2843_s16, %s2843_s16 }
  0x15   :  { %p2850_p8 = por %p2849_p7, %p2848_p6 }
  0x17   :  { %p2851_p9 = pnand %p2850_p8, %p2844_p5 }
  0x19   :  { %2854 = shalt.err (!%p2851_p9)
}
  0x1a   :  { %64 = dma.hbm_to_vmem [thread:$0]  %s3268_s3, 32768, %s59_s13, [#allocation12], %s2966_s30, %s2966_s30, %s2967_s9  }
  0x1b   :  { %s2863_s19 = scalar_lea.vmem %s25_s15, 2048  ;;  %p2868_p11 = scmp.lt.s32.totalorder %s25_s15, %s25_s15 }
  0x1c   :  { %p2864_p10 = scmp.ne.s32.totalorder %s25_s15, %s2863_s19  ;;  %p2869_p12 = scmp.lt.s32.totalorder %s2863_s19, %s2863_s19 }
  0x1e   :  { %p2870_p13 = por %p2869_p12, %p2868_p11 }
  0x20   :  { %p2871_p0 = pnand %p2870_p13, %p2864_p10 }
  0x22   :  { %2874 = shalt.err (!%p2871_p0)
}
  0x23   :  { %s2970_s1 = smov 1024   ;;  %s2971_s20 = smov 64  }
  0x24   :  { %30 = dma.hbm_to_vmem [thread:$0]  %s3265_s0, 2048, %s25_s15, [#allocation6], %s2970_s1, %s2970_s1, %s2971_s20  }
  0x25   :  { %s2972_s23 = smov [#allocation10]   ;;  %s2973_s25 = smov [#allocation13]  }
  0x26   :  { %s49_s24 = sshll.u32 %s2972_s23, 4  ;;  %s71_s26 = sshll.u32 %s2973_s25, 4  ;;  %s50_s24 = int_to_ptr.vmem [resolvable:$true] %s49_s24  ;;  %s72_s26 = int_to_ptr.vmem [resolvable:$true] %s71_s26 }
  0x27   :  { %s2883_s3 = scalar_lea.vmem %s50_s24, 64  ;;  %p2888_p2 = scmp.lt.s32.totalorder %s50_s24, %s50_s24 }
  0x28   :  { %p2884_p1 = scmp.ne.s32.totalorder %s50_s24, %s2883_s3  ;;  %p2889_p3 = scmp.lt.s32.totalorder %s2883_s3, %s2883_s3 }
  0x2a   :  { %p2890_p4 = por %p2889_p3, %p2888_p2 }
  0x2c   :  { %p2891_p5 = pnand %p2890_p4, %p2884_p1 }
  0x2e   :  { %2894 = shalt.err (!%p2891_p5)
}
  0x2f   :  { %52 = dma.hbm_to_vmem [thread:$0]  %s3267_s2, 64, %s50_s24, [#allocation9]  }
  0x30   :  { %s2903_s29 = scalar_lea.vmem %s72_s26, 64  ;;  %p2908_p7 = scmp.lt.s32.totalorder %s72_s26, %s72_s26 }
  0x31   :  { %p2904_p6 = scmp.ne.s32.totalorder %s72_s26, %s2903_s29  ;;  %p2909_p8 = scmp.lt.s32.totalorder %s2903_s29, %s2903_s29 }
  0x33   :  { %p2910_p9 = por %p2909_p8, %p2908_p7 }
  0x35   :  { %p2911_p10 = pnand %p2910_p9, %p2904_p6 }
  0x37   :  { %2914 = shalt.err (!%p2911_p10)
}
  0x38   :  { %74 = dma.hbm_to_vmem [thread:$0]  %s3269_s4, 64, %s72_s26, [#allocation12]  }
  0x39   :  { %s2974_s9 = smov [#allocation14]  }
  0x3a   :  { %s83_s10 = sshll.u32 %s2974_s9, 4  ;;  %s84_s10 = int_to_ptr.vmem [resolvable:$true] %s83_s10 }
  0x3b   :  { %s2923_s11 = scalar_lea.vmem %s84_s10, 16  ;;  %s2927_s12 = scalar_lea.vmem %s84_s10, 32 }
  0x3c   :  { %p2924_p11 = scmp.ne.s32.totalorder %s84_s10, %s2923_s11  ;;  %p2928_p12 = scmp.lt.s32.totalorder %s84_s10, %s84_s10 }
  0x3d   :  { %p2929_p13 = scmp.lt.s32.totalorder %s2927_s12, %s2923_s11 }
  0x3f   :  { %p2930_p0 = por %p2929_p13, %p2928_p12 }
  0x41   :  { %p2931_p1 = pnand %p2930_p0, %p2924_p11 }
  0x43   :  { %2934 = shalt.err (!%p2931_p1)
}
  0x44   :  { %86 = dma.hbm_to_vmem [thread:$0]  %s3271_s6, 16, %s84_s10, [#allocation15]  }
  0x45   :  { %2955 = dma.done.wait [#allocation6], 2048  }
  0x46   :  { %2956 = vsyncadd [#allocation6], 4294965248 }
  0x47   :  { %2957 = dma.done.wait [#allocation9], 65600  }
  0x48   :  { %2958 = vsyncadd [#allocation9], 4294901696 }
  0x49   :  { %2959 = dma.done.wait [#allocation12], 32832  }
  0x4a   :  { %2960 = vsyncadd [#allocation12], 4294934464 }
  0x4b   :  { %2961 = dma.done.wait [#allocation15], 16  }
  0x4c   :  { %2962 = vsyncadd [#allocation15], 4294967280  ;;  %v190_v0 = vld [vmem:[#allocation8 + $0x1e8] sm:$0xff]  ;;  %v189_v2 = vld [vmem:[#allocation8 + $0x1e0] sm:$0xff]  ;;  %vm109_vm0 = vcmask 8192   ;;  %vm2019_vm1 = vcmask 15360  }
  0x4d   :  { %v318_v1 = vld [vmem:[#allocation8 + $0x5e8] sm:$0xff]  ;;  %663 = vmatprep.subr.mxu0 %v190_v0  ;;  %v317_v3 = vld [vmem:[#allocation8 + $0x5e0] sm:$0xff]  ;;  %vm2122_vm2 = vcmask 130048   ;;  %vm2289_vm4 = vcmask 1041408  }
  0x4e   :  { %740 = vmatprep.subr.mxu1 %v318_v1  ;;  %v186_v4 = vld [vmem:[#allocation8 + $0x1c8] sm:$0xff]  ;;  %664 = vmatpush1.msra.mxu0 %v189_v2  ;;  %v185_v6 = vld [vmem:[#allocation8 + $0x1c0] sm:$0xff] }
  0x4f   :  { %v314_v5 = vld [vmem:[#allocation8 + $0x5c8] sm:$0xff]  ;;  %741 = vmatpush1.msra.mxu1 %v317_v3  ;;  %v313_v7 = vld [vmem:[#allocation8 + $0x5c0] sm:$0xff]  ;;  %665 = vmatprep.subr.mxu0 %v186_v4 }
  0x50   :  { %v182_v8 = vld [vmem:[#allocation8 + $0x1a8] sm:$0xff]  ;;  %742 = vmatprep.subr.mxu1 %v314_v5  ;;  %v181_v10 = vld [vmem:[#allocation8 + $0x1a0] sm:$0xff]  ;;  %666 = vmatpush1.msra.mxu0 %v185_v6 }
  0x51   :  { %v310_v9 = vld [vmem:[#allocation8 + $0x5a8] sm:$0xff]  ;;  %v309_v11 = vld [vmem:[#allocation8 + $0x5a0] sm:$0xff]  ;;  %743 = vmatpush1.msra.mxu1 %v313_v7  ;;  %667 = vmatprep.subr.mxu0 %v182_v8 }
  0x52   :  { %v178_v12 = vld [vmem:[#allocation8 + $0x188] sm:$0xff]  ;;  %744 = vmatprep.subr.mxu1 %v310_v9  ;;  %v177_v14 = vld [vmem:[#allocation8 + $0x180] sm:$0xff]  ;;  %668 = vmatpush1.msra.mxu0 %v181_v10 }
  0x53   :  { %v306_v13 = vld [vmem:[#allocation8 + $0x588] sm:$0xff]  ;;  %v305_v15 = vld [vmem:[#allocation8 + $0x580] sm:$0xff]  ;;  %745 = vmatpush1.msra.mxu1 %v309_v11  ;;  %669 = vmatprep.subr.mxu0 %v178_v12 }
  0x54   :  { %v174_v16 = vld [vmem:[#allocation8 + $0x168] sm:$0xff]  ;;  %746 = vmatprep.subr.mxu1 %v306_v13  ;;  %v173_v18 = vld [vmem:[#allocation8 + $0x160] sm:$0xff]  ;;  %670 = vmatpush1.msra.mxu0 %v177_v14 }
  0x55   :  { %v302_v17 = vld [vmem:[#allocation8 + $0x568] sm:$0xff]  ;;  %v301_v19 = vld [vmem:[#allocation8 + $0x560] sm:$0xff]  ;;  %747 = vmatpush1.msra.mxu1 %v305_v15  ;;  %671 = vmatprep.subr.mxu0 %v174_v16 }
  0x56   :  { %v170_v20 = vld [vmem:[#allocation8 + $0x148] sm:$0xff]  ;;  %748 = vmatprep.subr.mxu1 %v302_v17  ;;  %v169_v22 = vld [vmem:[#allocation8 + $0x140] sm:$0xff]  ;;  %672 = vmatpush1.msra.mxu0 %v173_v18 }
  0x57   :  { %v298_v21 = vld [vmem:[#allocation8 + $0x548] sm:$0xff]  ;;  %v297_v23 = vld [vmem:[#allocation8 + $0x540] sm:$0xff]  ;;  %749 = vmatpush1.msra.mxu1 %v301_v19  ;;  %673 = vmatprep.subr.mxu0 %v170_v20 }
  0x58   :  { %v166_v24 = vld [vmem:[#allocation8 + $0x128] sm:$0xff]  ;;  %750 = vmatprep.subr.mxu1 %v298_v21  ;;  %v165_v26 = vld [vmem:[#allocation8 + $0x120] sm:$0xff]  ;;  %674 = vmatpush1.msra.mxu0 %v169_v22 }
  0x59   :  { %v294_v25 = vld [vmem:[#allocation8 + $0x528] sm:$0xff]  ;;  %v293_v27 = vld [vmem:[#allocation8 + $0x520] sm:$0xff]  ;;  %751 = vmatpush1.msra.mxu1 %v297_v23  ;;  %675 = vmatprep.subr.mxu0 %v166_v24 }
  0x5a   :  { %v162_v28 = vld [vmem:[#allocation8 + $0x108] sm:$0xff]  ;;  %752 = vmatprep.subr.mxu1 %v294_v25  ;;  %v161_v30 = vld [vmem:[#allocation8 + $0x100] sm:$0xff]  ;;  %676 = vmatpush1.msra.mxu0 %v165_v26 }
  0x5b   :  { %v290_v29 = vld [vmem:[#allocation8 + $0x508] sm:$0xff]  ;;  %v289_v31 = vld [vmem:[#allocation8 + $0x500] sm:$0xff]  ;;  %753 = vmatpush1.msra.mxu1 %v293_v27  ;;  %677 = vmatprep.subr.mxu0 %v162_v28 }
  0x5c   :  { %v158_v32 = vld [vmem:[#allocation8 + $0xe8] sm:$0xff]  ;;  %754 = vmatprep.subr.mxu1 %v290_v29  ;;  %v157_v34 = vld [vmem:[#allocation8 + $0xe0] sm:$0xff]  ;;  %678 = vmatpush1.msra.mxu0 %v161_v30 }
  0x5d   :  { %v286_v33 = vld [vmem:[#allocation8 + $0x4e8] sm:$0xff]  ;;  %v285_v35 = vld [vmem:[#allocation8 + $0x4e0] sm:$0xff]  ;;  %755 = vmatpush1.msra.mxu1 %v289_v31  ;;  %679 = vmatprep.subr.mxu0 %v158_v32 }
  0x5e   :  { %v154_v36 = vld [vmem:[#allocation8 + $0xc8] sm:$0xff]  ;;  %756 = vmatprep.subr.mxu1 %v286_v33  ;;  %v153_v38 = vld [vmem:[#allocation8 + $0xc0] sm:$0xff]  ;;  %680 = vmatpush1.msra.mxu0 %v157_v34 }
  0x5f   :  { %v282_v37 = vld [vmem:[#allocation8 + $0x4c8] sm:$0xff]  ;;  %v281_v39 = vld [vmem:[#allocation8 + $0x4c0] sm:$0xff]  ;;  %757 = vmatpush1.msra.mxu1 %v285_v35  ;;  %681 = vmatprep.subr.mxu0 %v154_v36 }
  0x60   :  { %v150_v40 = vld [vmem:[#allocation8 + $0xa8] sm:$0xff]  ;;  %758 = vmatprep.subr.mxu1 %v282_v37  ;;  %v149_v42 = vld [vmem:[#allocation8 + $0xa0] sm:$0xff]  ;;  %682 = vmatpush1.msra.mxu0 %v153_v38 }
  0x61   :  { %v278_v41 = vld [vmem:[#allocation8 + $0x4a8] sm:$0xff]  ;;  %v277_v43 = vld [vmem:[#allocation8 + $0x4a0] sm:$0xff]  ;;  %759 = vmatpush1.msra.mxu1 %v281_v39  ;;  %683 = vmatprep.subr.mxu0 %v150_v40 }
  0x62   :  { %v146_v44 = vld [vmem:[#allocation8 + $0x88] sm:$0xff]  ;;  %760 = vmatprep.subr.mxu1 %v278_v41  ;;  %v145_v46 = vld [vmem:[#allocation8 + $0x80] sm:$0xff]  ;;  %684 = vmatpush1.msra.mxu0 %v149_v42 }
  0x63   :  { %v274_v45 = vld [vmem:[#allocation8 + $0x488] sm:$0xff]  ;;  %v273_v47 = vld [vmem:[#allocation8 + $0x480] sm:$0xff]  ;;  %761 = vmatpush1.msra.mxu1 %v277_v43  ;;  %685 = vmatprep.subr.mxu0 %v146_v44 }
  0x64   :  { %v142_v48 = vld [vmem:[#allocation8 + $0x68] sm:$0xff]  ;;  %762 = vmatprep.subr.mxu1 %v274_v45  ;;  %v141_v50 = vld [vmem:[#allocation8 + $0x60] sm:$0xff]  ;;  %686 = vmatpush1.msra.mxu0 %v145_v46 }
  0x65   :  { %v270_v49 = vld [vmem:[#allocation8 + $0x468] sm:$0xff]  ;;  %v269_v51 = vld [vmem:[#allocation8 + $0x460] sm:$0xff]  ;;  %763 = vmatpush1.msra.mxu1 %v273_v47  ;;  %687 = vmatprep.subr.mxu0 %v142_v48 }
  0x66   :  { %v138_v52 = vld [vmem:[#allocation8 + $0x48] sm:$0xff]  ;;  %764 = vmatprep.subr.mxu1 %v270_v49  ;;  %v137_v54 = vld [vmem:[#allocation8 + $0x40] sm:$0xff]  ;;  %688 = vmatpush1.msra.mxu0 %v141_v50 }
  0x67   :  { %v266_v53 = vld [vmem:[#allocation8 + $0x448] sm:$0xff]  ;;  %v265_v55 = vld [vmem:[#allocation8 + $0x440] sm:$0xff]  ;;  %765 = vmatpush1.msra.mxu1 %v269_v51  ;;  %689 = vmatprep.subr.mxu0 %v138_v52 }
  0x68   :  { %v134_v56 = vld [vmem:[#allocation8 + $0x28] sm:$0xff]  ;;  %766 = vmatprep.subr.mxu1 %v266_v53  ;;  %v133_v58 = vld [vmem:[#allocation8 + $0x20] sm:$0xff]  ;;  %690 = vmatpush1.msra.mxu0 %v137_v54 }
  0x69   :  { %v262_v57 = vld [vmem:[#allocation8 + $0x428] sm:$0xff]  ;;  %v261_v59 = vld [vmem:[#allocation8 + $0x420] sm:$0xff]  ;;  %767 = vmatpush1.msra.mxu1 %v265_v55  ;;  %691 = vmatprep.subr.mxu0 %v134_v56 }
  0x6a   :  { %v130_v60 = vld [vmem:[#allocation8 + $0x8] sm:$0xff]  ;;  %768 = vmatprep.subr.mxu1 %v262_v57  ;;  %v129_v62 = vld [vmem:[#allocation8] sm:$0xff]  ;;  %692 = vmatpush1.msra.mxu0 %v133_v58 }
  0x6b   :  { %v258_v61 = vld [vmem:[#allocation8 + $0x408] sm:$0xff]  ;;  %v257_v63 = vld [vmem:[#allocation8 + $0x400] sm:$0xff]  ;;  %769 = vmatpush1.msra.mxu1 %v261_v59  ;;  %693 = vmatprep.subr.mxu0 %v130_v60 }
  0x6c   :  { %v254_v0 = vld [vmem:[#allocation8 + $0x3e8] sm:$0xff]  ;;  %770 = vmatprep.subr.mxu1 %v258_v61  ;;  %v253_v2 = vld [vmem:[#allocation8 + $0x3e0] sm:$0xff]  ;;  %694 = vmatpush1.msra.mxu0 %v129_v62 }
  0x6d   :  { %v382_v1 = vld [vmem:[#allocation8 + $0x7e8] sm:$0xff]  ;;  %v381_v3 = vld [vmem:[#allocation8 + $0x7e0] sm:$0xff]  ;;  %771 = vmatpush1.msra.mxu1 %v257_v63  ;;  %695 = vmatprep.subr.mxu0 %v254_v0 }
  0x6e   :  { %v250_v4 = vld [vmem:[#allocation8 + $0x3c8] sm:$0xff]  ;;  %772 = vmatprep.subr.mxu1 %v382_v1  ;;  %v249_v6 = vld [vmem:[#allocation8 + $0x3c0] sm:$0xff]  ;;  %696 = vmatpush2.msra.mxu0 %v253_v2  ;;  %v116_v2 = vld [vmem:[#allocation5 + $0x18] sm:$0xff] }
  0x6f   :  { %v378_v5 = vld [vmem:[#allocation8 + $0x7c8] sm:$0xff]  ;;  %v377_v7 = vld [vmem:[#allocation8 + $0x7c0] sm:$0xff]  ;;  %773 = vmatpush2.msra.mxu1 %v381_v3  ;;  %697 = vmatprep.subr.mxu0 %v250_v4 }
  0x70   :  { %v246_v8 = vld [vmem:[#allocation8 + $0x3a8] sm:$0xff]  ;;  %774 = vmatprep.subr.mxu1 %v378_v5  ;;  %v245_v10 = vld [vmem:[#allocation8 + $0x3a0] sm:$0xff]  ;;  %698 = vmatpush2.msra.mxu0 %v249_v6  ;;  %v115_v5 = vld [vmem:[#allocation5 + $0x10] sm:$0xff] }
  0x71   :  { %v374_v9 = vld [vmem:[#allocation8 + $0x7a8] sm:$0xff]  ;;  %v373_v11 = vld [vmem:[#allocation8 + $0x7a0] sm:$0xff]  ;;  %775 = vmatpush2.msra.mxu1 %v377_v7  ;;  %699 = vmatprep.subr.mxu0 %v246_v8 }
  0x72   :  { %v242_v12 = vld [vmem:[#allocation8 + $0x388] sm:$0xff]  ;;  %776 = vmatprep.subr.mxu1 %v374_v9  ;;  %v241_v14 = vld [vmem:[#allocation8 + $0x380] sm:$0xff]  ;;  %700 = vmatpush2.msra.mxu0 %v245_v10 }
  0x73   :  { %v370_v13 = vld [vmem:[#allocation8 + $0x788] sm:$0xff]  ;;  %v369_v15 = vld [vmem:[#allocation8 + $0x780] sm:$0xff]  ;;  %777 = vmatpush2.msra.mxu1 %v373_v11  ;;  %701 = vmatprep.subr.mxu0 %v242_v12 }
  0x74   :  { %v238_v16 = vld [vmem:[#allocation8 + $0x368] sm:$0xff]  ;;  %778 = vmatprep.subr.mxu1 %v370_v13  ;;  %v237_v18 = vld [vmem:[#allocation8 + $0x360] sm:$0xff]  ;;  %702 = vmatpush2.msra.mxu0 %v241_v14 }
  0x75   :  { %v366_v17 = vld [vmem:[#allocation8 + $0x768] sm:$0xff]  ;;  %v365_v19 = vld [vmem:[#allocation8 + $0x760] sm:$0xff]  ;;  %779 = vmatpush2.msra.mxu1 %v369_v15  ;;  %703 = vmatprep.subr.mxu0 %v238_v16 }
  0x76   :  { %v234_v20 = vld [vmem:[#allocation8 + $0x348] sm:$0xff]  ;;  %780 = vmatprep.subr.mxu1 %v366_v17  ;;  %v233_v22 = vld [vmem:[#allocation8 + $0x340] sm:$0xff]  ;;  %704 = vmatpush2.msra.mxu0 %v237_v18 }
  0x77   :  { %v362_v21 = vld [vmem:[#allocation8 + $0x748] sm:$0xff]  ;;  %v361_v23 = vld [vmem:[#allocation8 + $0x740] sm:$0xff]  ;;  %781 = vmatpush2.msra.mxu1 %v365_v19  ;;  %705 = vmatprep.subr.mxu0 %v234_v20 }
  0x78   :  { %v230_v24 = vld [vmem:[#allocation8 + $0x328] sm:$0xff]  ;;  %782 = vmatprep.subr.mxu1 %v362_v21  ;;  %v229_v26 = vld [vmem:[#allocation8 + $0x320] sm:$0xff]  ;;  %706 = vmatpush2.msra.mxu0 %v233_v22 }
  0x79   :  { %v358_v25 = vld [vmem:[#allocation8 + $0x728] sm:$0xff]  ;;  %v357_v27 = vld [vmem:[#allocation8 + $0x720] sm:$0xff]  ;;  %783 = vmatpush2.msra.mxu1 %v361_v23  ;;  %707 = vmatprep.subr.mxu0 %v230_v24 }
  0x7a   :  { %v226_v28 = vld [vmem:[#allocation8 + $0x308] sm:$0xff]  ;;  %784 = vmatprep.subr.mxu1 %v358_v25  ;;  %v225_v30 = vld [vmem:[#allocation8 + $0x300] sm:$0xff]  ;;  %708 = vmatpush2.msra.mxu0 %v229_v26 }
  0x7b   :  { %v354_v29 = vld [vmem:[#allocation8 + $0x708] sm:$0xff]  ;;  %v353_v31 = vld [vmem:[#allocation8 + $0x700] sm:$0xff]  ;;  %785 = vmatpush2.msra.mxu1 %v357_v27  ;;  %709 = vmatprep.subr.mxu0 %v226_v28 }
  0x7c   :  { %v222_v32 = vld [vmem:[#allocation8 + $0x2e8] sm:$0xff]  ;;  %786 = vmatprep.subr.mxu1 %v354_v29  ;;  %v221_v34 = vld [vmem:[#allocation8 + $0x2e0] sm:$0xff]  ;;  %710 = vmatpush2.msra.mxu0 %v225_v30 }
  0x7d   :  { %v350_v33 = vld [vmem:[#allocation8 + $0x6e8] sm:$0xff]  ;;  %v349_v35 = vld [vmem:[#allocation8 + $0x6e0] sm:$0xff]  ;;  %787 = vmatpush2.msra.mxu1 %v353_v31  ;;  %711 = vmatprep.subr.mxu0 %v222_v32 }
  0x7e   :  { %v218_v36 = vld [vmem:[#allocation8 + $0x2c8] sm:$0xff]  ;;  %788 = vmatprep.subr.mxu1 %v350_v33  ;;  %v217_v38 = vld [vmem:[#allocation8 + $0x2c0] sm:$0xff]  ;;  %712 = vmatpush2.msra.mxu0 %v221_v34 }
  0x7f   :  { %v346_v37 = vld [vmem:[#allocation8 + $0x6c8] sm:$0xff]  ;;  %v345_v39 = vld [vmem:[#allocation8 + $0x6c0] sm:$0xff]  ;;  %789 = vmatpush2.msra.mxu1 %v349_v35  ;;  %713 = vmatprep.subr.mxu0 %v218_v36 }
  0x80   :  { %v214_v40 = vld [vmem:[#allocation8 + $0x2a8] sm:$0xff]  ;;  %790 = vmatprep.subr.mxu1 %v346_v37  ;;  %v213_v42 = vld [vmem:[#allocation8 + $0x2a0] sm:$0xff]  ;;  %714 = vmatpush2.msra.mxu0 %v217_v38 }
  0x81   :  { %v342_v41 = vld [vmem:[#allocation8 + $0x6a8] sm:$0xff]  ;;  %v341_v43 = vld [vmem:[#allocation8 + $0x6a0] sm:$0xff]  ;;  %791 = vmatpush2.msra.mxu1 %v345_v39  ;;  %715 = vmatprep.subr.mxu0 %v214_v40 }
  0x82   :  { %v210_v44 = vld [vmem:[#allocation8 + $0x288] sm:$0xff]  ;;  %792 = vmatprep.subr.mxu1 %v342_v41  ;;  %v209_v46 = vld [vmem:[#allocation8 + $0x280] sm:$0xff]  ;;  %716 = vmatpush2.msra.mxu0 %v213_v42 }
  0x83   :  { %v338_v45 = vld [vmem:[#allocation8 + $0x688] sm:$0xff]  ;;  %v337_v47 = vld [vmem:[#allocation8 + $0x680] sm:$0xff]  ;;  %793 = vmatpush2.msra.mxu1 %v341_v43  ;;  %717 = vmatprep.subr.mxu0 %v210_v44 }
  0x84   :  { %v206_v48 = vld [vmem:[#allocation8 + $0x268] sm:$0xff]  ;;  %794 = vmatprep.subr.mxu1 %v338_v45  ;;  %v205_v50 = vld [vmem:[#allocation8 + $0x260] sm:$0xff]  ;;  %718 = vmatpush2.msra.mxu0 %v209_v46 }
  0x85   :  { %v334_v49 = vld [vmem:[#allocation8 + $0x668] sm:$0xff]  ;;  %v333_v51 = vld [vmem:[#allocation8 + $0x660] sm:$0xff]  ;;  %795 = vmatpush2.msra.mxu1 %v337_v47  ;;  %719 = vmatprep.subr.mxu0 %v206_v48 }
  0x86   :  { %v202_v52 = vld [vmem:[#allocation8 + $0x248] sm:$0xff]  ;;  %796 = vmatprep.subr.mxu1 %v334_v49  ;;  %v201_v54 = vld [vmem:[#allocation8 + $0x240] sm:$0xff]  ;;  %720 = vmatpush2.msra.mxu0 %v205_v50 }
  0x87   :  { %v330_v53 = vld [vmem:[#allocation8 + $0x648] sm:$0xff]  ;;  %v329_v55 = vld [vmem:[#allocation8 + $0x640] sm:$0xff]  ;;  %797 = vmatpush2.msra.mxu1 %v333_v51  ;;  %721 = vmatprep.subr.mxu0 %v202_v52 }
  0x88   :  { %v198_v56 = vld [vmem:[#allocation8 + $0x228] sm:$0xff]  ;;  %798 = vmatprep.subr.mxu1 %v330_v53  ;;  %v197_v58 = vld [vmem:[#allocation8 + $0x220] sm:$0xff]  ;;  %722 = vmatpush2.msra.mxu0 %v201_v54 }
  0x89   :  { %v326_v57 = vld [vmem:[#allocation8 + $0x628] sm:$0xff]  ;;  %v325_v59 = vld [vmem:[#allocation8 + $0x620] sm:$0xff]  ;;  %799 = vmatpush2.msra.mxu1 %v329_v55  ;;  %723 = vmatprep.subr.mxu0 %v198_v56 }
  0x8a   :  { %v194_v60 = vld [vmem:[#allocation8 + $0x208] sm:$0xff]  ;;  %800 = vmatprep.subr.mxu1 %v326_v57  ;;  %v193_v62 = vld [vmem:[#allocation8 + $0x200] sm:$0xff]  ;;  %724 = vmatpush2.msra.mxu0 %v197_v58 }
  0x8b   :  { %v322_v61 = vld [vmem:[#allocation8 + $0x608] sm:$0xff]  ;;  %801 = vmatpush2.msra.mxu1 %v325_v59  ;;  %v321_v0 = vld [vmem:[#allocation8 + $0x600] sm:$0xff]  ;;  %725 = vmatprep.subr.mxu0 %v194_v60 }
  0x8c   :  { %v114_v63 = vld [vmem:[#allocation5 + $0x8] sm:$0xff]  ;;  %v113_v1 = vld [vmem:[#allocation5] sm:$0xff]  ;;  %802 = vmatprep.subr.mxu1 %v322_v61  ;;  %726 = vmatpush2.msra.mxu0 %v193_v62 }
  0x8d   :  { %v446_v3 = vld [vmem:[#allocation8 + $0x9e8] sm:$0xff]  ;;  %727 = vmatprep.mubr.f32.mxu0 %v114_v63  ;;  %803 = vmatpush2.msra.mxu1 %v321_v0  ;;  %v445_v6 = vld [vmem:[#allocation8 + $0x9e0] sm:$0xff] }
  0x8e   :  { %v574_v4 = vld [vmem:[#allocation8 + $0xde8] sm:$0xff]  ;;  %728 = vmatmul.mubr.f32.vlgmr.msra.gmra.mxu0 %v113_v1  ;;  %v573_v7 = vld [vmem:[#allocation8 + $0xde0] sm:$0xff]  ;;  %804 = vmatprep.mubr.f32.mxu1 %v116_v2 }
  0x8f   :  { %817 = vmatprep.subr.mxu0 %v446_v3  ;;  %v442_v8 = vld [vmem:[#allocation8 + $0x9c8] sm:$0xff]  ;;  %894 = vmatprep.subr.mxu1 %v574_v4  ;;  %v441_v10 = vld [vmem:[#allocation8 + $0x9c0] sm:$0xff] }
  0x90   :  { %v570_v9 = vld [vmem:[#allocation8 + $0xdc8] sm:$0xff]  ;;  %805 = vmatmul.mubr.f32.vlgmr.msra.gmra.mxu1 %v115_v5  ;;  %v569_v11 = vld [vmem:[#allocation8 + $0xdc0] sm:$0xff]  ;;  %818 = vmatpush1.msra.mxu0 %v445_v6 }
  0x91   :  { %895 = vmatpush1.msra.mxu1 %v573_v7  ;;  %v438_v12 = vld [vmem:[#allocation8 + $0x9a8] sm:$0xff]  ;;  %819 = vmatprep.subr.mxu0 %v442_v8  ;;  %v437_v14 = vld [vmem:[#allocation8 + $0x9a0] sm:$0xff] }
  0x92   :  { %v566_v13 = vld [vmem:[#allocation8 + $0xda8] sm:$0xff]  ;;  %896 = vmatprep.subr.mxu1 %v570_v9  ;;  %v565_v15 = vld [vmem:[#allocation8 + $0xda0] sm:$0xff]  ;;  %820 = vmatpush1.msra.mxu0 %v441_v10 }
  0x93   :  { %897 = vmatpush1.msra.mxu1 %v569_v11  ;;  %v434_v16 = vld [vmem:[#allocation8 + $0x988] sm:$0xff]  ;;  %821 = vmatprep.subr.mxu0 %v438_v12  ;;  %v433_v18 = vld [vmem:[#allocation8 + $0x980] sm:$0xff] }
  0x94   :  { %v562_v17 = vld [vmem:[#allocation8 + $0xd88] sm:$0xff]  ;;  %898 = vmatprep.subr.mxu1 %v566_v13  ;;  %v561_v19 = vld [vmem:[#allocation8 + $0xd80] sm:$0xff]  ;;  %822 = vmatpush1.msra.mxu0 %v437_v14 }
  0x95   :  { %899 = vmatpush1.msra.mxu1 %v565_v15  ;;  %v430_v20 = vld [vmem:[#allocation8 + $0x968] sm:$0xff]  ;;  %823 = vmatprep.subr.mxu0 %v434_v16  ;;  %v429_v22 = vld [vmem:[#allocation8 + $0x960] sm:$0xff] }
  0x96   :  { %v558_v21 = vld [vmem:[#allocation8 + $0xd68] sm:$0xff]  ;;  %900 = vmatprep.subr.mxu1 %v562_v17  ;;  %v557_v23 = vld [vmem:[#allocation8 + $0xd60] sm:$0xff]  ;;  %824 = vmatpush1.msra.mxu0 %v433_v18 }
  0x97   :  { %901 = vmatpush1.msra.mxu1 %v561_v19  ;;  %v426_v24 = vld [vmem:[#allocation8 + $0x948] sm:$0xff]  ;;  %825 = vmatprep.subr.mxu0 %v430_v20  ;;  %v425_v26 = vld [vmem:[#allocation8 + $0x940] sm:$0xff] }
  0x98   :  { %v554_v25 = vld [vmem:[#allocation8 + $0xd48] sm:$0xff]  ;;  %902 = vmatprep.subr.mxu1 %v558_v21  ;;  %v553_v27 = vld [vmem:[#allocation8 + $0xd40] sm:$0xff]  ;;  %826 = vmatpush1.msra.mxu0 %v429_v22 }
  0x99   :  { %903 = vmatpush1.msra.mxu1 %v557_v23  ;;  %v422_v28 = vld [vmem:[#allocation8 + $0x928] sm:$0xff]  ;;  %827 = vmatprep.subr.mxu0 %v426_v24  ;;  %v421_v30 = vld [vmem:[#allocation8 + $0x920] sm:$0xff] }
  0x9a   :  { %v550_v29 = vld [vmem:[#allocation8 + $0xd28] sm:$0xff]  ;;  %904 = vmatprep.subr.mxu1 %v554_v25  ;;  %v549_v31 = vld [vmem:[#allocation8 + $0xd20] sm:$0xff]  ;;  %828 = vmatpush1.msra.mxu0 %v425_v26 }
  0x9b   :  { %905 = vmatpush1.msra.mxu1 %v553_v27  ;;  %v418_v32 = vld [vmem:[#allocation8 + $0x908] sm:$0xff]  ;;  %829 = vmatprep.subr.mxu0 %v422_v28  ;;  %v417_v34 = vld [vmem:[#allocation8 + $0x900] sm:$0xff] }
  0x9c   :  { %v546_v33 = vld [vmem:[#allocation8 + $0xd08] sm:$0xff]  ;;  %906 = vmatprep.subr.mxu1 %v550_v29  ;;  %v545_v35 = vld [vmem:[#allocation8 + $0xd00] sm:$0xff]  ;;  %830 = vmatpush1.msra.mxu0 %v421_v30 }
  0x9d   :  { %907 = vmatpush1.msra.mxu1 %v549_v31  ;;  %v414_v36 = vld [vmem:[#allocation8 + $0x8e8] sm:$0xff]  ;;  %831 = vmatprep.subr.mxu0 %v418_v32  ;;  %v413_v38 = vld [vmem:[#allocation8 + $0x8e0] sm:$0xff] }
  0x9e   :  { %v542_v37 = vld [vmem:[#allocation8 + $0xce8] sm:$0xff]  ;;  %908 = vmatprep.subr.mxu1 %v546_v33  ;;  %v541_v39 = vld [vmem:[#allocation8 + $0xce0] sm:$0xff]  ;;  %832 = vmatpush1.msra.mxu0 %v417_v34 }
  0x9f   :  { %909 = vmatpush1.msra.mxu1 %v545_v35  ;;  %v410_v40 = vld [vmem:[#allocation8 + $0x8c8] sm:$0xff]  ;;  %833 = vmatprep.subr.mxu0 %v414_v36  ;;  %v409_v42 = vld [vmem:[#allocation8 + $0x8c0] sm:$0xff] }
  0xa0   :  { %v538_v41 = vld [vmem:[#allocation8 + $0xcc8] sm:$0xff]  ;;  %910 = vmatprep.subr.mxu1 %v542_v37  ;;  %v537_v43 = vld [vmem:[#allocation8 + $0xcc0] sm:$0xff]  ;;  %834 = vmatpush1.msra.mxu0 %v413_v38 }
  0xa1   :  { %911 = vmatpush1.msra.mxu1 %v541_v39  ;;  %v406_v44 = vld [vmem:[#allocation8 + $0x8a8] sm:$0xff]  ;;  %835 = vmatprep.subr.mxu0 %v410_v40  ;;  %v405_v46 = vld [vmem:[#allocation8 + $0x8a0] sm:$0xff] }
  0xa2   :  { %v534_v45 = vld [vmem:[#allocation8 + $0xca8] sm:$0xff]  ;;  %912 = vmatprep.subr.mxu1 %v538_v41  ;;  %v533_v47 = vld [vmem:[#allocation8 + $0xca0] sm:$0xff]  ;;  %836 = vmatpush1.msra.mxu0 %v409_v42 }
  0xa3   :  { %913 = vmatpush1.msra.mxu1 %v537_v43  ;;  %v402_v48 = vld [vmem:[#allocation8 + $0x888] sm:$0xff]  ;;  %837 = vmatprep.subr.mxu0 %v406_v44  ;;  %v401_v50 = vld [vmem:[#allocation8 + $0x880] sm:$0xff] }
  0xa4   :  { %v530_v49 = vld [vmem:[#allocation8 + $0xc88] sm:$0xff]  ;;  %914 = vmatprep.subr.mxu1 %v534_v45  ;;  %v529_v51 = vld [vmem:[#allocation8 + $0xc80] sm:$0xff]  ;;  %838 = vmatpush1.msra.mxu0 %v405_v46 }
  0xa5   :  { %915 = vmatpush1.msra.mxu1 %v533_v47  ;;  %v398_v52 = vld [vmem:[#allocation8 + $0x868] sm:$0xff]  ;;  %839 = vmatprep.subr.mxu0 %v402_v48  ;;  %v397_v54 = vld [vmem:[#allocation8 + $0x860] sm:$0xff] }
  0xa6   :  { %v526_v53 = vld [vmem:[#allocation8 + $0xc68] sm:$0xff]  ;;  %916 = vmatprep.subr.mxu1 %v530_v49  ;;  %v525_v55 = vld [vmem:[#allocation8 + $0xc60] sm:$0xff]  ;;  %840 = vmatpush1.msra.mxu0 %v401_v50 }
  0xa7   :  { %917 = vmatpush1.msra.mxu1 %v529_v51  ;;  %v394_v56 = vld [vmem:[#allocation8 + $0x848] sm:$0xff]  ;;  %841 = vmatprep.subr.mxu0 %v398_v52  ;;  %v393_v58 = vld [vmem:[#allocation8 + $0x840] sm:$0xff] }
  0xa8   :  { %v522_v57 = vld [vmem:[#allocation8 + $0xc48] sm:$0xff]  ;;  %918 = vmatprep.subr.mxu1 %v526_v53  ;;  %v521_v59 = vld [vmem:[#allocation8 + $0xc40] sm:$0xff]  ;;  %842 = vmatpush1.msra.mxu0 %v397_v54 }
  0xa9   :  { %919 = vmatpush1.msra.mxu1 %v525_v55  ;;  %v390_v60 = vld [vmem:[#allocation8 + $0x828] sm:$0xff]  ;;  %843 = vmatprep.subr.mxu0 %v394_v56  ;;  %v389_v62 = vld [vmem:[#allocation8 + $0x820] sm:$0xff] }
  0xaa   :  { %v518_v61 = vld [vmem:[#allocation8 + $0xc28] sm:$0xff]  ;;  %920 = vmatprep.subr.mxu1 %v522_v57  ;;  %v517_v63 = vld [vmem:[#allocation8 + $0xc20] sm:$0xff]  ;;  %844 = vmatpush1.msra.mxu0 %v393_v58 }
  0xab   :  { %921 = vmatpush1.msra.mxu1 %v521_v59  ;;  %v386_v0 = vld [vmem:[#allocation8 + $0x808] sm:$0xff]  ;;  %845 = vmatprep.subr.mxu0 %v390_v60  ;;  %v385_v2 = vld [vmem:[#allocation8 + $0x800] sm:$0xff] }
  0xac   :  { %v514_v1 = vld [vmem:[#allocation8 + $0xc08] sm:$0xff]  ;;  %922 = vmatprep.subr.mxu1 %v518_v61  ;;  %v513_v3 = vld [vmem:[#allocation8 + $0xc00] sm:$0xff]  ;;  %846 = vmatpush1.msra.mxu0 %v389_v62  ;;  %v124_v62 = vld [vmem:[#allocation5 + $0x58] sm:$0xff] }
  0xad   :  { %923 = vmatpush1.msra.mxu1 %v517_v63  ;;  %v510_v4 = vld [vmem:[#allocation8 + $0xbe8] sm:$0xff]  ;;  %847 = vmatprep.subr.mxu0 %v386_v0  ;;  %v509_v6 = vld [vmem:[#allocation8 + $0xbe0] sm:$0xff] }
  0xae   :  { %v638_v5 = vld [vmem:[#allocation8 + $0xfe8] sm:$0xff]  ;;  %924 = vmatprep.subr.mxu1 %v514_v1  ;;  %v637_v7 = vld [vmem:[#allocation8 + $0xfe0] sm:$0xff]  ;;  %848 = vmatpush1.msra.mxu0 %v385_v2  ;;  %v123_v1 = vld [vmem:[#allocation5 + $0x50] sm:$0xff] }
  0xaf   :  { %925 = vmatpush1.msra.mxu1 %v513_v3  ;;  %v506_v8 = vld [vmem:[#allocation8 + $0xbc8] sm:$0xff]  ;;  %849 = vmatprep.subr.mxu0 %v510_v4  ;;  %v505_v10 = vld [vmem:[#allocation8 + $0xbc0] sm:$0xff] }
  0xb0   :  { %v634_v9 = vld [vmem:[#allocation8 + $0xfc8] sm:$0xff]  ;;  %926 = vmatprep.subr.mxu1 %v638_v5  ;;  %v633_v11 = vld [vmem:[#allocation8 + $0xfc0] sm:$0xff]  ;;  %850 = vmatpush2.msra.mxu0 %v509_v6 }
  0xb1   :  { %927 = vmatpush2.msra.mxu1 %v637_v7  ;;  %v502_v12 = vld [vmem:[#allocation8 + $0xba8] sm:$0xff]  ;;  %851 = vmatprep.subr.mxu0 %v506_v8  ;;  %v501_v14 = vld [vmem:[#allocation8 + $0xba0] sm:$0xff] }
  0xb2   :  { %v630_v13 = vld [vmem:[#allocation8 + $0xfa8] sm:$0xff]  ;;  %928 = vmatprep.subr.mxu1 %v634_v9  ;;  %v629_v15 = vld [vmem:[#allocation8 + $0xfa0] sm:$0xff]  ;;  %852 = vmatpush2.msra.mxu0 %v505_v10  ;;  %v120_v10 = vld [vmem:[#allocation5 + $0x38] sm:$0xff] }
  0xb3   :  { %929 = vmatpush2.msra.mxu1 %v633_v11  ;;  %v498_v16 = vld [vmem:[#allocation8 + $0xb88] sm:$0xff]  ;;  %853 = vmatprep.subr.mxu0 %v502_v12  ;;  %v497_v18 = vld [vmem:[#allocation8 + $0xb80] sm:$0xff]  ;;  %v192_v11 = vld [vmem:[#allocation8 + $0x1f8] sm:$0xff] }
  0xb4   :  { %v626_v17 = vld [vmem:[#allocation8 + $0xf88] sm:$0xff]  ;;  %930 = vmatprep.subr.mxu1 %v630_v13  ;;  %v625_v19 = vld [vmem:[#allocation8 + $0xf80] sm:$0xff]  ;;  %854 = vmatpush2.msra.mxu0 %v501_v14  ;;  %v320_v12 = vld [vmem:[#allocation8 + $0x5f8] sm:$0xff] }
  0xb5   :  { %931 = vmatpush2.msra.mxu1 %v629_v15  ;;  %v494_v20 = vld [vmem:[#allocation8 + $0xb68] sm:$0xff]  ;;  %855 = vmatprep.subr.mxu0 %v498_v16  ;;  %v493_v22 = vld [vmem:[#allocation8 + $0xb60] sm:$0xff]  ;;  %v119_v13 = vld [vmem:[#allocation5 + $0x30] sm:$0xff] }
  0xb6   :  { %v622_v21 = vld [vmem:[#allocation8 + $0xf68] sm:$0xff]  ;;  %932 = vmatprep.subr.mxu1 %v626_v17  ;;  %v621_v23 = vld [vmem:[#allocation8 + $0xf60] sm:$0xff]  ;;  %856 = vmatpush2.msra.mxu0 %v497_v18  ;;  %v191_v14 = vld [vmem:[#allocation8 + $0x1f0] sm:$0xff] }
  0xb7   :  { %933 = vmatpush2.msra.mxu1 %v625_v19  ;;  %v490_v24 = vld [vmem:[#allocation8 + $0xb48] sm:$0xff]  ;;  %857 = vmatprep.subr.mxu0 %v494_v20  ;;  %v489_v26 = vld [vmem:[#allocation8 + $0xb40] sm:$0xff]  ;;  %v319_v15 = vld [vmem:[#allocation8 + $0x5f0] sm:$0xff] }
  0xb8   :  { %v618_v25 = vld [vmem:[#allocation8 + $0xf48] sm:$0xff]  ;;  %934 = vmatprep.subr.mxu1 %v622_v21  ;;  %v617_v27 = vld [vmem:[#allocation8 + $0xf40] sm:$0xff]  ;;  %858 = vmatpush2.msra.mxu0 %v493_v22  ;;  %v188_v16 = vld [vmem:[#allocation8 + $0x1d8] sm:$0xff] }
  0xb9   :  { %935 = vmatpush2.msra.mxu1 %v621_v23  ;;  %v486_v28 = vld [vmem:[#allocation8 + $0xb28] sm:$0xff]  ;;  %859 = vmatprep.subr.mxu0 %v490_v24  ;;  %v485_v30 = vld [vmem:[#allocation8 + $0xb20] sm:$0xff]  ;;  %v316_v17 = vld [vmem:[#allocation8 + $0x5d8] sm:$0xff] }
  0xba   :  { %v614_v29 = vld [vmem:[#allocation8 + $0xf28] sm:$0xff]  ;;  %936 = vmatprep.subr.mxu1 %v618_v25  ;;  %v613_v31 = vld [vmem:[#allocation8 + $0xf20] sm:$0xff]  ;;  %860 = vmatpush2.msra.mxu0 %v489_v26  ;;  %v187_v19 = vld [vmem:[#allocation8 + $0x1d0] sm:$0xff] }
  0xbb   :  { %937 = vmatpush2.msra.mxu1 %v617_v27  ;;  %v482_v32 = vld [vmem:[#allocation8 + $0xb08] sm:$0xff]  ;;  %861 = vmatprep.subr.mxu0 %v486_v28  ;;  %v481_v34 = vld [vmem:[#allocation8 + $0xb00] sm:$0xff]  ;;  %v315_v20 = vld [vmem:[#allocation8 + $0x5d0] sm:$0xff] }
  0xbc   :  { %v610_v33 = vld [vmem:[#allocation8 + $0xf08] sm:$0xff]  ;;  %938 = vmatprep.subr.mxu1 %v614_v29  ;;  %v609_v35 = vld [vmem:[#allocation8 + $0xf00] sm:$0xff]  ;;  %862 = vmatpush2.msra.mxu0 %v485_v30  ;;  %v184_v22 = vld [vmem:[#allocation8 + $0x1b8] sm:$0xff] }
  0xbd   :  { %939 = vmatpush2.msra.mxu1 %v613_v31  ;;  %v478_v36 = vld [vmem:[#allocation8 + $0xae8] sm:$0xff]  ;;  %863 = vmatprep.subr.mxu0 %v482_v32  ;;  %v477_v38 = vld [vmem:[#allocation8 + $0xae0] sm:$0xff]  ;;  %v312_v23 = vld [vmem:[#allocation8 + $0x5b8] sm:$0xff] }
  0xbe   :  { %v606_v37 = vld [vmem:[#allocation8 + $0xee8] sm:$0xff]  ;;  %940 = vmatprep.subr.mxu1 %v610_v33  ;;  %v605_v39 = vld [vmem:[#allocation8 + $0xee0] sm:$0xff]  ;;  %864 = vmatpush2.msra.mxu0 %v481_v34  ;;  %v128_v24 = vld [vmem:[#allocation5 + $0x78] sm:$0xff] }
  0xbf   :  { %941 = vmatpush2.msra.mxu1 %v609_v35  ;;  %v474_v40 = vld [vmem:[#allocation8 + $0xac8] sm:$0xff]  ;;  %865 = vmatprep.subr.mxu0 %v478_v36  ;;  %v473_v42 = vld [vmem:[#allocation8 + $0xac0] sm:$0xff]  ;;  %v183_v25 = vld [vmem:[#allocation8 + $0x1b0] sm:$0xff] }
  0xc0   :  { %v602_v41 = vld [vmem:[#allocation8 + $0xec8] sm:$0xff]  ;;  %942 = vmatprep.subr.mxu1 %v606_v37  ;;  %v601_v43 = vld [vmem:[#allocation8 + $0xec0] sm:$0xff]  ;;  %866 = vmatpush2.msra.mxu0 %v477_v38  ;;  %v311_v26 = vld [vmem:[#allocation8 + $0x5b0] sm:$0xff] }
  0xc1   :  { %943 = vmatpush2.msra.mxu1 %v605_v39  ;;  %v470_v44 = vld [vmem:[#allocation8 + $0xaa8] sm:$0xff]  ;;  %867 = vmatprep.subr.mxu0 %v474_v40  ;;  %v469_v46 = vld [vmem:[#allocation8 + $0xaa0] sm:$0xff]  ;;  %v180_v27 = vld [vmem:[#allocation8 + $0x198] sm:$0xff] }
  0xc2   :  { %v598_v45 = vld [vmem:[#allocation8 + $0xea8] sm:$0xff]  ;;  %944 = vmatprep.subr.mxu1 %v602_v41  ;;  %v597_v47 = vld [vmem:[#allocation8 + $0xea0] sm:$0xff]  ;;  %868 = vmatpush2.msra.mxu0 %v473_v42  ;;  %v127_v28 = vld [vmem:[#allocation5 + $0x70] sm:$0xff] }
  0xc3   :  { %945 = vmatpush2.msra.mxu1 %v601_v43  ;;  %v466_v48 = vld [vmem:[#allocation8 + $0xa88] sm:$0xff]  ;;  %869 = vmatprep.subr.mxu0 %v470_v44  ;;  %v465_v50 = vld [vmem:[#allocation8 + $0xa80] sm:$0xff]  ;;  %v308_v29 = vld [vmem:[#allocation8 + $0x598] sm:$0xff] }
  0xc4   :  { %v594_v49 = vld [vmem:[#allocation8 + $0xe88] sm:$0xff]  ;;  %946 = vmatprep.subr.mxu1 %v598_v45  ;;  %v593_v51 = vld [vmem:[#allocation8 + $0xe80] sm:$0xff]  ;;  %870 = vmatpush2.msra.mxu0 %v469_v46  ;;  %v179_v30 = vld [vmem:[#allocation8 + $0x190] sm:$0xff] }
  0xc5   :  { %947 = vmatpush2.msra.mxu1 %v597_v47  ;;  %v462_v52 = vld [vmem:[#allocation8 + $0xa68] sm:$0xff]  ;;  %871 = vmatprep.subr.mxu0 %v466_v48  ;;  %v461_v54 = vld [vmem:[#allocation8 + $0xa60] sm:$0xff]  ;;  %v307_v31 = vld [vmem:[#allocation8 + $0x590] sm:$0xff] }
  0xc6   :  { %v590_v53 = vld [vmem:[#allocation8 + $0xe68] sm:$0xff]  ;;  %948 = vmatprep.subr.mxu1 %v594_v49  ;;  %v589_v55 = vld [vmem:[#allocation8 + $0xe60] sm:$0xff]  ;;  %872 = vmatpush2.msra.mxu0 %v465_v50  ;;  %v176_v32 = vld [vmem:[#allocation8 + $0x178] sm:$0xff] }
  0xc7   :  { %949 = vmatpush2.msra.mxu1 %v593_v51  ;;  %v122_v56 = vld [vmem:[#allocation5 + $0x48] sm:$0xff]  ;;  %873 = vmatprep.subr.mxu0 %v462_v52  ;;  %v121_v59 = vld [vmem:[#allocation5 + $0x40] sm:$0xff]  ;;  %v304_v33 = vld [vmem:[#allocation8 + $0x578] sm:$0xff] }
  0xc8   :  { %v458_v57 = vld [vmem:[#allocation8 + $0xa48] sm:$0xff]  ;;  %950 = vmatprep.subr.mxu1 %v590_v53  ;;  %874 = vmatpush2.msra.mxu0 %v461_v54  ;;  %v457_v60 = vld [vmem:[#allocation8 + $0xa40] sm:$0xff]  ;;  %v175_v34 = vld [vmem:[#allocation8 + $0x170] sm:$0xff] }
  0xc9   :  { %v586_v58 = vld [vmem:[#allocation8 + $0xe48] sm:$0xff]  ;;  %951 = vmatpush2.msra.mxu1 %v589_v55  ;;  %v585_v61 = vld [vmem:[#allocation8 + $0xe40] sm:$0xff]  ;;  %733 = vmatprep.mubr.f32.mxu0 %v122_v56  ;;  %v303_v35 = vld [vmem:[#allocation8 + $0x570] sm:$0xff] }
  0xca   :  { %875 = vmatprep.subr.mxu0 %v458_v57  ;;  %v454_v63 = vld [vmem:[#allocation8 + $0xa28] sm:$0xff]  ;;  %952 = vmatprep.subr.mxu1 %v586_v58  ;;  %v453_v2 = vld [vmem:[#allocation8 + $0xa20] sm:$0xff]  ;;  %v172_v36 = vld [vmem:[#allocation8 + $0x158] sm:$0xff] }
  0xcb   :  { %734 = vmatmul.mubr.f32.gmra.mxu0 %v121_v59  ;;  %v582_v0 = vld [vmem:[#allocation8 + $0xe28] sm:$0xff]  ;;  %953 = vmatpush2.msra.mxu1 %v585_v61  ;;  %v581_v3 = vld [vmem:[#allocation8 + $0xe20] sm:$0xff]  ;;  %v300_v37 = vld [vmem:[#allocation8 + $0x558] sm:$0xff] }
  0xcc   :  { %876 = vmatpush2.msra.mxu0 %v457_v60  ;;  %810 = vmatprep.mubr.f32.mxu1 %v124_v62  ;;  %v450_v4 = vld [vmem:[#allocation8 + $0xa08] sm:$0xff]  ;;  %v449_v6 = vld [vmem:[#allocation8 + $0xa00] sm:$0xff]  ;;  %v171_v38 = vld [vmem:[#allocation8 + $0x150] sm:$0xff] }
  0xcd   :  { %877 = vmatprep.subr.mxu0 %v454_v63  ;;  %v578_v5 = vld [vmem:[#allocation8 + $0xe08] sm:$0xff]  ;;  %954 = vmatprep.subr.mxu1 %v582_v0  ;;  %v577_v8 = vld [vmem:[#allocation8 + $0xe00] sm:$0xff]  ;;  %v299_v39 = vld [vmem:[#allocation8 + $0x550] sm:$0xff] }
  0xce   :  { %811 = vmatmul.mubr.f32.gmra.mxu1 %v123_v1  ;;  %v118_v7 = vld [vmem:[#allocation5 + $0x28] sm:$0xff]  ;;  %878 = vmatpush2.msra.mxu0 %v453_v2  ;;  %v117_v9 = vld [vmem:[#allocation5 + $0x20] sm:$0xff]  ;;  %v168_v40 = vld [vmem:[#allocation8 + $0x138] sm:$0xff] }
  0xcf   :  { %955 = vmatpush2.msra.mxu1 %v581_v3  ;;  %879 = vmatprep.subr.mxu0 %v450_v4  ;;  %v126_v18 = vld [vmem:[#allocation5 + $0x68] sm:$0xff]  ;;  %v125_v21 = vld [vmem:[#allocation5 + $0x60] sm:$0xff]  ;;  %v296_v41 = vld [vmem:[#allocation8 + $0x538] sm:$0xff] }
  0xd0   :  { %956 = vmatprep.subr.mxu1 %v578_v5  ;;  %880 = vmatpush2.msra.mxu0 %v449_v6  ;;  %v167_v42 = vld [vmem:[#allocation8 + $0x130] sm:$0xff]  ;;  %v164_v44 = vld [vmem:[#allocation8 + $0x118] sm:$0xff] }
  0xd1   :  { %881 = vmatprep.mubr.f32.mxu0 %v118_v7  ;;  %957 = vmatpush2.msra.mxu1 %v577_v8  ;;  %v295_v43 = vld [vmem:[#allocation8 + $0x530] sm:$0xff]  ;;  %v292_v45 = vld [vmem:[#allocation8 + $0x518] sm:$0xff] }
  0xd2   :  { %882 = vmatmul.mubr.f32.vlgmr.msra.gmra.mxu0 %v117_v9  ;;  %958 = vmatprep.mubr.f32.mxu1 %v120_v10  ;;  %v163_v46 = vld [vmem:[#allocation8 + $0x110] sm:$0xff]  ;;  %v160_v48 = vld [vmem:[#allocation8 + $0xf8] sm:$0xff] }
  0xd3   :  { %971 = vmatprep.subr.mxu0 %v192_v11  ;;  %1048 = vmatprep.subr.mxu1 %v320_v12  ;;  %v291_v47 = vld [vmem:[#allocation8 + $0x510] sm:$0xff]  ;;  %v288_v49 = vld [vmem:[#allocation8 + $0x4f8] sm:$0xff] }
  0xd4   :  { %959 = vmatmul.mubr.f32.vlgmr.msra.gmra.mxu1 %v119_v13  ;;  %972 = vmatpush1.msra.mxu0 %v191_v14  ;;  %v159_v50 = vld [vmem:[#allocation8 + $0xf0] sm:$0xff]  ;;  %v156_v52 = vld [vmem:[#allocation8 + $0xd8] sm:$0xff] }
  0xd5   :  { %1049 = vmatpush1.msra.mxu1 %v319_v15  ;;  %973 = vmatprep.subr.mxu0 %v188_v16  ;;  %v287_v51 = vld [vmem:[#allocation8 + $0x4f0] sm:$0xff]  ;;  %v284_v53 = vld [vmem:[#allocation8 + $0x4d8] sm:$0xff] }
  0xd6   :  { %1050 = vmatprep.subr.mxu1 %v316_v17  ;;  %887 = vmatprep.mubr.f32.mxu0 %v126_v18  ;;  %v155_v54 = vld [vmem:[#allocation8 + $0xd0] sm:$0xff]  ;;  %v152_v56 = vld [vmem:[#allocation8 + $0xb8] sm:$0xff] }
  0xd7   :  { %974 = vmatpush1.msra.mxu0 %v187_v19  ;;  %1051 = vmatpush1.msra.mxu1 %v315_v20  ;;  %v283_v55 = vld [vmem:[#allocation8 + $0x4d0] sm:$0xff]  ;;  %v280_v57 = vld [vmem:[#allocation8 + $0x4b8] sm:$0xff] }
  0xd8   :  { %888 = vmatmul.mubr.f32.gmra.mxu0 %v125_v21  ;;  %975 = vmatprep.subr.mxu0 %v184_v22  ;;  %v151_v58 = vld [vmem:[#allocation8 + $0xb0] sm:$0xff]  ;;  %v148_v60 = vld [vmem:[#allocation8 + $0x98] sm:$0xff] }
  0xd9   :  { %1052 = vmatprep.subr.mxu1 %v312_v23  ;;  %964 = vmatprep.mubr.f32.mxu1 %v128_v24  ;;  %v279_v59 = vld [vmem:[#allocation8 + $0x4b0] sm:$0xff]  ;;  %v276_v61 = vld [vmem:[#allocation8 + $0x498] sm:$0xff] }
  0xda   :  { %976 = vmatpush1.msra.mxu0 %v183_v25  ;;  %1053 = vmatpush1.msra.mxu1 %v311_v26  ;;  %v147_v62 = vld [vmem:[#allocation8 + $0x90] sm:$0xff]  ;;  %v144_v0 = vld [vmem:[#allocation8 + $0x78] sm:$0xff] }
  0xdb   :  { %977 = vmatprep.subr.mxu0 %v180_v27  ;;  %965 = vmatmul.mubr.f32.gmra.mxu1 %v127_v28  ;;  %v275_v63 = vld [vmem:[#allocation8 + $0x490] sm:$0xff]  ;;  %v272_v1 = vld [vmem:[#allocation8 + $0x478] sm:$0xff] }
  0xdc   :  { %1054 = vmatprep.subr.mxu1 %v308_v29  ;;  %978 = vmatpush1.msra.mxu0 %v179_v30  ;;  %v143_v2 = vld [vmem:[#allocation8 + $0x70] sm:$0xff]  ;;  %v140_v4 = vld [vmem:[#allocation8 + $0x58] sm:$0xff] }
  0xdd   :  { %1055 = vmatpush1.msra.mxu1 %v307_v31  ;;  %979 = vmatprep.subr.mxu0 %v176_v32  ;;  %v271_v3 = vld [vmem:[#allocation8 + $0x470] sm:$0xff]  ;;  %v268_v5 = vld [vmem:[#allocation8 + $0x458] sm:$0xff] }
  0xde   :  { %1056 = vmatprep.subr.mxu1 %v304_v33  ;;  %980 = vmatpush1.msra.mxu0 %v175_v34  ;;  %v139_v6 = vld [vmem:[#allocation8 + $0x50] sm:$0xff]  ;;  %v136_v8 = vld [vmem:[#allocation8 + $0x38] sm:$0xff] }
  0xdf   :  { %1057 = vmatpush1.msra.mxu1 %v303_v35  ;;  %981 = vmatprep.subr.mxu0 %v172_v36  ;;  %v267_v7 = vld [vmem:[#allocation8 + $0x450] sm:$0xff]  ;;  %v264_v9 = vld [vmem:[#allocation8 + $0x438] sm:$0xff] }
  0xe0   :  { %1058 = vmatprep.subr.mxu1 %v300_v37  ;;  %982 = vmatpush1.msra.mxu0 %v171_v38  ;;  %v135_v10 = vld [vmem:[#allocation8 + $0x30] sm:$0xff]  ;;  %v132_v12 = vld [vmem:[#allocation8 + $0x18] sm:$0xff] }
  0xe1   :  { %1059 = vmatpush1.msra.mxu1 %v299_v39  ;;  %983 = vmatprep.subr.mxu0 %v168_v40  ;;  %v263_v11 = vld [vmem:[#allocation8 + $0x430] sm:$0xff]  ;;  %v260_v13 = vld [vmem:[#allocation8 + $0x418] sm:$0xff] }
  0xe2   :  { %1060 = vmatprep.subr.mxu1 %v296_v41  ;;  %984 = vmatpush1.msra.mxu0 %v167_v42  ;;  %v131_v14 = vld [vmem:[#allocation8 + $0x10] sm:$0xff]  ;;  %v256_v16 = vld [vmem:[#allocation8 + $0x3f8] sm:$0xff] }
  0xe3   :  { %1061 = vmatpush1.msra.mxu1 %v295_v43  ;;  %985 = vmatprep.subr.mxu0 %v164_v44  ;;  %v259_v15 = vld [vmem:[#allocation8 + $0x410] sm:$0xff]  ;;  %v384_v17 = vld [vmem:[#allocation8 + $0x7f8] sm:$0xff] }
  0xe4   :  { %1062 = vmatprep.subr.mxu1 %v292_v45  ;;  %986 = vmatpush1.msra.mxu0 %v163_v46  ;;  %v255_v18 = vld [vmem:[#allocation8 + $0x3f0] sm:$0xff]  ;;  %v252_v20 = vld [vmem:[#allocation8 + $0x3d8] sm:$0xff] }
  0xe5   :  { %1063 = vmatpush1.msra.mxu1 %v291_v47  ;;  %987 = vmatprep.subr.mxu0 %v160_v48  ;;  %v383_v19 = vld [vmem:[#allocation8 + $0x7f0] sm:$0xff]  ;;  %v380_v21 = vld [vmem:[#allocation8 + $0x7d8] sm:$0xff] }
  0xe6   :  { %1064 = vmatprep.subr.mxu1 %v288_v49  ;;  %988 = vmatpush1.msra.mxu0 %v159_v50  ;;  %v251_v22 = vld [vmem:[#allocation8 + $0x3d0] sm:$0xff]  ;;  %v248_v24 = vld [vmem:[#allocation8 + $0x3b8] sm:$0xff] }
  0xe7   :  { %1065 = vmatpush1.msra.mxu1 %v287_v51  ;;  %989 = vmatprep.subr.mxu0 %v156_v52  ;;  %v379_v23 = vld [vmem:[#allocation8 + $0x7d0] sm:$0xff]  ;;  %v376_v25 = vld [vmem:[#allocation8 + $0x7b8] sm:$0xff] }
  0xe8   :  { %1066 = vmatprep.subr.mxu1 %v284_v53  ;;  %990 = vmatpush1.msra.mxu0 %v155_v54  ;;  %v247_v26 = vld [vmem:[#allocation8 + $0x3b0] sm:$0xff]  ;;  %v244_v28 = vld [vmem:[#allocation8 + $0x398] sm:$0xff] }
  0xe9   :  { %1067 = vmatpush1.msra.mxu1 %v283_v55  ;;  %991 = vmatprep.subr.mxu0 %v152_v56  ;;  %v375_v27 = vld [vmem:[#allocation8 + $0x7b0] sm:$0xff]  ;;  %v372_v29 = vld [vmem:[#allocation8 + $0x798] sm:$0xff] }
  0xea   :  { %1068 = vmatprep.subr.mxu1 %v280_v57  ;;  %992 = vmatpush1.msra.mxu0 %v151_v58  ;;  %v243_v30 = vld [vmem:[#allocation8 + $0x390] sm:$0xff]  ;;  %v240_v32 = vld [vmem:[#allocation8 + $0x378] sm:$0xff] }
  0xeb   :  { %1069 = vmatpush1.msra.mxu1 %v279_v59  ;;  %993 = vmatprep.subr.mxu0 %v148_v60  ;;  %v371_v31 = vld [vmem:[#allocation8 + $0x790] sm:$0xff]  ;;  %v368_v33 = vld [vmem:[#allocation8 + $0x778] sm:$0xff] }
  0xec   :  { %1070 = vmatprep.subr.mxu1 %v276_v61  ;;  %994 = vmatpush1.msra.mxu0 %v147_v62  ;;  %v239_v34 = vld [vmem:[#allocation8 + $0x370] sm:$0xff]  ;;  %v236_v36 = vld [vmem:[#allocation8 + $0x358] sm:$0xff] }
  0xed   :  { %1071 = vmatpush1.msra.mxu1 %v275_v63  ;;  %995 = vmatprep.subr.mxu0 %v144_v0  ;;  %v367_v35 = vld [vmem:[#allocation8 + $0x770] sm:$0xff]  ;;  %v364_v37 = vld [vmem:[#allocation8 + $0x758] sm:$0xff] }
  0xee   :  { %1072 = vmatprep.subr.mxu1 %v272_v1  ;;  %996 = vmatpush1.msra.mxu0 %v143_v2  ;;  %v235_v38 = vld [vmem:[#allocation8 + $0x350] sm:$0xff]  ;;  %v232_v40 = vld [vmem:[#allocation8 + $0x338] sm:$0xff] }
  0xef   :  { %1073 = vmatpush1.msra.mxu1 %v271_v3  ;;  %997 = vmatprep.subr.mxu0 %v140_v4  ;;  %v363_v39 = vld [vmem:[#allocation8 + $0x750] sm:$0xff]  ;;  %v360_v41 = vld [vmem:[#allocation8 + $0x738] sm:$0xff] }
  0xf0   :  { %1074 = vmatprep.subr.mxu1 %v268_v5  ;;  %998 = vmatpush1.msra.mxu0 %v139_v6  ;;  %v231_v42 = vld [vmem:[#allocation8 + $0x330] sm:$0xff]  ;;  %v228_v44 = vld [vmem:[#allocation8 + $0x318] sm:$0xff] }
  0xf1   :  { %1075 = vmatpush1.msra.mxu1 %v267_v7  ;;  %999 = vmatprep.subr.mxu0 %v136_v8  ;;  %v359_v43 = vld [vmem:[#allocation8 + $0x730] sm:$0xff]  ;;  %v356_v45 = vld [vmem:[#allocation8 + $0x718] sm:$0xff] }
  0xf2   :  { %1076 = vmatprep.subr.mxu1 %v264_v9  ;;  %1000 = vmatpush1.msra.mxu0 %v135_v10  ;;  %v227_v46 = vld [vmem:[#allocation8 + $0x310] sm:$0xff]  ;;  %v224_v48 = vld [vmem:[#allocation8 + $0x2f8] sm:$0xff] }
  0xf3   :  { %1077 = vmatpush1.msra.mxu1 %v263_v11  ;;  %1001 = vmatprep.subr.mxu0 %v132_v12  ;;  %v355_v47 = vld [vmem:[#allocation8 + $0x710] sm:$0xff]  ;;  %v352_v49 = vld [vmem:[#allocation8 + $0x6f8] sm:$0xff] }
  0xf4   :  { %1078 = vmatprep.subr.mxu1 %v260_v13  ;;  %1002 = vmatpush1.msra.mxu0 %v131_v14  ;;  %v223_v50 = vld [vmem:[#allocation8 + $0x2f0] sm:$0xff]  ;;  %v220_v52 = vld [vmem:[#allocation8 + $0x2d8] sm:$0xff] }
  0xf5   :  { %1079 = vmatpush1.msra.mxu1 %v259_v15  ;;  %1003 = vmatprep.subr.mxu0 %v256_v16  ;;  %v351_v51 = vld [vmem:[#allocation8 + $0x6f0] sm:$0xff]  ;;  %v348_v53 = vld [vmem:[#allocation8 + $0x6d8] sm:$0xff] }
  0xf6   :  { %1080 = vmatprep.subr.mxu1 %v384_v17  ;;  %1004 = vmatpush2.msra.mxu0 %v255_v18  ;;  %v219_v54 = vld [vmem:[#allocation8 + $0x2d0] sm:$0xff]  ;;  %v216_v56 = vld [vmem:[#allocation8 + $0x2b8] sm:$0xff]  ;;  %v2799_v17 = vld [vmem:[#allocation5 + $0x8] sm:$0xff] }
  0xf7   :  { %1081 = vmatpush2.msra.mxu1 %v383_v19  ;;  %1005 = vmatprep.subr.mxu0 %v252_v20  ;;  %v347_v55 = vld [vmem:[#allocation8 + $0x6d0] sm:$0xff]  ;;  %v344_v57 = vld [vmem:[#allocation8 + $0x6b8] sm:$0xff]  ;;  %v2800_v19 = vld [vmem:[#allocation5] sm:$0xff] }
  0xf8   :  { %1082 = vmatprep.subr.mxu1 %v380_v21  ;;  %1006 = vmatpush2.msra.mxu0 %v251_v22  ;;  %v215_v58 = vld [vmem:[#allocation8 + $0x2b0] sm:$0xff]  ;;  %v212_v60 = vld [vmem:[#allocation8 + $0x298] sm:$0xff] }
  0xf9   :  { %1083 = vmatpush2.msra.mxu1 %v379_v23  ;;  %1007 = vmatprep.subr.mxu0 %v248_v24  ;;  %v343_v59 = vld [vmem:[#allocation8 + $0x6b0] sm:$0xff]  ;;  %v340_v61 = vld [vmem:[#allocation8 + $0x698] sm:$0xff] }
  0xfa   :  { %1084 = vmatprep.subr.mxu1 %v376_v25  ;;  %1008 = vmatpush2.msra.mxu0 %v247_v26  ;;  %v211_v62 = vld [vmem:[#allocation8 + $0x290] sm:$0xff]  ;;  %v208_v0 = vld [vmem:[#allocation8 + $0x278] sm:$0xff] }
  0xfb   :  { %1085 = vmatpush2.msra.mxu1 %v375_v27  ;;  %1009 = vmatprep.subr.mxu0 %v244_v28  ;;  %v339_v63 = vld [vmem:[#allocation8 + $0x690] sm:$0xff]  ;;  %v336_v1 = vld [vmem:[#allocation8 + $0x678] sm:$0xff] }
  0xfc   :  { %1086 = vmatprep.subr.mxu1 %v372_v29  ;;  %1010 = vmatpush2.msra.mxu0 %v243_v30  ;;  %v207_v2 = vld [vmem:[#allocation8 + $0x270] sm:$0xff]  ;;  %v204_v4 = vld [vmem:[#allocation8 + $0x258] sm:$0xff] }
  0xfd   :  { %1087 = vmatpush2.msra.mxu1 %v371_v31  ;;  %1011 = vmatprep.subr.mxu0 %v240_v32  ;;  %v335_v3 = vld [vmem:[#allocation8 + $0x670] sm:$0xff]  ;;  %v332_v5 = vld [vmem:[#allocation8 + $0x658] sm:$0xff] }
  0xfe   :  { %1088 = vmatprep.subr.mxu1 %v368_v33  ;;  %1012 = vmatpush2.msra.mxu0 %v239_v34  ;;  %v203_v6 = vld [vmem:[#allocation8 + $0x250] sm:$0xff]  ;;  %v200_v8 = vld [vmem:[#allocation8 + $0x238] sm:$0xff] }
  0xff   :  { %1089 = vmatpush2.msra.mxu1 %v367_v35  ;;  %1013 = vmatprep.subr.mxu0 %v236_v36  ;;  %v331_v7 = vld [vmem:[#allocation8 + $0x650] sm:$0xff]  ;;  %v328_v9 = vld [vmem:[#allocation8 + $0x638] sm:$0xff] }
 0x100   :  { %1090 = vmatprep.subr.mxu1 %v364_v37  ;;  %1014 = vmatpush2.msra.mxu0 %v235_v38  ;;  %v199_v10 = vld [vmem:[#allocation8 + $0x230] sm:$0xff]  ;;  %v196_v12 = vld [vmem:[#allocation8 + $0x218] sm:$0xff] }
 0x101   :  { %1091 = vmatpush2.msra.mxu1 %v363_v39  ;;  %1015 = vmatprep.subr.mxu0 %v232_v40  ;;  %v327_v11 = vld [vmem:[#allocation8 + $0x630] sm:$0xff]  ;;  %v324_v13 = vld [vmem:[#allocation8 + $0x618] sm:$0xff] }
 0x102   :  { %1092 = vmatprep.subr.mxu1 %v360_v41  ;;  %1016 = vmatpush2.msra.mxu0 %v231_v42  ;;  %v195_v14 = vld [vmem:[#allocation8 + $0x210] sm:$0xff]  ;;  %v448_v16 = vld [vmem:[#allocation8 + $0x9f8] sm:$0xff] }
 0x103   :  { %1093 = vmatpush2.msra.mxu1 %v359_v43  ;;  %1017 = vmatprep.subr.mxu0 %v228_v44  ;;  %v323_v15 = vld [vmem:[#allocation8 + $0x610] sm:$0xff]  ;;  %v576_v18 = vld [vmem:[#allocation8 + $0xdf8] sm:$0xff] }
 0x104   :  { %1094 = vmatprep.subr.mxu1 %v356_v45  ;;  %1018 = vmatpush2.msra.mxu0 %v227_v46  ;;  %v447_v20 = vld [vmem:[#allocation8 + $0x9f0] sm:$0xff]  ;;  %v2801_v22 = vld [vmem:[#allocation5 + $0x18] sm:$0xff] }
 0x105   :  { %1095 = vmatpush2.msra.mxu1 %v355_v47  ;;  %1019 = vmatprep.subr.mxu0 %v224_v48  ;;  %v575_v21 = vld [vmem:[#allocation8 + $0xdf0] sm:$0xff]  ;;  %v444_v23 = vld [vmem:[#allocation8 + $0x9d8] sm:$0xff] }
 0x106   :  { %1096 = vmatprep.subr.mxu1 %v352_v49  ;;  %1020 = vmatpush2.msra.mxu0 %v223_v50  ;;  %v572_v24 = vld [vmem:[#allocation8 + $0xdd8] sm:$0xff]  ;;  %v2802_v25 = vld [vmem:[#allocation5 + $0x10] sm:$0xff] }
 0x107   :  { %1097 = vmatpush2.msra.mxu1 %v351_v51  ;;  %1021 = vmatprep.subr.mxu0 %v220_v52  ;;  %v443_v26 = vld [vmem:[#allocation8 + $0x9d0] sm:$0xff]  ;;  %v440_v28 = vld [vmem:[#allocation8 + $0x9b8] sm:$0xff] }
 0x108   :  { %1098 = vmatprep.subr.mxu1 %v348_v53  ;;  %1022 = vmatpush2.msra.mxu0 %v219_v54  ;;  %v571_v27 = vld [vmem:[#allocation8 + $0xdd0] sm:$0xff]  ;;  %v568_v29 = vld [vmem:[#allocation8 + $0xdb8] sm:$0xff] }
 0x109   :  { %1099 = vmatpush2.msra.mxu1 %v347_v55  ;;  %1023 = vmatprep.subr.mxu0 %v216_v56  ;;  %v439_v30 = vld [vmem:[#allocation8 + $0x9b0] sm:$0xff]  ;;  %v436_v32 = vld [vmem:[#allocation8 + $0x998] sm:$0xff] }
 0x10a   :  { %1100 = vmatprep.subr.mxu1 %v344_v57  ;;  %1024 = vmatpush2.msra.mxu0 %v215_v58  ;;  %v567_v31 = vld [vmem:[#allocation8 + $0xdb0] sm:$0xff]  ;;  %v564_v33 = vld [vmem:[#allocation8 + $0xd98] sm:$0xff] }
 0x10b   :  { %1101 = vmatpush2.msra.mxu1 %v343_v59  ;;  %1025 = vmatprep.subr.mxu0 %v212_v60  ;;  %v435_v34 = vld [vmem:[#allocation8 + $0x990] sm:$0xff]  ;;  %v432_v36 = vld [vmem:[#allocation8 + $0x978] sm:$0xff] }
 0x10c   :  { %1102 = vmatprep.subr.mxu1 %v340_v61  ;;  %1026 = vmatpush2.msra.mxu0 %v211_v62  ;;  %v563_v35 = vld [vmem:[#allocation8 + $0xd90] sm:$0xff]  ;;  %v560_v37 = vld [vmem:[#allocation8 + $0xd78] sm:$0xff] }
 0x10d   :  { %1103 = vmatpush2.msra.mxu1 %v339_v63  ;;  %1027 = vmatprep.subr.mxu0 %v208_v0  ;;  %v431_v38 = vld [vmem:[#allocation8 + $0x970] sm:$0xff]  ;;  %v428_v40 = vld [vmem:[#allocation8 + $0x958] sm:$0xff] }
 0x10e   :  { %1104 = vmatprep.subr.mxu1 %v336_v1  ;;  %1028 = vmatpush2.msra.mxu0 %v207_v2  ;;  %v559_v39 = vld [vmem:[#allocation8 + $0xd70] sm:$0xff]  ;;  %v556_v41 = vld [vmem:[#allocation8 + $0xd58] sm:$0xff] }
 0x10f   :  { %1105 = vmatpush2.msra.mxu1 %v335_v3  ;;  %1029 = vmatprep.subr.mxu0 %v204_v4  ;;  %v427_v42 = vld [vmem:[#allocation8 + $0x950] sm:$0xff]  ;;  %v424_v44 = vld [vmem:[#allocation8 + $0x938] sm:$0xff] }
 0x110   :  { %1106 = vmatprep.subr.mxu1 %v332_v5  ;;  %1030 = vmatpush2.msra.mxu0 %v203_v6  ;;  %v555_v43 = vld [vmem:[#allocation8 + $0xd50] sm:$0xff]  ;;  %v552_v45 = vld [vmem:[#allocation8 + $0xd38] sm:$0xff] }
 0x111   :  { %1107 = vmatpush2.msra.mxu1 %v331_v7  ;;  %1031 = vmatprep.subr.mxu0 %v200_v8  ;;  %v423_v46 = vld [vmem:[#allocation8 + $0x930] sm:$0xff]  ;;  %v420_v48 = vld [vmem:[#allocation8 + $0x918] sm:$0xff] }
 0x112   :  { %1108 = vmatprep.subr.mxu1 %v328_v9  ;;  %1032 = vmatpush2.msra.mxu0 %v199_v10  ;;  %v551_v47 = vld [vmem:[#allocation8 + $0xd30] sm:$0xff]  ;;  %v548_v49 = vld [vmem:[#allocation8 + $0xd18] sm:$0xff] }
 0x113   :  { %1109 = vmatpush2.msra.mxu1 %v327_v11  ;;  %1033 = vmatprep.subr.mxu0 %v196_v12  ;;  %v419_v50 = vld [vmem:[#allocation8 + $0x910] sm:$0xff]  ;;  %v416_v52 = vld [vmem:[#allocation8 + $0x8f8] sm:$0xff] }
 0x114   :  { %1110 = vmatprep.subr.mxu1 %v324_v13  ;;  %1034 = vmatpush2.msra.mxu0 %v195_v14  ;;  %v547_v51 = vld [vmem:[#allocation8 + $0xd10] sm:$0xff]  ;;  %v544_v53 = vld [vmem:[#allocation8 + $0xcf8] sm:$0xff] }
 0x115   :  { %1035 = vmatprep.mubr.f32.mxu0 %v2799_v17  ;;  %1111 = vmatpush2.msra.mxu1 %v323_v15  ;;  %v415_v54 = vld [vmem:[#allocation8 + $0x8f0] sm:$0xff]  ;;  %v412_v56 = vld [vmem:[#allocation8 + $0x8d8] sm:$0xff] }
 0x116   :  { %1036 = vmatmul.mubr.f32.vlgmr.msra.gmra.mxu0 %v2800_v19  ;;  %1112 = vmatprep.mubr.f32.mxu1 %v2801_v22  ;;  %v543_v55 = vld [vmem:[#allocation8 + $0xcf0] sm:$0xff]  ;;  %v540_v57 = vld [vmem:[#allocation8 + $0xcd8] sm:$0xff] }
 0x117   :  { %1125 = vmatprep.subr.mxu0 %v448_v16  ;;  %1202 = vmatprep.subr.mxu1 %v576_v18  ;;  %v411_v58 = vld [vmem:[#allocation8 + $0x8d0] sm:$0xff]  ;;  %v408_v60 = vld [vmem:[#allocation8 + $0x8b8] sm:$0xff] }
 0x118   :  { %1113 = vmatmul.mubr.f32.vlgmr.msra.gmra.mxu1 %v2802_v25  ;;  %1126 = vmatpush1.msra.mxu0 %v447_v20  ;;  %v539_v59 = vld [vmem:[#allocation8 + $0xcd0] sm:$0xff]  ;;  %v536_v61 = vld [vmem:[#allocation8 + $0xcb8] sm:$0xff] }
 0x119   :  { %1203 = vmatpush1.msra.mxu1 %v575_v21  ;;  %1127 = vmatprep.subr.mxu0 %v444_v23  ;;  %v407_v62 = vld [vmem:[#allocation8 + $0x8b0] sm:$0xff]  ;;  %v404_v0 = vld [vmem:[#allocation8 + $0x898] sm:$0xff] }
 0x11a   :  { %1204 = vmatprep.subr.mxu1 %v572_v24  ;;  %1128 = vmatpush1.msra.mxu0 %v443_v26  ;;  %v535_v63 = vld [vmem:[#allocation8 + $0xcb0] sm:$0xff]  ;;  %v532_v1 = vld [vmem:[#allocation8 + $0xc98] sm:$0xff] }
 0x11b   :  { %1205 = vmatpush1.msra.mxu1 %v571_v27  ;;  %1129 = vmatprep.subr.mxu0 %v440_v28  ;;  %v403_v2 = vld [vmem:[#allocation8 + $0x890] sm:$0xff]  ;;  %v400_v4 = vld [vmem:[#allocation8 + $0x878] sm:$0xff] }
 0x11c   :  { %1206 = vmatprep.subr.mxu1 %v568_v29  ;;  %1130 = vmatpush1.msra.mxu0 %v439_v30  ;;  %v531_v3 = vld [vmem:[#allocation8 + $0xc90] sm:$0xff]  ;;  %v528_v5 = vld [vmem:[#allocation8 + $0xc78] sm:$0xff] }
 0x11d   :  { %1207 = vmatpush1.msra.mxu1 %v567_v31  ;;  %1131 = vmatprep.subr.mxu0 %v436_v32  ;;  %v399_v6 = vld [vmem:[#allocation8 + $0x870] sm:$0xff]  ;;  %v396_v8 = vld [vmem:[#allocation8 + $0x858] sm:$0xff] }
 0x11e   :  { %1208 = vmatprep.subr.mxu1 %v564_v33  ;;  %1132 = vmatpush1.msra.mxu0 %v435_v34  ;;  %v527_v7 = vld [vmem:[#allocation8 + $0xc70] sm:$0xff]  ;;  %v524_v9 = vld [vmem:[#allocation8 + $0xc58] sm:$0xff] }
 0x11f   :  { %1209 = vmatpush1.msra.mxu1 %v563_v35  ;;  %1133 = vmatprep.subr.mxu0 %v432_v36  ;;  %v395_v10 = vld [vmem:[#allocation8 + $0x850] sm:$0xff]  ;;  %v392_v12 = vld [vmem:[#allocation8 + $0x838] sm:$0xff] }
 0x120   :  { %1210 = vmatprep.subr.mxu1 %v560_v37  ;;  %1134 = vmatpush1.msra.mxu0 %v431_v38  ;;  %v523_v11 = vld [vmem:[#allocation8 + $0xc50] sm:$0xff]  ;;  %v520_v13 = vld [vmem:[#allocation8 + $0xc38] sm:$0xff] }
 0x121   :  { %1211 = vmatpush1.msra.mxu1 %v559_v39  ;;  %1135 = vmatprep.subr.mxu0 %v428_v40  ;;  %v391_v14 = vld [vmem:[#allocation8 + $0x830] sm:$0xff]  ;;  %v388_v16 = vld [vmem:[#allocation8 + $0x818] sm:$0xff] }
 0x122   :  { %1212 = vmatprep.subr.mxu1 %v556_v41  ;;  %1136 = vmatpush1.msra.mxu0 %v427_v42  ;;  %v519_v15 = vld [vmem:[#allocation8 + $0xc30] sm:$0xff]  ;;  %v516_v17 = vld [vmem:[#allocation8 + $0xc18] sm:$0xff] }
 0x123   :  { %1213 = vmatpush1.msra.mxu1 %v555_v43  ;;  %1137 = vmatprep.subr.mxu0 %v424_v44  ;;  %v387_v18 = vld [vmem:[#allocation8 + $0x810] sm:$0xff]  ;;  %v512_v20 = vld [vmem:[#allocation8 + $0xbf8] sm:$0xff] }
 0x124   :  { %1214 = vmatprep.subr.mxu1 %v552_v45  ;;  %1138 = vmatpush1.msra.mxu0 %v423_v46  ;;  %v515_v19 = vld [vmem:[#allocation8 + $0xc10] sm:$0xff]  ;;  %v640_v21 = vld [vmem:[#allocation8 + $0xff8] sm:$0xff] }
 0x125   :  { %1215 = vmatpush1.msra.mxu1 %v551_v47  ;;  %1139 = vmatprep.subr.mxu0 %v420_v48  ;;  %v511_v22 = vld [vmem:[#allocation8 + $0xbf0] sm:$0xff]  ;;  %v508_v24 = vld [vmem:[#allocation8 + $0xbd8] sm:$0xff] }
 0x126   :  { %1216 = vmatprep.subr.mxu1 %v548_v49  ;;  %1140 = vmatpush1.msra.mxu0 %v419_v50  ;;  %v639_v23 = vld [vmem:[#allocation8 + $0xff0] sm:$0xff]  ;;  %v636_v25 = vld [vmem:[#allocation8 + $0xfd8] sm:$0xff] }
 0x127   :  { %1217 = vmatpush1.msra.mxu1 %v547_v51  ;;  %1141 = vmatprep.subr.mxu0 %v416_v52  ;;  %v507_v26 = vld [vmem:[#allocation8 + $0xbd0] sm:$0xff]  ;;  %v504_v28 = vld [vmem:[#allocation8 + $0xbb8] sm:$0xff] }
 0x128   :  { %1218 = vmatprep.subr.mxu1 %v544_v53  ;;  %1142 = vmatpush1.msra.mxu0 %v415_v54  ;;  %v635_v27 = vld [vmem:[#allocation8 + $0xfd0] sm:$0xff]  ;;  %v632_v29 = vld [vmem:[#allocation8 + $0xfb8] sm:$0xff] }
 0x129   :  { %1219 = vmatpush1.msra.mxu1 %v543_v55  ;;  %1143 = vmatprep.subr.mxu0 %v412_v56  ;;  %v503_v30 = vld [vmem:[#allocation8 + $0xbb0] sm:$0xff]  ;;  %v500_v32 = vld [vmem:[#allocation8 + $0xb98] sm:$0xff] }
 0x12a   :  { %1220 = vmatprep.subr.mxu1 %v540_v57  ;;  %1144 = vmatpush1.msra.mxu0 %v411_v58  ;;  %v631_v31 = vld [vmem:[#allocation8 + $0xfb0] sm:$0xff]  ;;  %v628_v33 = vld [vmem:[#allocation8 + $0xf98] sm:$0xff] }
 0x12b   :  { %1221 = vmatpush1.msra.mxu1 %v539_v59  ;;  %1145 = vmatprep.subr.mxu0 %v408_v60  ;;  %v499_v34 = vld [vmem:[#allocation8 + $0xb90] sm:$0xff]  ;;  %v496_v36 = vld [vmem:[#allocation8 + $0xb78] sm:$0xff] }
 0x12c   :  { %1222 = vmatprep.subr.mxu1 %v536_v61  ;;  %1146 = vmatpush1.msra.mxu0 %v407_v62  ;;  %v627_v35 = vld [vmem:[#allocation8 + $0xf90] sm:$0xff]  ;;  %v624_v37 = vld [vmem:[#allocation8 + $0xf78] sm:$0xff] }
 0x12d   :  { %1223 = vmatpush1.msra.mxu1 %v535_v63  ;;  %1147 = vmatprep.subr.mxu0 %v404_v0  ;;  %v495_v38 = vld [vmem:[#allocation8 + $0xb70] sm:$0xff]  ;;  %v492_v40 = vld [vmem:[#allocation8 + $0xb58] sm:$0xff] }
 0x12e   :  { %1224 = vmatprep.subr.mxu1 %v532_v1  ;;  %1148 = vmatpush1.msra.mxu0 %v403_v2  ;;  %v623_v39 = vld [vmem:[#allocation8 + $0xf70] sm:$0xff]  ;;  %v620_v41 = vld [vmem:[#allocation8 + $0xf58] sm:$0xff] }
 0x12f   :  { %1225 = vmatpush1.msra.mxu1 %v531_v3  ;;  %1149 = vmatprep.subr.mxu0 %v400_v4  ;;  %v491_v42 = vld [vmem:[#allocation8 + $0xb50] sm:$0xff]  ;;  %v488_v44 = vld [vmem:[#allocation8 + $0xb38] sm:$0xff] }
 0x130   :  { %1226 = vmatprep.subr.mxu1 %v528_v5  ;;  %1150 = vmatpush1.msra.mxu0 %v399_v6  ;;  %v619_v43 = vld [vmem:[#allocation8 + $0xf50] sm:$0xff]  ;;  %v616_v45 = vld [vmem:[#allocation8 + $0xf38] sm:$0xff] }
 0x131   :  { %1227 = vmatpush1.msra.mxu1 %v527_v7  ;;  %1151 = vmatprep.subr.mxu0 %v396_v8  ;;  %v487_v46 = vld [vmem:[#allocation8 + $0xb30] sm:$0xff]  ;;  %v484_v48 = vld [vmem:[#allocation8 + $0xb18] sm:$0xff] }
 0x132   :  { %1228 = vmatprep.subr.mxu1 %v524_v9  ;;  %1152 = vmatpush1.msra.mxu0 %v395_v10  ;;  %v615_v47 = vld [vmem:[#allocation8 + $0xf30] sm:$0xff]  ;;  %v612_v49 = vld [vmem:[#allocation8 + $0xf18] sm:$0xff]  ;;  %v2803_v10 = vld [vmem:[#allocation5 + $0x48] sm:$0xff] }
 0x133   :  { %1229 = vmatpush1.msra.mxu1 %v523_v11  ;;  %1153 = vmatprep.subr.mxu0 %v392_v12  ;;  %v483_v50 = vld [vmem:[#allocation8 + $0xb10] sm:$0xff]  ;;  %v480_v52 = vld [vmem:[#allocation8 + $0xaf8] sm:$0xff]  ;;  %v2804_v12 = vld [vmem:[#allocation5 + $0x40] sm:$0xff] }
 0x134   :  { %1230 = vmatprep.subr.mxu1 %v520_v13  ;;  %1154 = vmatpush1.msra.mxu0 %v391_v14  ;;  %v611_v51 = vld [vmem:[#allocation8 + $0xf10] sm:$0xff]  ;;  %v608_v53 = vld [vmem:[#allocation8 + $0xef8] sm:$0xff] }
 0x135   :  { %1231 = vmatpush1.msra.mxu1 %v519_v15  ;;  %1155 = vmatprep.subr.mxu0 %v388_v16  ;;  %v479_v54 = vld [vmem:[#allocation8 + $0xaf0] sm:$0xff]  ;;  %v476_v56 = vld [vmem:[#allocation8 + $0xad8] sm:$0xff] }
 0x136   :  { %1232 = vmatprep.subr.mxu1 %v516_v17  ;;  %1156 = vmatpush1.msra.mxu0 %v387_v18  ;;  %v607_v55 = vld [vmem:[#allocation8 + $0xef0] sm:$0xff]  ;;  %v604_v57 = vld [vmem:[#allocation8 + $0xed8] sm:$0xff] }
 0x137   :  { %1233 = vmatpush1.msra.mxu1 %v515_v19  ;;  %1157 = vmatprep.subr.mxu0 %v512_v20  ;;  %v475_v58 = vld [vmem:[#allocation8 + $0xad0] sm:$0xff]  ;;  %v472_v60 = vld [vmem:[#allocation8 + $0xab8] sm:$0xff] }
 0x138   :  { %1234 = vmatprep.subr.mxu1 %v640_v21  ;;  %1158 = vmatpush2.msra.mxu0 %v511_v22  ;;  %v603_v59 = vld [vmem:[#allocation8 + $0xed0] sm:$0xff]  ;;  %v600_v61 = vld [vmem:[#allocation8 + $0xeb8] sm:$0xff] }
 0x139   :  { %1235 = vmatpush2.msra.mxu1 %v639_v23  ;;  %1159 = vmatprep.subr.mxu0 %v508_v24  ;;  %v471_v62 = vld [vmem:[#allocation8 + $0xab0] sm:$0xff]  ;;  %v468_v0 = vld [vmem:[#allocation8 + $0xa98] sm:$0xff]  ;;  %v2807_v24 = vld [vmem:[#allocation5 + $0x28] sm:$0xff] }
 0x13a   :  { %1236 = vmatprep.subr.mxu1 %v636_v25  ;;  %1160 = vmatpush2.msra.mxu0 %v507_v26  ;;  %v599_v63 = vld [vmem:[#allocation8 + $0xeb0] sm:$0xff]  ;;  %v596_v1 = vld [vmem:[#allocation8 + $0xe98] sm:$0xff] }
 0x13b   :  { %1237 = vmatpush2.msra.mxu1 %v635_v27  ;;  %1161 = vmatprep.subr.mxu0 %v504_v28  ;;  %v467_v2 = vld [vmem:[#allocation8 + $0xa90] sm:$0xff]  ;;  %v464_v4 = vld [vmem:[#allocation8 + $0xa78] sm:$0xff]  ;;  %v2809_v27 = vld [vmem:[#allocation5 + $0x20] sm:$0xff] }
 0x13c   :  { %1238 = vmatprep.subr.mxu1 %v632_v29  ;;  %1162 = vmatpush2.msra.mxu0 %v503_v30  ;;  %v595_v3 = vld [vmem:[#allocation8 + $0xe90] sm:$0xff]  ;;  %v592_v5 = vld [vmem:[#allocation8 + $0xe78] sm:$0xff]  ;;  %v1347_v29 = vld [vmem:[#allocation11 + $0x1e0] sm:$0xff] }
 0x13d   :  { %1239 = vmatpush2.msra.mxu1 %v631_v31  ;;  %1163 = vmatprep.subr.mxu0 %v500_v32  ;;  %v463_v6 = vld [vmem:[#allocation8 + $0xa70] sm:$0xff]  ;;  %v460_v8 = vld [vmem:[#allocation8 + $0xa58] sm:$0xff]  ;;  %v2811_v30 = vld [vmem:[#allocation5 + $0x68] sm:$0xff] }
 0x13e   :  { %1240 = vmatprep.subr.mxu1 %v628_v33  ;;  %1164 = vmatpush2.msra.mxu0 %v499_v34  ;;  %v591_v7 = vld [vmem:[#allocation8 + $0xe70] sm:$0xff]  ;;  %v588_v9 = vld [vmem:[#allocation8 + $0xe58] sm:$0xff]  ;;  %v1343_v34 = vld [vmem:[#allocation11 + $0x1c0] sm:$0xff] }
 0x13f   :  { %1241 = vmatpush2.msra.mxu1 %v627_v35  ;;  %1165 = vmatprep.subr.mxu0 %v496_v36  ;;  %v459_v11 = vld [vmem:[#allocation8 + $0xa50] sm:$0xff]  ;;  %v456_v14 = vld [vmem:[#allocation8 + $0xa38] sm:$0xff]  ;;  %v1475_v35 = vld [vmem:[#allocation11 + $0x5e0] sm:$0xff] }
 0x140   :  { %1242 = vmatprep.subr.mxu1 %v624_v37  ;;  %1166 = vmatpush2.msra.mxu0 %v495_v38  ;;  %v587_v13 = vld [vmem:[#allocation8 + $0xe50] sm:$0xff]  ;;  %v584_v15 = vld [vmem:[#allocation8 + $0xe38] sm:$0xff]  ;;  %v2813_v36 = vld [vmem:[#allocation5 + $0x60] sm:$0xff] }
 0x141   :  { %1243 = vmatpush2.msra.mxu1 %v623_v39  ;;  %1167 = vmatprep.subr.mxu0 %v492_v40  ;;  %v2805_v16 = vld [vmem:[#allocation5 + $0x58] sm:$0xff]  ;;  %v455_v17 = vld [vmem:[#allocation8 + $0xa30] sm:$0xff]  ;;  %v1471_v40 = vld [vmem:[#allocation11 + $0x5c0] sm:$0xff] }
 0x142   :  { %1244 = vmatprep.subr.mxu1 %v620_v41  ;;  %1168 = vmatpush2.msra.mxu0 %v491_v42  ;;  %v583_v18 = vld [vmem:[#allocation8 + $0xe30] sm:$0xff]  ;;  %v452_v19 = vld [vmem:[#allocation8 + $0xa18] sm:$0xff]  ;;  %v1339_v41 = vld [vmem:[#allocation11 + $0x1a0] sm:$0xff] }
 0x143   :  { %1245 = vmatpush2.msra.mxu1 %v619_v43  ;;  %1169 = vmatprep.subr.mxu0 %v488_v44  ;;  %v580_v20 = vld [vmem:[#allocation8 + $0xe18] sm:$0xff]  ;;  %v2806_v21 = vld [vmem:[#allocation5 + $0x50] sm:$0xff]  ;;  %v1335_v44 = vld [vmem:[#allocation11 + $0x180] sm:$0xff] }
 0x144   :  { %1246 = vmatprep.subr.mxu1 %v616_v45  ;;  %1170 = vmatpush2.msra.mxu0 %v487_v46  ;;  %v451_v22 = vld [vmem:[#allocation8 + $0xa10] sm:$0xff]  ;;  %v2808_v25 = vld [vmem:[#allocation5 + $0x38] sm:$0xff]  ;;  %v1467_v45 = vld [vmem:[#allocation11 + $0x5a0] sm:$0xff] }
 0x145   :  { %1247 = vmatpush2.msra.mxu1 %v615_v47  ;;  %1171 = vmatprep.subr.mxu0 %v484_v48  ;;  %v579_v23 = vld [vmem:[#allocation8 + $0xe10] sm:$0xff]  ;;  %v2812_v31 = vld [vmem:[#allocation5 + $0x78] sm:$0xff]  ;;  %v1463_v48 = vld [vmem:[#allocation11 + $0x580] sm:$0xff] }
 0x146   :  { %1248 = vmatprep.subr.mxu1 %v612_v49  ;;  %1172 = vmatpush2.msra.mxu0 %v483_v50  ;;  %v1348_v26 = vld [vmem:[#allocation11 + $0x1e8] sm:$0xff]  ;;  %v1331_v49 = vld [vmem:[#allocation11 + $0x160] sm:$0xff] }
 0x147   :  { %1249 = vmatpush2.msra.mxu1 %v611_v51  ;;  %1173 = vmatprep.subr.mxu0 %v480_v52  ;;  %v2810_v28 = vld [vmem:[#allocation5 + $0x30] sm:$0xff]  ;;  %v1459_v52 = vld [vmem:[#allocation11 + $0x560] sm:$0xff] }
 0x148   :  { %1250 = vmatprep.subr.mxu1 %v608_v53  ;;  %1174 = vmatpush2.msra.mxu0 %v479_v54  ;;  %v1344_v32 = vld [vmem:[#allocation11 + $0x1c8] sm:$0xff]  ;;  %v1327_v53 = vld [vmem:[#allocation11 + $0x140] sm:$0xff] }
 0x149   :  { %1251 = vmatpush2.msra.mxu1 %v607_v55  ;;  %1175 = vmatprep.subr.mxu0 %v476_v56  ;;  %v1476_v33 = vld [vmem:[#allocation11 + $0x5e8] sm:$0xff]  ;;  %v1455_v56 = vld [vmem:[#allocation11 + $0x540] sm:$0xff] }
 0x14a   :  { %1252 = vmatprep.subr.mxu1 %v604_v57  ;;  %1176 = vmatpush2.msra.mxu0 %v475_v58  ;;  %v2814_v37 = vld [vmem:[#allocation5 + $0x70] sm:$0xff]  ;;  %v1323_v57 = vld [vmem:[#allocation11 + $0x120] sm:$0xff] }
 0x14b   :  { %1253 = vmatpush2.msra.mxu1 %v603_v59  ;;  %1177 = vmatprep.subr.mxu0 %v472_v60  ;;  %v1340_v38 = vld [vmem:[#allocation11 + $0x1a8] sm:$0xff]  ;;  %v1451_v60 = vld [vmem:[#allocation11 + $0x520] sm:$0xff] }
 0x14c   :  { %1254 = vmatprep.subr.mxu1 %v600_v61  ;;  %1178 = vmatpush2.msra.mxu0 %v471_v62  ;;  %v1472_v39 = vld [vmem:[#allocation11 + $0x5c8] sm:$0xff]  ;;  %v1319_v61 = vld [vmem:[#allocation11 + $0x100] sm:$0xff] }
 0x14d   :  { %1255 = vmatpush2.msra.mxu1 %v599_v63  ;;  %1179 = vmatprep.subr.mxu0 %v468_v0  ;;  %v1468_v42 = vld [vmem:[#allocation11 + $0x5a8] sm:$0xff]  ;;  %v1447_v0 = vld [vmem:[#allocation11 + $0x500] sm:$0xff] }
 0x14e   :  { %1256 = vmatprep.subr.mxu1 %v596_v1  ;;  %1180 = vmatpush2.msra.mxu0 %v467_v2  ;;  %v1336_v43 = vld [vmem:[#allocation11 + $0x188] sm:$0xff]  ;;  %v1315_v1 = vld [vmem:[#allocation11 + $0xe0] sm:$0xff] }
 0x14f   :  { %1257 = vmatpush2.msra.mxu1 %v595_v3  ;;  %1181 = vmatprep.subr.mxu0 %v464_v4  ;;  %v1464_v46 = vld [vmem:[#allocation11 + $0x588] sm:$0xff]  ;;  %v1443_v4 = vld [vmem:[#allocation11 + $0x4e0] sm:$0xff] }
 0x150   :  { %1258 = vmatprep.subr.mxu1 %v592_v5  ;;  %1041 = vmatprep.mubr.f32.mxu0 %v2803_v10  ;;  %v1332_v47 = vld [vmem:[#allocation11 + $0x168] sm:$0xff]  ;;  %v1311_v5 = vld [vmem:[#allocation11 + $0xc0] sm:$0xff] }
 0x151   :  { %1182 = vmatpush2.msra.mxu0 %v463_v6  ;;  %1259 = vmatpush2.msra.mxu1 %v591_v7  ;;  %v1460_v50 = vld [vmem:[#allocation11 + $0x568] sm:$0xff] }
 0x152   :  { %1042 = vmatmul.mubr.f32.gmra.mxu0 %v2804_v12  ;;  %1183 = vmatprep.subr.mxu0 %v460_v8  ;;  %v1328_v51 = vld [vmem:[#allocation11 + $0x148] sm:$0xff]  ;;  %v1439_v8 = vld [vmem:[#allocation11 + $0x4c0] sm:$0xff] }
 0x153   :  { %1260 = vmatprep.subr.mxu1 %v588_v9  ;;  %1118 = vmatprep.mubr.f32.mxu1 %v2805_v16  ;;  %v1456_v54 = vld [vmem:[#allocation11 + $0x548] sm:$0xff]  ;;  %v1307_v9 = vld [vmem:[#allocation11 + $0xa0] sm:$0xff] }
 0x154   :  { %1184 = vmatpush2.msra.mxu0 %v459_v11  ;;  %1261 = vmatpush2.msra.mxu1 %v587_v13  ;;  %v1324_v55 = vld [vmem:[#allocation11 + $0x128] sm:$0xff]  ;;  %v1435_v12 = vld [vmem:[#allocation11 + $0x4a0] sm:$0xff] }
 0x155   :  { %1185 = vmatprep.subr.mxu0 %v456_v14  ;;  %1119 = vmatmul.mubr.f32.gmra.mxu1 %v2806_v21  ;;  %v1452_v58 = vld [vmem:[#allocation11 + $0x528] sm:$0xff]  ;;  %v1303_v13 = vld [vmem:[#allocation11 + $0x80] sm:$0xff] }
 0x156   :  { %1262 = vmatprep.subr.mxu1 %v584_v15  ;;  %1186 = vmatpush2.msra.mxu0 %v455_v17  ;;  %v1320_v59 = vld [vmem:[#allocation11 + $0x108] sm:$0xff]  ;;  %v1431_v16 = vld [vmem:[#allocation11 + $0x480] sm:$0xff] }
 0x157   :  { %1263 = vmatpush2.msra.mxu1 %v583_v18  ;;  %1187 = vmatprep.subr.mxu0 %v452_v19  ;;  %v1448_v62 = vld [vmem:[#allocation11 + $0x508] sm:$0xff]  ;;  %v1299_v17 = vld [vmem:[#allocation11 + $0x60] sm:$0xff] }
 0x158   :  { %1264 = vmatprep.subr.mxu1 %v580_v20  ;;  %1188 = vmatpush2.msra.mxu0 %v451_v22  ;;  %v1316_v63 = vld [vmem:[#allocation11 + $0xe8] sm:$0xff]  ;;  %v1427_v20 = vld [vmem:[#allocation11 + $0x460] sm:$0xff] }
 0x159   :  { %1189 = vmatprep.mubr.f32.mxu0 %v2807_v24  ;;  %1265 = vmatpush2.msra.mxu1 %v579_v23  ;;  %v1444_v2 = vld [vmem:[#allocation11 + $0x4e8] sm:$0xff]  ;;  %v1295_v21 = vld [vmem:[#allocation11 + $0x40] sm:$0xff] }
 0x15a   :  { %1266 = vmatprep.mubr.f32.mxu1 %v2808_v25  ;;  %1190 = vmatmul.mubr.f32.vlgmr.msra.gmra.mxu0 %v2809_v27  ;;  %v1312_v3 = vld [vmem:[#allocation11 + $0xc8] sm:$0xff]  ;;  %v1423_v24 = vld [vmem:[#allocation11 + $0x440] sm:$0xff] }
 0x15b   :  { %1267 = vmatmul.mubr.f32.vlgmr.msra.gmra.mxu1 %v2810_v28  ;;  %1195 = vmatprep.mubr.f32.mxu0 %v2811_v30  ;;  %v1440_v6 = vld [vmem:[#allocation11 + $0x4c8] sm:$0xff]  ;;  %v1291_v25 = vld [vmem:[#allocation11 + $0x20] sm:$0xff] }
 0x15c   :  { %1272 = vmatprep.mubr.f32.mxu1 %v2812_v31  ;;  %1565 = vmatprep.subr.mxu0 %v1348_v26  ;;  %v1308_v7 = vld [vmem:[#allocation11 + $0xa8] sm:$0xff]  ;;  %v1419_v28 = vld [vmem:[#allocation11 + $0x420] sm:$0xff] }
 0x15d   :  { %1566 = vmatpush1.msra.mxu0 %v1347_v29  ;;  %1642 = vmatprep.subr.mxu1 %v1476_v33  ;;  %v1436_v10 = vld [vmem:[#allocation11 + $0x4a8] sm:$0xff]  ;;  %v1287_v29 = vld [vmem:[#allocation11] sm:$0xff] }
 0x15e   :  { %1196 = vmatmul.mubr.f32.gmra.mxu0 %v2813_v36  ;;  %1567 = vmatprep.subr.mxu0 %v1344_v32  ;;  %v1304_v11 = vld [vmem:[#allocation11 + $0x88] sm:$0xff]  ;;  %v1415_v32 = vld [vmem:[#allocation11 + $0x400] sm:$0xff] }
 0x15f   :  { %1273 = vmatmul.mubr.f32.gmra.mxu1 %v2814_v37  ;;  %1568 = vmatpush1.msra.mxu0 %v1343_v34  ;;  %v1432_v14 = vld [vmem:[#allocation11 + $0x488] sm:$0xff]  ;;  %v1411_v33 = vld [vmem:[#allocation11 + $0x3e0] sm:$0xff]  ;;  %v643_v37 = vlaneseq }
 0x160   :  { %1643 = vmatpush1.msra.mxu1 %v1475_v35  ;;  %1569 = vmatprep.subr.mxu0 %v1340_v38  ;;  %v1300_v15 = vld [vmem:[#allocation11 + $0x68] sm:$0xff]  ;;  %v1539_v36 = vld [vmem:[#allocation11 + $0x7e0] sm:$0xff] }
 0x161   :  { %1644 = vmatprep.subr.mxu1 %v1472_v39  ;;  %1570 = vmatpush1.msra.mxu0 %v1339_v41  ;;  %v1428_v18 = vld [vmem:[#allocation11 + $0x468] sm:$0xff]  ;;  %v1407_v38 = vld [vmem:[#allocation11 + $0x3c0] sm:$0xff] }
 0x162   :  { %1645 = vmatpush1.msra.mxu1 %v1471_v40  ;;  %1571 = vmatprep.subr.mxu0 %v1336_v43  ;;  %v1296_v19 = vld [vmem:[#allocation11 + $0x48] sm:$0xff]  ;;  %v1535_v41 = vld [vmem:[#allocation11 + $0x7c0] sm:$0xff] }
 0x163   :  { %1646 = vmatprep.subr.mxu1 %v1468_v42  ;;  %1572 = vmatpush1.msra.mxu0 %v1335_v44  ;;  %v1424_v22 = vld [vmem:[#allocation11 + $0x448] sm:$0xff]  ;;  %v1403_v42 = vld [vmem:[#allocation11 + $0x3a0] sm:$0xff] }
 0x164   :  { %1647 = vmatpush1.msra.mxu1 %v1467_v45  ;;  %1573 = vmatprep.subr.mxu0 %v1332_v47  ;;  %v1292_v23 = vld [vmem:[#allocation11 + $0x28] sm:$0xff]  ;;  %v1531_v45 = vld [vmem:[#allocation11 + $0x7a0] sm:$0xff] }
 0x165   :  { %1648 = vmatprep.subr.mxu1 %v1464_v46  ;;  %1574 = vmatpush1.msra.mxu0 %v1331_v49  ;;  %v1420_v26 = vld [vmem:[#allocation11 + $0x428] sm:$0xff]  ;;  %v3043_v46 = vshrl.u32 %v643_v37, 7  ;;  %v1399_v47 = vld [vmem:[#allocation11 + $0x380] sm:$0xff] }
 0x166   :  { %1649 = vmatpush1.msra.mxu1 %v1463_v48  ;;  %1575 = vmatprep.subr.mxu0 %v1328_v51  ;;  %v1288_v27 = vld [vmem:[#allocation11 + $0x8] sm:$0xff]  ;;  %v1395_v51 = vld [vmem:[#allocation11 + $0x360] sm:$0xff] }
 0x167   :  { %1650 = vmatprep.subr.mxu1 %v1460_v50  ;;  %1576 = vmatpush1.msra.mxu0 %v1327_v53  ;;  %v1416_v30 = vld [vmem:[#allocation11 + $0x408] sm:$0xff]  ;;  %v1527_v50 = vld [vmem:[#allocation11 + $0x780] sm:$0xff]  ;;  %v729_v53 = vpop.f32.mrf.mxu0 }
 0x168   :  { %1651 = vmatpush1.msra.mxu1 %v1459_v52  ;;  %1577 = vmatprep.subr.mxu0 %v1324_v55  ;;  %v1412_v31 = vld [vmem:[#allocation11 + $0x3e8] sm:$0xff]  ;;  %v1523_v55 = vld [vmem:[#allocation11 + $0x760] sm:$0xff] }
 0x169   :  { %1652 = vmatprep.subr.mxu1 %v1456_v54  ;;  %1578 = vmatpush1.msra.mxu0 %v1323_v57  ;;  %v1540_v34 = vld [vmem:[#allocation11 + $0x7e8] sm:$0xff]  ;;  %v1391_v57 = vld [vmem:[#allocation11 + $0x340] sm:$0xff] }
 0x16a   :  { %1653 = vmatpush1.msra.mxu1 %v1455_v56  ;;  %1579 = vmatprep.subr.mxu0 %v1320_v59  ;;  %v1408_v35 = vld [vmem:[#allocation11 + $0x3c8] sm:$0xff]  ;;  %v3046_v56 = vsub.s32 0, %v3043_v46  ;;  %v3048_v59 = vld [vmem:[#allocation10] sm:$0xf] }
 0x16b   :  { %1654 = vmatprep.subr.mxu1 %v1452_v58  ;;  %1580 = vmatpush1.msra.mxu0 %v1319_v61  ;;  %v1536_v39 = vld [vmem:[#allocation11 + $0x7c8] sm:$0xff] }
 0x16c   :  { %1655 = vmatpush1.msra.mxu1 %v1451_v60  ;;  %1581 = vmatprep.subr.mxu0 %v1316_v63  ;;  %v1404_v40 = vld [vmem:[#allocation11 + $0x3a8] sm:$0xff]  ;;  %v649_v60 = vsub.s32 1, %v3043_v46  ;;  %v806_v63 = vpop.f32.mrf.mxu1 }
 0x16d   :  { %1656 = vmatprep.subr.mxu1 %v1448_v62  ;;  %1582 = vmatpush1.msra.mxu0 %v1315_v1  ;;  %v1532_v43 = vld [vmem:[#allocation11 + $0x7a8] sm:$0xff]  ;;  %v1519_v62 = vld [vmem:[#allocation11 + $0x740] sm:$0xff] }
 0x16e   :  { %1657 = vmatpush1.msra.mxu1 %v1447_v0  ;;  %1583 = vmatprep.subr.mxu0 %v1312_v3  ;;  %v1400_v44 = vld [vmem:[#allocation11 + $0x388] sm:$0xff]  ;;  %v1387_v0 = vld [vmem:[#allocation11 + $0x320] sm:$0xff] }
 0x16f   :  { %1658 = vmatprep.subr.mxu1 %v1444_v2  ;;  %1584 = vmatpush1.msra.mxu0 %v1311_v5  ;;  %v1528_v48 = vld [vmem:[#allocation11 + $0x788] sm:$0xff]  ;;  %v731_v2 = vpop.f32.mrf.mxu0  ;;  %v646_v5 = vrot.slane %v3048_v59, %v3046_v56 }
 0x170   :  { %1659 = vmatpush1.msra.mxu1 %v1443_v4  ;;  %1585 = vmatprep.subr.mxu0 %v1308_v7  ;;  %v1396_v49 = vld [vmem:[#allocation11 + $0x368] sm:$0xff]  ;;  %v1515_v4 = vld [vmem:[#allocation11 + $0x720] sm:$0xff] }
 0x171   :  { %1660 = vmatprep.subr.mxu1 %v1440_v6  ;;  %1586 = vmatpush1.msra.mxu0 %v1307_v9  ;;  %v1524_v52 = vld [vmem:[#allocation11 + $0x768] sm:$0xff]  ;;  %v1383_v6 = vld [vmem:[#allocation11 + $0x300] sm:$0xff] }
 0x172   :  { %1661 = vmatpush1.msra.mxu1 %v1439_v8  ;;  %1587 = vmatprep.subr.mxu0 %v1304_v11  ;;  %v1392_v54 = vld [vmem:[#allocation11 + $0x348] sm:$0xff]  ;;  %v650_v8 = vrot.slane %v3048_v59, %v649_v60  ;;  %v1511_v11 = vld [vmem:[#allocation11 + $0x700] sm:$0xff] }
 0x173   :  { %1662 = vmatprep.subr.mxu1 %v1436_v10  ;;  %1588 = vmatpush1.msra.mxu0 %v1303_v13  ;;  %v1520_v58 = vld [vmem:[#allocation11 + $0x748] sm:$0xff]  ;;  %v1379_v13 = vld [vmem:[#allocation11 + $0x2e0] sm:$0xff] }
 0x174   :  { %1663 = vmatpush1.msra.mxu1 %v1435_v12  ;;  %1589 = vmatprep.subr.mxu0 %v1300_v15  ;;  %v1388_v61 = vld [vmem:[#allocation11 + $0x328] sm:$0xff]  ;;  %v808_v12 = vpop.f32.mrf.mxu1 }
 0x175   :  { %1664 = vmatprep.subr.mxu1 %v1432_v14  ;;  %1590 = vmatpush1.msra.mxu0 %v1299_v17  ;;  %v1516_v1 = vld [vmem:[#allocation11 + $0x728] sm:$0xff]  ;;  %v1375_v17 = vld [vmem:[#allocation11 + $0x2c0] sm:$0xff] }
 0x176   :  { %1665 = vmatpush1.msra.mxu1 %v1431_v16  ;;  %1591 = vmatprep.subr.mxu0 %v1296_v19  ;;  %v1384_v3 = vld [vmem:[#allocation11 + $0x308] sm:$0xff]  ;;  %v730_v16 = vadd.f32 %v729_v53, %v646_v5 }
 0x177   :  { %1666 = vmatprep.subr.mxu1 %v1428_v18  ;;  %1592 = vmatpush1.msra.mxu0 %v1295_v21  ;;  %v1512_v7 = vld [vmem:[#allocation11 + $0x708] sm:$0xff] }
 0x178   :  { %1667 = vmatpush1.msra.mxu1 %v1427_v20  ;;  %1593 = vmatprep.subr.mxu0 %v1292_v23  ;;  %v1380_v9 = vld [vmem:[#allocation11 + $0x2e8] sm:$0xff]  ;;  %v732_v20 = vadd.f32 %v731_v2, %v650_v8 }
 0x179   :  { %1668 = vmatprep.subr.mxu1 %v1424_v22  ;;  %1594 = vmatpush1.msra.mxu0 %v1291_v25  ;;  %v1508_v14 = vld [vmem:[#allocation11 + $0x6e8] sm:$0xff]  ;;  %v1371_v22 = vld [vmem:[#allocation11 + $0x2a0] sm:$0xff]  ;;  %v807_v25 = vadd.f32 %v806_v63, %v730_v16  ;;  %v1341_v16 = vld [vmem:[#allocation11 + $0x1b0] sm:$0xff] }
 0x17a   :  { %1669 = vmatpush1.msra.mxu1 %v1423_v24  ;;  %1595 = vmatprep.subr.mxu0 %v1288_v27  ;;  %v1376_v15 = vld [vmem:[#allocation11 + $0x2c8] sm:$0xff]  ;;  %v1367_v27 = vld [vmem:[#allocation11 + $0x280] sm:$0xff] }
 0x17b   :  { %1670 = vmatprep.subr.mxu1 %v1420_v26  ;;  %1596 = vmatpush1.msra.mxu0 %v1287_v29  ;;  %v1372_v21 = vld [vmem:[#allocation11 + $0x2a8] sm:$0xff]  ;;  %v1495_v63 = vld [vmem:[#allocation11 + $0x680] sm:$0xff] }
 0x17c   :  { %1671 = vmatpush1.msra.mxu1 %v1419_v28  ;;  %1597 = vmatprep.subr.mxu0 %v1412_v31  ;;  %v1368_v24 = vld [vmem:[#allocation11 + $0x288] sm:$0xff]  ;;  %v809_v28 = vadd.f32 %v808_v12, %v732_v20  ;;  %v1487_v12 = vld [vmem:[#allocation11 + $0x640] sm:$0xff]  ;;  %v1337_v20 = vld [vmem:[#allocation11 + $0x190] sm:$0xff] }
 0x17d   :  { %1672 = vmatprep.subr.mxu1 %v1416_v30  ;;  %1598 = vmatpush2.msra.mxu0 %v1411_v33  ;;  %v1364_v29 = vld [vmem:[#allocation11 + $0x268] sm:$0xff]  ;;  %v1507_v30 = vld [vmem:[#allocation11 + $0x6e0] sm:$0xff] }
 0x17e   :  { %1673 = vmatpush1.msra.mxu1 %v1415_v32  ;;  %1599 = vmatprep.subr.mxu0 %v1408_v35  ;;  %v1504_v31 = vld [vmem:[#allocation11 + $0x6c8] sm:$0xff] }
 0x17f   :  { %1674 = vmatprep.subr.mxu1 %v1540_v34  ;;  %1600 = vmatpush2.msra.mxu0 %v1407_v38  ;;  %v1492_v2 = vld [vmem:[#allocation11 + $0x668] sm:$0xff] }
 0x180   :  { %1675 = vmatpush2.msra.mxu1 %v1539_v36  ;;  %1601 = vmatprep.subr.mxu0 %v1404_v40  ;;  %v1363_v36 = vld [vmem:[#allocation11 + $0x260] sm:$0xff]  ;;  %v1360_v40 = vld [vmem:[#allocation11 + $0x248] sm:$0xff] }
 0x181   :  { %1676 = vmatprep.subr.mxu1 %v1536_v39  ;;  %1602 = vmatpush2.msra.mxu0 %v1403_v42  ;;  %v1359_v42 = vld [vmem:[#allocation11 + $0x240] sm:$0xff] }
 0x182   :  { %1677 = vmatpush2.msra.mxu1 %v1535_v41  ;;  %1603 = vmatprep.subr.mxu0 %v1400_v44 }
 0x183   :  { %1678 = vmatprep.subr.mxu1 %v1532_v43  ;;  %1604 = vmatpush2.msra.mxu0 %v1399_v47  ;;  %v1503_v43 = vld [vmem:[#allocation11 + $0x6c0] sm:$0xff]  ;;  %v1500_v47 = vld [vmem:[#allocation11 + $0x6a8] sm:$0xff] }
 0x184   :  { %1679 = vmatpush2.msra.mxu1 %v1531_v45  ;;  %1605 = vmatprep.subr.mxu0 %v1396_v49  ;;  %v1356_v45 = vld [vmem:[#allocation11 + $0x228] sm:$0xff] }
 0x185   :  { %1680 = vmatprep.subr.mxu1 %v1528_v48  ;;  %1606 = vmatpush2.msra.mxu0 %v1395_v51  ;;  %v1355_v51 = vld [vmem:[#allocation11 + $0x220] sm:$0xff] }
 0x186   :  { %1681 = vmatpush2.msra.mxu1 %v1527_v50  ;;  %1607 = vmatprep.subr.mxu0 %v1392_v54 }
 0x187   :  { %1682 = vmatprep.subr.mxu1 %v1524_v52  ;;  %1608 = vmatpush2.msra.mxu0 %v1391_v57  ;;  %v1499_v52 = vld [vmem:[#allocation11 + $0x6a0] sm:$0xff]  ;;  %v1496_v57 = vld [vmem:[#allocation11 + $0x688] sm:$0xff] }
 0x188   :  { %1683 = vmatpush2.msra.mxu1 %v1523_v55  ;;  %1609 = vmatprep.subr.mxu0 %v1388_v61  ;;  %v1352_v55 = vld [vmem:[#allocation11 + $0x208] sm:$0xff] }
 0x189   :  { %1684 = vmatprep.subr.mxu1 %v1520_v58  ;;  %1610 = vmatpush2.msra.mxu0 %v1387_v0 }
 0x18a   :  { %1685 = vmatpush2.msra.mxu1 %v1519_v62  ;;  %1611 = vmatprep.subr.mxu0 %v1384_v3  ;;  %v1351_v62 = vld [vmem:[#allocation11 + $0x200] sm:$0xff] }
 0x18b   :  { %v735_v10 = vpop.f32.mrf.mxu0  ;;  %1686 = vmatprep.subr.mxu1 %v1516_v1  ;;  %1612 = vmatpush2.msra.mxu0 %v1383_v6  ;;  %v1350_v1 = vld [vmem:[#allocation11 + $0x1f8] sm:$0xff]  ;;  %v1491_v6 = vld [vmem:[#allocation11 + $0x660] sm:$0xff] }
 0x18c   :  { %1687 = vmatpush2.msra.mxu1 %v1515_v4  ;;  %1613 = vmatprep.subr.mxu0 %v1380_v9  ;;  %v736_v32 = vadd.f32 %v735_v10, %v646_v5  ;;  %v1349_v5 = vld [vmem:[#allocation11 + $0x1f0] sm:$0xff] }
 0x18d   :  { %1688 = vmatprep.subr.mxu1 %v1512_v7  ;;  %v737_v18 = vpop.f32.mrf.mxu0  ;;  %1614 = vmatpush2.msra.mxu0 %v1379_v13  ;;  %v1346_v7 = vld [vmem:[#allocation11 + $0x1d8] sm:$0xff] }
 0x18e   :  { %v812_v19 = vpop.f32.mrf.mxu1  ;;  %1689 = vmatpush2.msra.mxu1 %v1511_v11  ;;  %1615 = vmatprep.subr.mxu0 %v1376_v15  ;;  %v738_v38 = vadd.f32 %v737_v18, %v650_v8  ;;  %v1488_v8 = vld [vmem:[#allocation11 + $0x648] sm:$0xff]  ;;  %v1345_v11 = vld [vmem:[#allocation11 + $0x1d0] sm:$0xff]  ;;  %v1338_v18 = vld [vmem:[#allocation11 + $0x198] sm:$0xff] }
 0x18f   :  { %1690 = vmatprep.subr.mxu1 %v1508_v14  ;;  %1616 = vmatpush2.msra.mxu0 %v1375_v17  ;;  %v813_v48 = vadd.f32 %v812_v19, %v736_v32  ;;  %v1342_v14 = vld [vmem:[#allocation11 + $0x1b8] sm:$0xff]  ;;  %v1484_v15 = vld [vmem:[#allocation11 + $0x628] sm:$0xff]  ;;  %v1321_v32 = vld [vmem:[#allocation11 + $0x110] sm:$0xff] }
 0x190   :  { %v814_v23 = vpop.f32.mrf.mxu1  ;;  %1617 = vmatprep.subr.mxu0 %v1372_v21  ;;  %1691 = vmatpush2.msra.mxu1 %v1507_v30  ;;  %v1334_v21 = vld [vmem:[#allocation11 + $0x178] sm:$0xff]  ;;  %v1325_v30 = vld [vmem:[#allocation11 + $0x130] sm:$0xff] }
 0x191   :  { %1618 = vmatpush2.msra.mxu0 %v1371_v22  ;;  %1692 = vmatprep.subr.mxu1 %v1504_v31  ;;  %v815_v53 = vadd.f32 %v814_v23, %v738_v38  ;;  %v1483_v22 = vld [vmem:[#allocation11 + $0x620] sm:$0xff]  ;;  %v1333_v23 = vld [vmem:[#allocation11 + $0x170] sm:$0xff]  ;;  %v1322_v31 = vld [vmem:[#allocation11 + $0x118] sm:$0xff] }
 0x192   :  { %v883_v26 = vpop.f32.mrf.mxu0  ;;  %1619 = vmatprep.subr.mxu0 %v1368_v24  ;;  %1693 = vmatpush2.msra.mxu1 %v1503_v43  ;;  %v1480_v24 = vld [vmem:[#allocation11 + $0x608] sm:$0xff]  ;;  %v1310_v38 = vld [vmem:[#allocation11 + $0xb8] sm:$0xff]  ;;  %v1301_v43 = vld [vmem:[#allocation11 + $0x70] sm:$0xff] }
 0x193   :  { %v884_v33 = vadd.f32 %v883_v26, %v807_v25  ;;  %1620 = vmatpush2.msra.mxu0 %v1367_v27  ;;  %1694 = vmatprep.subr.mxu1 %v1500_v47  ;;  %v1330_v25 = vld [vmem:[#allocation11 + $0x158] sm:$0xff]  ;;  %v1479_v26 = vld [vmem:[#allocation11 + $0x600] sm:$0xff]  ;;  %v1329_v27 = vld [vmem:[#allocation11 + $0x150] sm:$0xff] }
 0x194   :  { %v960_v34 = vpop.f32.mrf.mxu1  ;;  %v885_v35 = vpop.f32.mrf.mxu0  ;;  %1621 = vmatprep.subr.mxu0 %v1364_v29  ;;  %1695 = vmatpush2.msra.mxu1 %v1499_v52  ;;  %v1326_v29 = vld [vmem:[#allocation11 + $0x138] sm:$0xff]  ;;  %v1413_v52 = vld [vmem:[#allocation11 + $0x3f0] sm:$0xff] }
 0x195   :  { %v886_v39 = vadd.f32 %v885_v35, %v809_v28  ;;  %1622 = vmatpush2.msra.mxu0 %v1363_v36  ;;  %v961_v49 = vadd.f32 %v960_v34, %v884_v33  ;;  %1696 = vmatprep.subr.mxu1 %v1496_v57  ;;  %v1478_v28 = vld [vmem:[#allocation11 + $0x5f8] sm:$0xff]  ;;  %v1317_v34 = vld [vmem:[#allocation11 + $0xf0] sm:$0xff] }
 0x196   :  { %v962_v41 = vpop.f32.mrf.mxu1  ;;  %1623 = vmatprep.subr.mxu0 %v1360_v40  ;;  %1697 = vmatpush2.msra.mxu1 %v1495_v63  ;;  %v1318_v33 = vld [vmem:[#allocation11 + $0xf8] sm:$0xff]  ;;  %v1313_v36 = vld [vmem:[#allocation11 + $0xd0] sm:$0xff] }
 0x197   :  { %v963_v44 = vadd.f32 %v962_v41, %v886_v39  ;;  %1624 = vmatpush2.msra.mxu0 %v1359_v42  ;;  %v3059_v3 = vmax.f32 %v961_v49, 0.0  ;;  %1698 = vmatprep.subr.mxu1 %v1492_v2  ;;  %v1314_v35 = vld [vmem:[#allocation11 + $0xd8] sm:$0xff]  ;;  %v1309_v39 = vld [vmem:[#allocation11 + $0xb0] sm:$0xff] }
 0x198   :  { %v889_v50 = vpop.f32.mrf.mxu0  ;;  %1625 = vmatprep.subr.mxu0 %v1356_v45  ;;  %1699 = vmatpush2.msra.mxu1 %v1491_v6  ;;  %v1306_v40 = vld [vmem:[#allocation11 + $0x98] sm:$0xff]  ;;  %v1305_v41 = vld [vmem:[#allocation11 + $0x90] sm:$0xff] }
 0x199   :  { %v3056_v54 = vmax.f32 %v963_v44, 0.0  ;;  %v890_v58 = vadd.f32 %v889_v50, %v813_v48  ;;  %1626 = vmatpush2.msra.mxu0 %v1355_v51  ;;  %1700 = vmatprep.subr.mxu1 %v1488_v8  ;;  %v1302_v42 = vld [vmem:[#allocation11 + $0x78] sm:$0xff]  ;;  %v1297_v45 = vld [vmem:[#allocation11 + $0x50] sm:$0xff] }
 0x19a   :  { %v891_v61 = vpop.f32.mrf.mxu0  ;;  %1627 = vmatprep.subr.mxu0 %v1352_v55  ;;  %1701 = vmatpush2.msra.mxu1 %v1487_v12  ;;  %v1298_v44 = vld [vmem:[#allocation11 + $0x58] sm:$0xff]  ;;  %v1293_v48 = vld [vmem:[#allocation11 + $0x30] sm:$0xff] }
 0x19b   :  { %v892_v0 = vadd.f32 %v891_v61, %v815_v53  ;;  %1629 = vmatprep.mubr.f32.mxu0 %v3056_v54  ;;  %v966_v4 = vpop.f32.mrf.mxu1  ;;  %1628 = vmatpush2.msra.mxu0 %v1351_v62  ;;  %v1294_v47 = vld [vmem:[#allocation11 + $0x38] sm:$0xff]  ;;  %v1289_v50 = vld [vmem:[#allocation11 + $0x10] sm:$0xff] }
 0x19c   :  { %v967_v9 = vadd.f32 %v966_v4, %v890_v58  ;;  %1719 = vmatprep.subr.mxu0 %v1350_v1  ;;  %1630 = vmatmul.mubr.f32.vlgmr.msra.gmra.mxu0 %v3059_v3  ;;  %v1290_v49 = vld [vmem:[#allocation11 + $0x18] sm:$0xff]  ;;  %v1409_v55 = vld [vmem:[#allocation11 + $0x3d0] sm:$0xff] }
 0x19d   :  { %v968_v10 = vpop.f32.mrf.mxu1  ;;  %1720 = vmatpush1.msra.mxu0 %v1349_v5  ;;  %1702 = vmatprep.subr.mxu1 %v1484_v15  ;;  %v1414_v51 = vld [vmem:[#allocation11 + $0x3f8] sm:$0xff]  ;;  %v1405_v58 = vld [vmem:[#allocation11 + $0x3b0] sm:$0xff] }
 0x19e   :  { %v969_v13 = vadd.f32 %v968_v10, %v892_v0  ;;  %1721 = vmatprep.subr.mxu0 %v1346_v7  ;;  %v3064_v19 = vmax.f32 %v967_v9, 0.0  ;;  %1703 = vmatpush2.msra.mxu1 %v1483_v22  ;;  %v1410_v53 = vld [vmem:[#allocation11 + $0x3d8] sm:$0xff]  ;;  %v1401_v62 = vld [vmem:[#allocation11 + $0x390] sm:$0xff] }
 0x19f   :  { %1722 = vmatpush1.msra.mxu0 %v1345_v11  ;;  %1704 = vmatprep.subr.mxu1 %v1480_v24  ;;  %v1406_v57 = vld [vmem:[#allocation11 + $0x3b8] sm:$0xff]  ;;  %v1397_v0 = vld [vmem:[#allocation11 + $0x370] sm:$0xff] }
 0x1a0   :  { %v3062_v17 = vmax.f32 %v969_v13, 0.0  ;;  %1723 = vmatprep.subr.mxu0 %v1342_v14  ;;  %1705 = vmatpush2.msra.mxu1 %v1479_v26  ;;  %v1402_v61 = vld [vmem:[#allocation11 + $0x398] sm:$0xff]  ;;  %v1393_v2 = vld [vmem:[#allocation11 + $0x350] sm:$0xff]  ;;  %v653_v26 = vsub.s32 2, %v3043_v46 }
 0x1a1   :  { %1724 = vmatpush1.msra.mxu0 %v1341_v16  ;;  %1796 = vmatprep.subr.mxu1 %v1478_v28  ;;  %v1398_v63 = vld [vmem:[#allocation11 + $0x378] sm:$0xff]  ;;  %v1389_v5 = vld [vmem:[#allocation11 + $0x330] sm:$0xff] }
 0x1a2   :  { %1635 = vmatprep.mubr.f32.mxu0 %v3062_v17  ;;  %1725 = vmatprep.subr.mxu0 %v1338_v18  ;;  %v1394_v1 = vld [vmem:[#allocation11 + $0x358] sm:$0xff]  ;;  %v1385_v7 = vld [vmem:[#allocation11 + $0x310] sm:$0xff] }
 0x1a3   :  { %1636 = vmatmul.mubr.f32.gmra.mxu0 %v3064_v19  ;;  %v1390_v4 = vld [vmem:[#allocation11 + $0x338] sm:$0xff]  ;;  %v1381_v9 = vld [vmem:[#allocation11 + $0x2f0] sm:$0xff] }
 0x1a4   :  { %1783 = vmatprep.mubr.f32.mxu0 %v3056_v54  ;;  %1726 = vmatpush1.msra.mxu0 %v1337_v20  ;;  %v1386_v6 = vld [vmem:[#allocation11 + $0x318] sm:$0xff]  ;;  %v1377_v11 = vld [vmem:[#allocation11 + $0x2d0] sm:$0xff] }
 0x1a5   :  { %1727 = vmatprep.subr.mxu0 %v1334_v21  ;;  %v1382_v8 = vld [vmem:[#allocation11 + $0x2f8] sm:$0xff]  ;;  %v1373_v13 = vld [vmem:[#allocation11 + $0x2b0] sm:$0xff] }
 0x1a6   :  { %1728 = vmatpush1.msra.mxu0 %v1333_v23  ;;  %v1378_v10 = vld [vmem:[#allocation11 + $0x2d8] sm:$0xff]  ;;  %v1369_v15 = vld [vmem:[#allocation11 + $0x290] sm:$0xff] }
 0x1a7   :  { %1729 = vmatprep.subr.mxu0 %v1330_v25  ;;  %v1374_v12 = vld [vmem:[#allocation11 + $0x2b8] sm:$0xff]  ;;  %v1365_v18 = vld [vmem:[#allocation11 + $0x270] sm:$0xff] }
 0x1a8   :  { %1730 = vmatpush1.msra.mxu0 %v1329_v27  ;;  %v1370_v14 = vld [vmem:[#allocation11 + $0x298] sm:$0xff]  ;;  %v1361_v21 = vld [vmem:[#allocation11 + $0x250] sm:$0xff] }
 0x1a9   :  { %1731 = vmatprep.subr.mxu0 %v1326_v29  ;;  %v1366_v16 = vld [vmem:[#allocation11 + $0x278] sm:$0xff]  ;;  %v1357_v23 = vld [vmem:[#allocation11 + $0x230] sm:$0xff]  ;;  %v657_v29 = vsub.s32 3, %v3043_v46 }
 0x1aa   :  { %1732 = vmatpush1.msra.mxu0 %v1325_v30  ;;  %v1362_v20 = vld [vmem:[#allocation11 + $0x258] sm:$0xff]  ;;  %v1353_v25 = vld [vmem:[#allocation11 + $0x210] sm:$0xff]  ;;  %v654_v30 = vrot.slane %v3048_v59, %v653_v26 }
 0x1ab   :  { %1733 = vmatprep.subr.mxu0 %v1322_v31  ;;  %v1358_v22 = vld [vmem:[#allocation11 + $0x238] sm:$0xff] }
 0x1ac   :  { %1734 = vmatpush1.msra.mxu0 %v1321_v32  ;;  %v1354_v24 = vld [vmem:[#allocation11 + $0x218] sm:$0xff]  ;;  %v658_v32 = vrot.slane %v3048_v59, %v657_v29 }
 0x1ad   :  { %1735 = vmatprep.subr.mxu0 %v1318_v33 }
 0x1ae   :  { %1736 = vmatpush1.msra.mxu0 %v1317_v34 }
 0x1af   :  { %1737 = vmatprep.subr.mxu0 %v1314_v35 }
 0x1b0   :  { %1738 = vmatpush1.msra.mxu0 %v1313_v36 }
 0x1b1   :  { %1739 = vmatprep.subr.mxu0 %v1310_v38 }
 0x1b2   :  { %1740 = vmatpush1.msra.mxu0 %v1309_v39 }
 0x1b3   :  { %1741 = vmatprep.subr.mxu0 %v1306_v40 }
 0x1b4   :  { %1742 = vmatpush1.msra.mxu0 %v1305_v41 }
 0x1b5   :  { %1743 = vmatprep.subr.mxu0 %v1302_v42 }
 0x1b6   :  { %1744 = vmatpush1.msra.mxu0 %v1301_v43 }
 0x1b7   :  { %1745 = vmatprep.subr.mxu0 %v1298_v44 }
 0x1b8   :  { %1746 = vmatpush1.msra.mxu0 %v1297_v45 }
 0x1b9   :  { %1747 = vmatprep.subr.mxu0 %v1294_v47 }
 0x1ba   :  { %1748 = vmatpush1.msra.mxu0 %v1293_v48 }
 0x1bb   :  { %1749 = vmatprep.subr.mxu0 %v1290_v49 }
 0x1bc   :  { %1750 = vmatpush1.msra.mxu0 %v1289_v50 }
 0x1bd   :  { %1751 = vmatprep.subr.mxu0 %v1414_v51 }
 0x1be   :  { %1752 = vmatpush2.msra.mxu0 %v1413_v52 }
 0x1bf   :  { %1753 = vmatprep.subr.mxu0 %v1410_v53 }
 0x1c0   :  { %1754 = vmatpush2.msra.mxu0 %v1409_v55 }
 0x1c1   :  { %1755 = vmatprep.subr.mxu0 %v1406_v57 }
 0x1c2   :  { %1756 = vmatpush2.msra.mxu0 %v1405_v58 }
 0x1c3   :  { %1757 = vmatprep.subr.mxu0 %v1402_v61 }
 0x1c4   :  { %1758 = vmatpush2.msra.mxu0 %v1401_v62 }
 0x1c5   :  { %1759 = vmatprep.subr.mxu0 %v1398_v63 }
 0x1c6   :  { %1760 = vmatpush2.msra.mxu0 %v1397_v0 }
 0x1c7   :  { %1761 = vmatprep.subr.mxu0 %v1394_v1 }
 0x1c8   :  { %1762 = vmatpush2.msra.mxu0 %v1393_v2 }
 0x1c9   :  { %1763 = vmatprep.subr.mxu0 %v1390_v4 }
 0x1ca   :  { %1764 = vmatpush2.msra.mxu0 %v1389_v5  ;;  %v1477_v5 = vld [vmem:[#allocation11 + $0x5f0] sm:$0xff] }
 0x1cb   :  { %1765 = vmatprep.subr.mxu0 %v1386_v6 }
 0x1cc   :  { %1766 = vmatpush2.msra.mxu0 %v1385_v7  ;;  %v1474_v7 = vld [vmem:[#allocation11 + $0x5d8] sm:$0xff] }
 0x1cd   :  { %1767 = vmatprep.subr.mxu0 %v1382_v8  ;;  %v1473_v8 = vld [vmem:[#allocation11 + $0x5d0] sm:$0xff] }
 0x1ce   :  { %1768 = vmatpush2.msra.mxu0 %v1381_v9 }
 0x1cf   :  { %1769 = vmatprep.subr.mxu0 %v1378_v10  ;;  %v1470_v10 = vld [vmem:[#allocation11 + $0x5b8] sm:$0xff] }
 0x1d0   :  { %1770 = vmatpush2.msra.mxu0 %v1377_v11 }
 0x1d1   :  { %1771 = vmatprep.subr.mxu0 %v1374_v12  ;;  %v1469_v12 = vld [vmem:[#allocation11 + $0x5b0] sm:$0xff] }
 0x1d2   :  { %1772 = vmatpush2.msra.mxu0 %v1373_v13  ;;  %v1466_v13 = vld [vmem:[#allocation11 + $0x598] sm:$0xff] }
 0x1d3   :  { %1773 = vmatprep.subr.mxu0 %v1370_v14  ;;  %v1465_v14 = vld [vmem:[#allocation11 + $0x590] sm:$0xff] }
 0x1d4   :  { %1774 = vmatpush2.msra.mxu0 %v1369_v15  ;;  %v1462_v15 = vld [vmem:[#allocation11 + $0x578] sm:$0xff] }
 0x1d5   :  { %1775 = vmatprep.subr.mxu0 %v1366_v16  ;;  %v1461_v16 = vld [vmem:[#allocation11 + $0x570] sm:$0xff] }
 0x1d6   :  { %1776 = vmatpush2.msra.mxu0 %v1365_v18  ;;  %v1037_v27 = vpop.f32.mrf.mxu0  ;;  %v1458_v18 = vld [vmem:[#allocation11 + $0x558] sm:$0xff] }
 0x1d7   :  { %1777 = vmatprep.subr.mxu0 %v1362_v20  ;;  %v1038_v35 = vadd.f32 %v1037_v27, %v654_v30  ;;  %v1457_v20 = vld [vmem:[#allocation11 + $0x550] sm:$0xff] }
 0x1d8   :  { %1778 = vmatpush2.msra.mxu0 %v1361_v21  ;;  %v1114_v28 = vpop.f32.mrf.mxu1  ;;  %v1039_v31 = vpop.f32.mrf.mxu0  ;;  %v1454_v21 = vld [vmem:[#allocation11 + $0x538] sm:$0xff]  ;;  %v1445_v27 = vld [vmem:[#allocation11 + $0x4f0] sm:$0xff] }
 0x1d9   :  { %1779 = vmatprep.subr.mxu0 %v1358_v22  ;;  %v1040_v38 = vadd.f32 %v1039_v31, %v658_v32  ;;  %v1115_v41 = vadd.f32 %v1114_v28, %v1038_v35  ;;  %v1453_v22 = vld [vmem:[#allocation11 + $0x530] sm:$0xff]  ;;  %v1442_v28 = vld [vmem:[#allocation11 + $0x4d8] sm:$0xff] }
 0x1da   :  { %1780 = vmatpush2.msra.mxu0 %v1357_v23  ;;  %v1116_v33 = vpop.f32.mrf.mxu1  ;;  %v1450_v23 = vld [vmem:[#allocation11 + $0x518] sm:$0xff] }
 0x1db   :  { %1781 = vmatprep.subr.mxu0 %v1354_v24  ;;  %v1117_v45 = vadd.f32 %v1116_v33, %v1040_v38  ;;  %v1449_v24 = vld [vmem:[#allocation11 + $0x510] sm:$0xff]  ;;  %v1438_v31 = vld [vmem:[#allocation11 + $0x4b8] sm:$0xff] }
 0x1dc   :  { %1782 = vmatpush2.msra.mxu0 %v1353_v25  ;;  %v1446_v25 = vld [vmem:[#allocation11 + $0x4f8] sm:$0xff] }
 0x1dd   :  { %1784 = vmatmul.mubr.f32.vlgmr.msra.gmra.mxu0 %v3059_v3  ;;  %v1434_v33 = vld [vmem:[#allocation11 + $0x498] sm:$0xff] }
 0x1de   :  { %1789 = vmatprep.mubr.f32.mxu0 %v3062_v17  ;;  %v1430_v35 = vld [vmem:[#allocation11 + $0x478] sm:$0xff] }
 0x1df   :  { %v1426_v38 = vld [vmem:[#allocation11 + $0x458] sm:$0xff] }
 0x1e1   :  { %1790 = vmatmul.mubr.f32.gmra.mxu0 %v3064_v19 }
 0x212   :  { %v1043_v34 = vpop.f32.mrf.mxu0 }
 0x213   :  { %v1044_v42 = vadd.f32 %v1043_v34, %v654_v30  ;;  %v1441_v30 = vld [vmem:[#allocation11 + $0x4d0] sm:$0xff] }
 0x214   :  { %v1045_v40 = vpop.f32.mrf.mxu0  ;;  %v1433_v34 = vld [vmem:[#allocation11 + $0x490] sm:$0xff] }
 0x215   :  { %v1120_v36 = vpop.f32.mrf.mxu1  ;;  %v1046_v47 = vadd.f32 %v1045_v40, %v658_v32  ;;  %v1437_v32 = vld [vmem:[#allocation11 + $0x4b0] sm:$0xff]  ;;  %v1422_v40 = vld [vmem:[#allocation11 + $0x438] sm:$0xff] }
 0x216   :  { %v1121_v51 = vadd.f32 %v1120_v36, %v1044_v42  ;;  %v1429_v36 = vld [vmem:[#allocation11 + $0x470] sm:$0xff]  ;;  %v1418_v42 = vld [vmem:[#allocation11 + $0x418] sm:$0xff] }
 0x217   :  { %v1122_v39 = vpop.f32.mrf.mxu1 }
 0x218   :  { %v1123_v57 = vadd.f32 %v1122_v39, %v1046_v47  ;;  %v1425_v39 = vld [vmem:[#allocation11 + $0x450] sm:$0xff]  ;;  %v1538_v47 = vld [vmem:[#allocation11 + $0x7d8] sm:$0xff] }
 0x21a   :  { %v1191_v43 = vpop.f32.mrf.mxu0 }
 0x21b   :  { %v1268_v44 = vpop.f32.mrf.mxu1  ;;  %v1192_v48 = vadd.f32 %v1191_v43, %v1115_v41  ;;  %v1421_v41 = vld [vmem:[#allocation11 + $0x430] sm:$0xff] }
 0x21c   :  { %v1193_v49 = vpop.f32.mrf.mxu0  ;;  %v1417_v43 = vld [vmem:[#allocation11 + $0x410] sm:$0xff] }
 0x21d   :  { %v1270_v50 = vpop.f32.mrf.mxu1  ;;  %v1194_v52 = vadd.f32 %v1193_v49, %v1117_v45  ;;  %v1269_v53 = vadd.f32 %v1268_v44, %v1192_v48  ;;  %v1542_v44 = vld [vmem:[#allocation11 + $0x7f8] sm:$0xff]  ;;  %v1541_v45 = vld [vmem:[#allocation11 + $0x7f0] sm:$0xff] }
 0x21e   :  { %v1197_v59 = vpop.f32.mrf.mxu0  ;;  %v1537_v48 = vld [vmem:[#allocation11 + $0x7d0] sm:$0xff]  ;;  %v1534_v49 = vld [vmem:[#allocation11 + $0x7b8] sm:$0xff] }
 0x21f   :  { %v1274_v55 = vpop.f32.mrf.mxu1  ;;  %v1271_v58 = vadd.f32 %v1270_v50, %v1194_v52  ;;  %v1198_v61 = vadd.f32 %v1197_v59, %v1121_v51  ;;  %v3082_v2 = vmax.f32 %v1269_v53, 0.0  ;;  %v1533_v50 = vld [vmem:[#allocation11 + $0x7b0] sm:$0xff]  ;;  %v1530_v51 = vld [vmem:[#allocation11 + $0x798] sm:$0xff] }
 0x220   :  { %v1199_v62 = vpop.f32.mrf.mxu0  ;;  %v1529_v52 = vld [vmem:[#allocation11 + $0x790] sm:$0xff]  ;;  %v1526_v53 = vld [vmem:[#allocation11 + $0x778] sm:$0xff] }
 0x221   :  { %v1276_v63 = vpop.f32.mrf.mxu1  ;;  %v3080_v0 = vmax.f32 %v1271_v58, 0.0  ;;  %v1200_v1 = vadd.f32 %v1199_v62, %v1123_v57  ;;  %v1275_v4 = vadd.f32 %v1274_v55, %v1198_v61  ;;  %v1525_v59 = vld [vmem:[#allocation11 + $0x770] sm:$0xff]  ;;  %v1522_v55 = vld [vmem:[#allocation11 + $0x758] sm:$0xff] }
 0x222   :  { %v1521_v57 = vld [vmem:[#allocation11 + $0x750] sm:$0xff]  ;;  %v1518_v58 = vld [vmem:[#allocation11 + $0x738] sm:$0xff] }
 0x223   :  { %v1277_v6 = vadd.f32 %v1276_v63, %v1200_v1  ;;  %1706 = vmatprep.mubr.f32.mxu1 %v3080_v0  ;;  %v3088_v11 = vmax.f32 %v1275_v4, 0.0  ;;  %v1517_v61 = vld [vmem:[#allocation11 + $0x730] sm:$0xff]  ;;  %v1514_v62 = vld [vmem:[#allocation11 + $0x718] sm:$0xff] }
 0x224   :  { %1707 = vmatmul.mubr.f32.vlgmr.msra.gmra.mxu1 %v3082_v2  ;;  %v1513_v63 = vld [vmem:[#allocation11 + $0x710] sm:$0xff]  ;;  %v1510_v1 = vld [vmem:[#allocation11 + $0x6f8] sm:$0xff] }
 0x225   :  { %v3086_v9 = vmax.f32 %v1277_v6, 0.0  ;;  %1797 = vmatpush1.msra.mxu1 %v1477_v5  ;;  %v1509_v4 = vld [vmem:[#allocation11 + $0x6f0] sm:$0xff]  ;;  %v1506_v5 = vld [vmem:[#allocation11 + $0x6d8] sm:$0xff] }
 0x226   :  { %1798 = vmatprep.subr.mxu1 %v1474_v7  ;;  %v1505_v6 = vld [vmem:[#allocation11 + $0x6d0] sm:$0xff]  ;;  %v1502_v7 = vld [vmem:[#allocation11 + $0x6b8] sm:$0xff] }
 0x227   :  { %1799 = vmatpush1.msra.mxu1 %v1473_v8  ;;  %1712 = vmatprep.mubr.f32.mxu1 %v3086_v9  ;;  %v1501_v8 = vld [vmem:[#allocation11 + $0x6b0] sm:$0xff] }
 0x228   :  { %1800 = vmatprep.subr.mxu1 %v1470_v10  ;;  %1713 = vmatmul.mubr.f32.gmra.mxu1 %v3088_v11  ;;  %v1498_v10 = vld [vmem:[#allocation11 + $0x698] sm:$0xff] }
 0x229   :  { %1801 = vmatpush1.msra.mxu1 %v1469_v12  ;;  %1860 = vmatprep.mubr.f32.mxu1 %v3080_v0  ;;  %v1497_v12 = vld [vmem:[#allocation11 + $0x690] sm:$0xff] }
 0x22a   :  { %1802 = vmatprep.subr.mxu1 %v1466_v13  ;;  %v1494_v13 = vld [vmem:[#allocation11 + $0x678] sm:$0xff] }
 0x22b   :  { %1803 = vmatpush1.msra.mxu1 %v1465_v14  ;;  %v1493_v14 = vld [vmem:[#allocation11 + $0x670] sm:$0xff] }
 0x22c   :  { %1804 = vmatprep.subr.mxu1 %v1462_v15  ;;  %v1490_v15 = vld [vmem:[#allocation11 + $0x658] sm:$0xff] }
 0x22d   :  { %1805 = vmatpush1.msra.mxu1 %v1461_v16  ;;  %v1489_v16 = vld [vmem:[#allocation11 + $0x650] sm:$0xff] }
 0x22e   :  { %1806 = vmatprep.subr.mxu1 %v1458_v18  ;;  %v1486_v18 = vld [vmem:[#allocation11 + $0x638] sm:$0xff] }
 0x22f   :  { %1807 = vmatpush1.msra.mxu1 %v1457_v20  ;;  %v1485_v20 = vld [vmem:[#allocation11 + $0x630] sm:$0xff] }
 0x230   :  { %1808 = vmatprep.subr.mxu1 %v1454_v21  ;;  %v1482_v21 = vld [vmem:[#allocation11 + $0x618] sm:$0xff] }
 0x231   :  { %1809 = vmatpush1.msra.mxu1 %v1453_v22  ;;  %v1481_v22 = vld [vmem:[#allocation11 + $0x610] sm:$0xff] }
 0x232   :  { %1810 = vmatprep.subr.mxu1 %v1450_v23  ;;  %v1936_v23 = vld [vmem:[%s3270_s5 + $0xf8] sm:$0xff] }
 0x233   :  { %1811 = vmatpush1.msra.mxu1 %v1449_v24  ;;  %2715 = vmatprep.subr.mxu0 %v1936_v23  ;;  %v1933_v24 = vld [vmem:[%s3270_s5 + $0xe0] sm:$0xff] }
 0x234   :  { %1812 = vmatprep.subr.mxu1 %v1446_v25  ;;  %v1917_v25 = vld [vmem:[%s3270_s5 + $0x60] sm:$0xff] }
 0x235   :  { %1813 = vmatpush1.msra.mxu1 %v1445_v27  ;;  %v1932_v27 = vld [vmem:[%s3270_s5 + $0xd8] sm:$0xff] }
 0x236   :  { %1814 = vmatprep.subr.mxu1 %v1442_v28  ;;  %v1916_v28 = vld [vmem:[%s3270_s5 + $0x58] sm:$0xff] }
 0x237   :  { %1815 = vmatpush1.msra.mxu1 %v1441_v30  ;;  %v1931_v30 = vld [vmem:[%s3270_s5 + $0xd0] sm:$0xff] }
 0x238   :  { %1816 = vmatprep.subr.mxu1 %v1438_v31  ;;  %v1915_v31 = vld [vmem:[%s3270_s5 + $0x50] sm:$0xff] }
 0x239   :  { %1817 = vmatpush1.msra.mxu1 %v1437_v32  ;;  %v1930_v32 = vld [vmem:[%s3270_s5 + $0xc8] sm:$0xff] }
 0x23a   :  { %1818 = vmatprep.subr.mxu1 %v1434_v33  ;;  %v1914_v33 = vld [vmem:[%s3270_s5 + $0x48] sm:$0xff] }
 0x23b   :  { %1819 = vmatpush1.msra.mxu1 %v1433_v34  ;;  %v1929_v34 = vld [vmem:[%s3270_s5 + $0xc0] sm:$0xff] }
 0x23c   :  { %1820 = vmatprep.subr.mxu1 %v1430_v35  ;;  %v1913_v35 = vld [vmem:[%s3270_s5 + $0x40] sm:$0xff] }
 0x23d   :  { %1821 = vmatpush1.msra.mxu1 %v1429_v36  ;;  %v1928_v36 = vld [vmem:[%s3270_s5 + $0xb8] sm:$0xff] }
 0x23e   :  { %1822 = vmatprep.subr.mxu1 %v1426_v38  ;;  %v1912_v38 = vld [vmem:[%s3270_s5 + $0x38] sm:$0xff] }
 0x23f   :  { %1823 = vmatpush1.msra.mxu1 %v1425_v39  ;;  %v1927_v39 = vld [vmem:[%s3270_s5 + $0xb0] sm:$0xff] }
 0x240   :  { %1824 = vmatprep.subr.mxu1 %v1422_v40  ;;  %v1911_v40 = vld [vmem:[%s3270_s5 + $0x30] sm:$0xff] }
 0x241   :  { %1825 = vmatpush1.msra.mxu1 %v1421_v41  ;;  %v1926_v41 = vld [vmem:[%s3270_s5 + $0xa8] sm:$0xff] }
 0x242   :  { %1826 = vmatprep.subr.mxu1 %v1418_v42  ;;  %v1910_v42 = vld [vmem:[%s3270_s5 + $0x28] sm:$0xff] }
 0x243   :  { %1827 = vmatpush1.msra.mxu1 %v1417_v43  ;;  %v1925_v43 = vld [vmem:[%s3270_s5 + $0xa0] sm:$0xff] }
 0x244   :  { %1828 = vmatprep.subr.mxu1 %v1542_v44  ;;  %v1909_v44 = vld [vmem:[%s3270_s5 + $0x20] sm:$0xff] }
 0x245   :  { %1829 = vmatpush2.msra.mxu1 %v1541_v45  ;;  %v1924_v45 = vld [vmem:[%s3270_s5 + $0x98] sm:$0xff] }
 0x246   :  { %1830 = vmatprep.subr.mxu1 %v1538_v47  ;;  %v1908_v47 = vld [vmem:[%s3270_s5 + $0x18] sm:$0xff] }
 0x247   :  { %1831 = vmatpush2.msra.mxu1 %v1537_v48  ;;  %v1923_v48 = vld [vmem:[%s3270_s5 + $0x90] sm:$0xff] }
 0x248   :  { %1832 = vmatprep.subr.mxu1 %v1534_v49  ;;  %v1907_v49 = vld [vmem:[%s3270_s5 + $0x10] sm:$0xff] }
 0x249   :  { %1833 = vmatpush2.msra.mxu1 %v1533_v50  ;;  %v1922_v50 = vld [vmem:[%s3270_s5 + $0x88] sm:$0xff] }
 0x24a   :  { %1834 = vmatprep.subr.mxu1 %v1530_v51  ;;  %v1906_v51 = vld [vmem:[%s3270_s5 + $0x8] sm:$0xff] }
 0x24b   :  { %1835 = vmatpush2.msra.mxu1 %v1529_v52  ;;  %v1921_v52 = vld [vmem:[%s3270_s5 + $0x80] sm:$0xff] }
 0x24c   :  { %1836 = vmatprep.subr.mxu1 %v1526_v53  ;;  %v1905_v53 = vld [vmem:[%s3270_s5] sm:$0xff] }
 0x24d   :  { %1837 = vmatpush2.msra.mxu1 %v1525_v59 }
 0x24e   :  { %1838 = vmatprep.subr.mxu1 %v1522_v55 }
 0x24f   :  { %1839 = vmatpush2.msra.mxu1 %v1521_v57 }
 0x250   :  { %1840 = vmatprep.subr.mxu1 %v1518_v58 }
 0x251   :  { %1841 = vmatpush2.msra.mxu1 %v1517_v61 }
 0x252   :  { %1842 = vmatprep.subr.mxu1 %v1514_v62 }
 0x253   :  { %1843 = vmatpush2.msra.mxu1 %v1513_v63 }
 0x254   :  { %1844 = vmatprep.subr.mxu1 %v1510_v1  ;;  %v1543_v1 = vld [vmem:[#allocation13] sm:$0xf] }
 0x255   :  { %1845 = vmatpush2.msra.mxu1 %v1509_v4 }
 0x256   :  { %1846 = vmatprep.subr.mxu1 %v1506_v5 }
 0x257   :  { %1847 = vmatpush2.msra.mxu1 %v1505_v6  ;;  %v1556_v6 = vrot.slane %v1543_v1, %v653_v26 }
 0x258   :  { %1848 = vmatprep.subr.mxu1 %v1502_v7  ;;  %v1560_v7 = vrot.slane %v1543_v1, %v657_v29 }
 0x259   :  { %1849 = vmatpush2.msra.mxu1 %v1501_v8 }
 0x25a   :  { %1850 = vmatprep.subr.mxu1 %v1498_v10 }
 0x25b   :  { %1851 = vmatpush2.msra.mxu1 %v1497_v12 }
 0x25c   :  { %1852 = vmatprep.subr.mxu1 %v1494_v13  ;;  %v1631_v59 = vpop.f32.mrf.mxu0 }
 0x25d   :  { %1853 = vmatpush2.msra.mxu1 %v1493_v14 }
 0x25e   :  { %1854 = vmatprep.subr.mxu1 %v1490_v15  ;;  %v1633_v55 = vpop.f32.mrf.mxu0 }
 0x25f   :  { %1855 = vmatpush2.msra.mxu1 %v1489_v16 }
 0x260   :  { %1856 = vmatprep.subr.mxu1 %v1486_v18 }
 0x261   :  { %1857 = vmatpush2.msra.mxu1 %v1485_v20 }
 0x262   :  { %1858 = vmatprep.subr.mxu1 %v1482_v21 }
 0x263   :  { %1859 = vmatpush2.msra.mxu1 %v1481_v22  ;;  %v1637_v57 = vpop.f32.mrf.mxu0 }
 0x264   :  { %1861 = vmatmul.mubr.f32.vlgmr.msra.gmra.mxu1 %v3082_v2  ;;  %2154 = vmatprep.subr.mxu1 %v3062_v17  ;;  %v1920_v17 = vld [vmem:[%s3270_s5 + $0x78] sm:$0xff] }
 0x265   :  { %1866 = vmatprep.mubr.f32.mxu1 %v3086_v9  ;;  %2155 = vmatpush1.msra.mxu1 %v3064_v19  ;;  %v1934_v19 = vld [vmem:[%s3270_s5 + $0xe8] sm:$0xff]  ;;  %v1639_v61 = vpop.f32.mrf.mxu0 }
 0x266   :  { %2156 = vmatprep.subr.mxu1 %v3056_v54  ;;  %2716 = vmatpush3.msra.mxu0 %v1920_v17  ;;  %v1935_v54 = vld [vmem:[%s3270_s5 + $0xf0] sm:$0xff] }
 0x267   :  { %2157 = vmatpush1.msra.mxu1 %v3059_v3  ;;  %2717 = vmatprep.subr.mxu0 %v1935_v54  ;;  %v1919_v3 = vld [vmem:[%s3270_s5 + $0x70] sm:$0xff] }
 0x268   :  { %1867 = vmatmul.mubr.f32.gmra.mxu1 %v3088_v11  ;;  %2225 = vmatprep.subr.mxu1 %v3086_v9  ;;  %v1918_v9 = vld [vmem:[%s3270_s5 + $0x68] sm:$0xff] }
 0x269   :  { %2718 = vmatpush3.msra.mxu0 %v1919_v3 }
 0x26a   :  { %2719 = vmatprep.subr.mxu0 %v1934_v19 }
 0x26b   :  { %2720 = vmatpush3.msra.mxu0 %v1918_v9 }
 0x26c   :  { %2721 = vmatprep.subr.mxu0 %v1933_v24  ;;  %v1552_v24 = vrot.slane %v1543_v1, %v649_v60 }
 0x26d   :  { %2722 = vmatpush3.msra.mxu0 %v1917_v25  ;;  %v1548_v25 = vrot.slane %v1543_v1, %v3046_v56 }
 0x26e   :  { %2723 = vmatprep.subr.mxu0 %v1932_v27  ;;  %v1634_v27 = vadd.f32 %v1633_v55, %v1552_v24 }
 0x26f   :  { %2724 = vmatpush3.msra.mxu0 %v1916_v28 }
 0x270   :  { %2725 = vmatprep.subr.mxu0 %v1931_v30 }
 0x271   :  { %2726 = vmatpush3.msra.mxu0 %v1915_v31  ;;  %v1632_v31 = vadd.f32 %v1631_v59, %v1548_v25 }
 0x272   :  { %2727 = vmatprep.subr.mxu0 %v1930_v32  ;;  %v1640_v32 = vadd.f32 %v1639_v61, %v1552_v24  ;;  %v2976_v61 = vmov 0.0  }
 0x273   :  { %2728 = vmatpush3.msra.mxu0 %v1914_v33  ;;  %111 = vst.msk [vmem:[#allocation3] sm:$0x1] %vm109_vm0, %v2976_v61  ;;  %2190 = vmatprep.mubr.f32.mxu1 %v2976_v61 }
 0x274   :  { %2729 = vmatprep.subr.mxu0 %v1929_v34 }
 0x275   :  { %2730 = vmatpush3.msra.mxu0 %v1913_v35 }
 0x276   :  { %2731 = vmatprep.subr.mxu0 %v1928_v36 }
 0x277   :  { %2732 = vmatpush3.msra.mxu0 %v1912_v38 }
 0x278   :  { %2733 = vmatprep.subr.mxu0 %v1927_v39 }
 0x279   :  { %2734 = vmatpush3.msra.mxu0 %v1911_v40  ;;  %v1638_v40 = vadd.f32 %v1637_v57, %v1548_v25 }
 0x27a   :  { %2735 = vmatprep.subr.mxu0 %v1926_v41 }
 0x27b   :  { %2736 = vmatpush3.msra.mxu0 %v1910_v42 }
 0x27c   :  { %2737 = vmatprep.subr.mxu0 %v1925_v43 }
 0x27d   :  { %2738 = vmatpush3.msra.mxu0 %v1909_v44 }
 0x27e   :  { %2739 = vmatprep.subr.mxu0 %v1924_v45 }
 0x27f   :  { %2740 = vmatpush3.msra.mxu0 %v1908_v47 }
 0x280   :  { %2741 = vmatprep.subr.mxu0 %v1923_v48 }
 0x281   :  { %2742 = vmatpush3.msra.mxu0 %v1907_v49 }
 0x282   :  { %2743 = vmatprep.subr.mxu0 %v1922_v50 }
 0x283   :  { %2744 = vmatpush3.msra.mxu0 %v1906_v51 }
 0x284   :  { %2745 = vmatprep.subr.mxu0 %v1921_v52 }
 0x285   :  { %2746 = vmatpush3.msra.mxu0 %v1905_v53 }
 0x29d   :  { %v1785_v62 = vpop.f32.mrf.mxu0 }
 0x29e   :  { %v1786_v12 = vadd.f32 %v1785_v62, %v1556_v6 }
 0x29f   :  { %v1787_v4 = vpop.f32.mrf.mxu0 }
 0x2a0   :  { %v1788_v14 = vadd.f32 %v1787_v4, %v1560_v7 }
 0x2a1   :  { %v1791_v8 = vpop.f32.mrf.mxu0 }
 0x2a2   :  { %v1792_v20 = vadd.f32 %v1791_v8, %v1556_v6 }
 0x2a3   :  { %v1793_v16 = vpop.f32.mrf.mxu0 }
 0x2a4   :  { %v1794_v17 = vadd.f32 %v1793_v16, %v1560_v7 }
 0x2e4   :  { %v1708_v58 = vpop.f32.mrf.mxu1 }
 0x2e5   :  { %v1709_v35 = vadd.f32 %v1708_v58, %v1632_v31  ;;  %v2975_v58 = vmov -1e+30  }
 0x2e6   :  { %v1710_v63 = vpop.f32.mrf.mxu1  ;;  %110 = vst.msk [vmem:[#allocation2] sm:$0x1] %vm109_vm0, %v2975_v58 }
 0x2e7   :  { %v1711_v28 = vadd.f32 %v1710_v63, %v1634_v27  ;;  %v2698_v63 = vld [vmem:[#allocation14] ss:$0 sm:$0xff] }
 0x2e8   :  { %v1714_v5 = vpop.f32.mrf.mxu1 }
 0x2e9   :  { %v1715_v42 = vadd.f32 %v1714_v5, %v1638_v40 }
 0x2ea   :  { %v1716_v10 = vpop.f32.mrf.mxu1 }
 0x2eb   :  { %v1717_v36 = vadd.f32 %v1716_v10, %v1640_v32 }
 0x324   :  { %v1862_v13 = vpop.f32.mrf.mxu1 }
 0x325   :  { %v1863_v15 = vadd.f32 %v1862_v13, %v1786_v12 }
 0x326   :  { %v1864_v18 = vpop.f32.mrf.mxu1 }
 0x327   :  { %v2694_v21 = vmul.f32 -1.442695, %v1863_v15  ;;  %v1865_v22 = vadd.f32 %v1864_v18, %v1788_v14 }
 0x328   :  { %v1868_v23 = vpop.f32.mrf.mxu1 }
 0x329   :  { %2767 = vpow2.f32 %v2694_v21  ;;  %v2695_v54 = vmul.f32 -1.442695, %v1865_v22  ;;  %v1869_v3 = vadd.f32 %v1868_v23, %v1792_v20  ;;  %v2046_v22 = vld [vmem:[#allocation2] sm:$0x1] }
 0x32a   :  { %v1870_v26 = vpop.f32.mrf.mxu1 }
 0x32b   :  { %2769 = vpow2.f32 %v2695_v54  ;;  %v2696_v19 = vmul.f32 -1.442695, %v1869_v3  ;;  %v1871_v29 = vadd.f32 %v1870_v26, %v1794_v17 }
 0x32d   :  { %2771 = vpow2.f32 %v2696_v19  ;;  %v2697_v9 = vmul.f32 -1.442695, %v1871_v29 }
 0x32f   :  { %2773 = vpow2.f32 %v2697_v9 }
 0x330   :  { %2775 = vtanh.f32 %v1711_v28 }
 0x336   :  { %v2768_v30 = vpop.eup %2767 }
 0x337   :  { %v1889_v33 = vadd.f32 1.0, %v2768_v30 }
 0x338   :  { %v2770_v34 = vpop.eup %2769 }
 0x339   :  { %v1890_v38 = vadd.f32 1.0, %v2770_v34  ;;  %2777 = vrcp.f32 %v1889_v33 }
 0x33a   :  { %v2772_v39 = vpop.eup %2771 }
 0x33b   :  { %2779 = vrcp.f32 %v1890_v38  ;;  %v1891_v41 = vadd.f32 1.0, %v2772_v39  ;;  %v2063_v38 = vld [vmem:[#allocation3] sm:$0x1] }
 0x33c   :  { %v2774_v60 = vpop.eup %2773  ;;  %2781 = vtanh.f32 %v1709_v35 }
 0x33d   :  { %2783 = vtanh.f32 %v1717_v36  ;;  %v1892_v43 = vadd.f32 1.0, %v2774_v60  ;;  %v2776_v44 = vpop.eup %2775 }
 0x33e   :  { %2785 = vrcp.f32 %v1891_v41 }
 0x33f   :  { %2787 = vrcp.f32 %v1892_v43 }
 0x340   :  { %2789 = vtanh.f32 %v1715_v42  ;;  %v2977_v42 = vmov 1983009808  }
 0x341   :  { %v2271_v43 = vunpack.c.l.s4 %v2977_v42 }
 0x346   :  { %v2778_v45 = vpop.eup %2777 }
 0x348   :  { %v2780_v47 = vpop.eup %2779 }
 0x349   :  { %v2782_v48 = vpop.eup %2781  ;;  %v1902_v49 = vmul.f32 %v2780_v47, %v2776_v44  ;;  %v2272_v44 = vunpack.c.0.s8 %v2271_v43  ;;  %v2269_v47 = vcombine.high %v2976_v61, %v2976_v61 }
 0x34a   :  { %v2784_v50 = vpop.eup %2783  ;;  %v1901_v51 = vmul.f32 %v2782_v48, %v2778_v45 }
 0x34b   :  { %v2786_v52 = vpop.eup %2785  ;;  %2008 = vmatprep.mubr.f32.mxu0 %v1902_v49  ;;  %v3224_v45 = vsub.s32 %v2272_v44, %v3043_v46  ;;  %v2079_v49 = vand.u32 127, %v643_v37 }
 0x34c   :  { %v2788_v53 = vpop.eup %2787  ;;  %2009 = vmatmul.mubr.f32.vlgmr.msra.gmra.mxu0 %v1901_v51 }
 0x34d   :  { %v2790_v59 = vpop.eup %2789  ;;  %v1904_v55 = vmul.f32 %v2788_v53, %v2784_v50  ;;  %v2276_v48 = vrot.slane %v2976_v61, %v3224_v45  ;;  %v2283_v50 = vrot.slane %v2269_v47, %v3224_v45  ;;  %vm2080_vm3 = vcmp.eq.s32.totalorder %v3043_v46, %v2079_v49 }
 0x34e   :  { %v1903_v57 = vmul.f32 %v2790_v59, %v2786_v52  ;;  %v2699_v37 = vsel %vm2080_vm3, 1.0, %v2976_v61 }
 0x34f   :  { %2013 = vmatprep.mubr.f32.mxu0 %v1904_v55  ;;  %v2284_v52 = vcombine.high %v2276_v48, %v2276_v48  ;;  %v2285_v59 = vcombine.high %v2283_v50, %v2283_v50 }
 0x350   :  { %2014 = vmatmul.mubr.f32.gmra.mxu0 %v1903_v57 }
 0x40c   :  { %v2747_v62 = vpop.f32.mrf.mxu0 }
 0x40e   :  { %v2748_v1 = vpop.f32.mrf.mxu0 }
 0x40f   :  { %v2749_v4 = vadd.f32 %v2748_v1, %v2747_v62 }
 0x410   :  { %v2750_v5 = vpop.f32.mrf.mxu0 }
 0x411   :  { %v2011_v6 = vadd.f32 %v2749_v4, %v2698_v63 }
 0x412   :  { %v2751_v7 = vpop.f32.mrf.mxu0 }
 0x413   :  { %2020 = vst.msk [vmem:[%s3272_s7] sm:$0xff] %vm2019_vm1, %v2011_v6  ;;  %v2752_v8 = vadd.f32 %v2751_v7, %v2750_v5  ;;  %v2037_v12 = vsel %vm2019_vm1, %v2011_v6, -inf }
 0x415   :  { %v2016_v10 = vadd.f32 %v2752_v8, %v2698_v63 }
 0x417   :  { %2021 = vst.msk [vmem:[%s3272_s7 + $0x8] sm:$0xff] %vm2019_vm1, %v2016_v10  ;;  %v2038_v13 = vsel %vm2019_vm1, %v2016_v10, -inf  ;;  %s2978_s7 = smov [#allocation16]  }
 0x418   :  { %v2039_v14 = vmax.f32 %v2037_v12, %v2038_v13  ;;  %s2680_s22 = sshll.u32 %s2978_s7, 4  ;;  %s2681_s22 = int_to_ptr.vmem [resolvable:$true] %s2680_s22 }
 0x419   :  { %s2935_s23 = scalar_lea.vmem %s2681_s22, 128  ;;  %p2940_p3 = scmp.lt.s32.totalorder %s2681_s22, %s2681_s22 }
 0x41a   :  { %v2040_v15 = vrot.slane %v2039_v14, 4  ;;  %p2936_p2 = scmp.ne.s32.totalorder %s2681_s22, %s2935_s23  ;;  %p2941_p4 = scmp.lt.s32.totalorder %s2935_s23, %s2935_s23 }
 0x41c   :  { %v2041_v16 = vmax.f32 %v2039_v14, %v2040_v15  ;;  %p2942_p5 = por %p2941_p4, %p2940_p3 }
 0x41e   :  { %v2042_v18 = vrot.slane %v2041_v16, 2  ;;  %p2943_p6 = pnand %p2942_p5, %p2936_p2 }
 0x420   :  { %v2043_v20 = vmax.f32 %v2041_v16, %v2042_v18 }
 0x422   :  { %v2044_v21 = vrot.slane %v2043_v20, 1 }
 0x424   :  { %v2045_v23 = vmax.f32 %v2043_v20, %v2044_v21 }
 0x426   :  { %v2047_v17 = vmax.f32 %v2046_v22, %v2045_v23 }
 0x428   :  { %v2055_v54 = vrot.slane %v2047_v17, %v3046_v56  ;;  %2463 = vst.msk [vmem:[#allocation2] sm:$0x1] %vm109_vm0, %v2047_v17  ;;  %v2048_v9 = vsub.f32 %v2046_v22, %v2047_v17 }
 0x42a   :  { %v2057_v3 = vsub.f32 %v2011_v6, %v2055_v54  ;;  %v2058_v26 = vsub.f32 %v2016_v10, %v2055_v54  ;;  %v2049_v24 = vmul.f32 1.442695, %v2048_v9 }
 0x42c   :  { %v2059_v19 = vmul.f32 1.442695, %v2057_v3  ;;  %v2061_v29 = vmul.f32 1.442695, %v2058_v26 }
 0x42e   :  { %2791 = vpow2.f32 %v2059_v19 }
 0x42f   :  { %2793 = vpow2.f32 %v2061_v29 }
 0x430   :  { %2795 = vpow2.f32 %v2049_v24 }
 0x43b   :  { %v2792_v25 = vpop.eup %2791 }
 0x43c   :  { %v2794_v27 = vpop.eup %2793  ;;  %v2065_v28 = vsel %vm2019_vm1, %v2792_v25, 0.0  ;;  %2090 = vxpose.xlu0.b32.start [1/2] (short) (narrow) %v2792_v25, 8 }
 0x43d   :  { %v2066_v30 = vsel %vm2019_vm1, %v2794_v27, 0.0  ;;  %v2796_v36 = vpop.eup %2795 }
 0x43e   :  { %v2067_v31 = vadd.f32 %v2066_v30, %v2065_v28  ;;  %v2064_v41 = vmul.f32 %v2796_v36, %v2063_v38  ;;  %v2087_v53 = vrot.slane %v2796_v36, %v3046_v56 }
 0x440   :  { %v2068_v32 = vrot.slane %v2067_v31, 4  ;;  %2091 = vxpose.xlu0.b32.end [2/2] (short) (narrow) %v2794_v27, 8  ;;  %v2089_v46 = vmul.f32 %v2699_v37, %v2087_v53 }
 0x442   :  { %v2069_v33 = vadd.f32 %v2068_v32, %v2067_v31 }
 0x444   :  { %v2070_v34 = vrot.slane %v2069_v33, 2 }
 0x446   :  { %v2071_v35 = vadd.f32 %v2070_v34, %v2069_v33 }
 0x448   :  { %v2072_v39 = vrot.slane %v2071_v35, 1 }
 0x44a   :  { %v2073_v40 = vadd.f32 %v2072_v39, %v2071_v35 }
 0x44c   :  { %v2074_v60 = vadd.f32 %v2073_v40, %v2064_v41 }
 0x44e   :  { %2076 = vst.msk [vmem:[#allocation3] sm:$0x1] %vm109_vm0, %v2074_v60 }
 0x455   :  { %v2467_v55 = vld [vmem:[#allocation3] sm:$0x1] }
 0x456   :  { %2797 = vrcp.f32 %v2467_v55 }
 0x463   :  { %v2798_v14 = vpop.eup %2797 }
 0x464   :  { %v2475_v21 = vrot.slane %v2798_v14, %v3046_v56 }
 0x466   :  { %v2477_v23 = vmul.f32 %v2699_v37, %v2475_v21 }
 0x4b8   :  { %v2106_v51 = vpop.trf.xlu0 }
 0x4b9   :  { %2700 = vmatmul.mubr.msk.f32.vlgmr.msra.gmra.mxu1 %vm2122_vm2, %v2106_v51 }
 0x4ba   :  { %2226 = vmatpush1.msra.mxu1 %v3088_v11  ;;  %2261 = vmatprep.mubr.f32.mxu1 %v2976_v61 }
 0x4bb   :  { %2227 = vmatprep.subr.mxu1 %v3080_v0 }
 0x4bc   :  { %2228 = vmatpush1.msra.mxu1 %v3082_v2 }
 0x4bd   :  { %2701 = vmatmul.mubr.msk.f32.vlgmr.msra.gmra.mxu1 %vm2122_vm2, %v2106_v51  ;;  %2702 = vmatprep.subr.msk.mxu1 %vm2289_vm4, %v2284_v52 }
 0x4be   :  { %2703 = vmatpush1.msk.msra.mxu1 %vm2289_vm4, %v2276_v48  ;;  %2362 = vmatprep.mubr.f32.mxu1 %v2976_v61 }
 0x4bf   :  { %2705 = vmatprep.subr.msk.mxu1 %vm2289_vm4, %v2285_v59 }
 0x4c1   :  { %2704 = vmatmul.mubr.msk.f32.vlgmr.msra.gmra.mxu1 %vm2019_vm1, %v2089_v46 }
 0x4c2   :  { %2706 = vmatpush1.msk.msra.mxu1 %vm2289_vm4, %v2283_v50  ;;  %2433 = vmatprep.mubr.f32.mxu1 %v2976_v61 }
 0x4c5   :  { %2707 = vmatmul.mubr.msk.f32.vlgmr.msra.gmra.mxu1 %vm2019_vm1, %v2089_v46 }
 0x4c6   :  { %2571 = vmatprep.mubr.f32.mxu1 %v2976_v61 }
 0x579   :  { %v2192_v0 = vpop.f32.mrf.mxu1 }
 0x57b   :  { %v2194_v2 = vpop.f32.mrf.mxu1 }
 0x57d   :  { %v2263_v11 = vpop.f32.mrf.mxu1 }
 0x57f   :  { %v2265_v57 = vpop.f32.mrf.mxu1 }
 0x581   :  { %v2364_v58 = vpop.f32.mrf.mxu1 }
 0x582   :  { %v2365_v4 = vadd.f32 %v2364_v58, %v2192_v0 }
 0x583   :  { %v2366_v62 = vpop.f32.mrf.mxu1 }
 0x584   :  { %v2367_v63 = vadd.f32 %v2366_v62, %v2194_v2 }
 0x585   :  { %v2435_v1 = vpop.f32.mrf.mxu1 }
 0x586   :  { %v2444_v6 = vcombine.low %v2365_v4, %v2367_v63  ;;  %v2436_v7 = vadd.f32 %v2435_v1, %v2263_v11 }
 0x587   :  { %v2437_v5 = vpop.f32.mrf.mxu1 }
 0x588   :  { %v2438_v8 = vadd.f32 %v2437_v5, %v2265_v57  ;;  %v2452_v12 = vrot.slane %v2444_v6, %v3224_v45 }
 0x58a   :  { %v2445_v10 = vcombine.low %v2436_v7, %v2438_v8 }
 0x58c   :  { %v2459_v13 = vrot.slane %v2445_v10, %v3224_v45 }
 0x58e   :  { %v2460_v15 = vcombine.low %v2452_v12, %v2459_v13  ;;  %v2714_v16 = vcombine.low %v2459_v13, %v2459_v13 }
 0x590   :  { %v2486_v18 = vrot.slane %v2460_v15, %v3224_v45  ;;  %v2493_v20 = vrot.slane %v2714_v16, %v3224_v45 }
 0x592   :  { %v2494_v22 = vcombine.high %v2486_v18, %v2486_v18  ;;  %v2495_v17 = vcombine.high %v2493_v20, %v2493_v20 }
 0x594   :  { %2708 = vmatprep.subr.msk.mxu1 %vm2289_vm4, %v2494_v22 }
 0x595   :  { %2709 = vmatpush1.msk.msra.mxu1 %vm2289_vm4, %v2486_v18 }
 0x596   :  { %2710 = vmatmul.mubr.msk.f32.vlgmr.msra.gmra.mxu1 %vm2019_vm1, %v2477_v23  ;;  %2711 = vmatprep.subr.msk.mxu1 %vm2289_vm4, %v2495_v17 }
 0x597   :  { %2712 = vmatpush1.msk.msra.mxu1 %vm2289_vm4, %v2493_v20  ;;  %2642 = vmatprep.mubr.f32.mxu1 %v2976_v61 }
 0x59a   :  { %2713 = vmatmul.mubr.msk.f32.vlgmr.msra.gmra.mxu1 %vm2019_vm1, %v2477_v23 }
 0x656   :  { %v2573_v54 = vpop.f32.mrf.mxu1 }
 0x658   :  { %v2575_v3 = vpop.f32.mrf.mxu1 }
 0x659   :  { %v2653_v26 = vcombine.low %v2573_v54, %v2575_v3 }
 0x65a   :  { %v2644_v56 = vpop.f32.mrf.mxu1 }
 0x65b   :  { %v2661_v9 = vrot.slane %v2653_v26, %v3224_v45 }
 0x65c   :  { %v2646_v19 = vpop.f32.mrf.mxu1 }
 0x65d   :  { %v2654_v29 = vcombine.low %v2644_v56, %v2646_v19 }
 0x65f   :  { %v2668_v24 = vrot.slane %v2654_v29, %v3224_v45 }
 0x661   :  { %v2669_v25 = vcombine.low %v2661_v9, %v2668_v24 }
 0x663   :  { %2671 = vst [vmem:[#allocation16] sm:$0xff] %v2669_v25 }
 0x664   :  { %2946 = shalt.err (!%p2943_p6)
}
 0x665   :  { %2683 = dma.vmem_to_hbm [thread:$0]  %s2681_s22, 128, %s3273_s8, [#allocation7]  }
 0x666   :  { %2963 = dma.done.wait [#allocation7], 128  }
 0x667   :  { %2964 = vsyncadd [#allocation7], 4294967168 }
 0x668   :  { %2689 = vsyncpa [#allocation6], 1 }
 0x669   :  { %2690 = vsyncpa [#allocation9], 1 }
 0x66a   :  { %2691 = vsyncpa [#allocation12], 1 }
 0x66b   :  { %2692 = vsyncpa [#allocation15], 1 }
 0x66c   :  { %2693 = vsyncpa [#allocation7], 1 }

</bundles_post_ra>
